<compile_context>
chip_gen: v5e
topology: v5e:2x2
jax: 0.10.0
libtpu: 0.0.40
codegen_flags: <defaults>
</compile_context>

<pallas_src>
import functools

import jax
import jax.numpy as jnp
from jax.experimental import pallas as pl
from jax.experimental.pallas import tpu as pltpu

# ---------------- small config consistent with the ELMo module -------------
BATCH = 2
SEQ = 8
MAX_CHARS = 7
WORD_VOCAB = 50
CHAR_VOCAB = 30
WORD_DIM = 32
CHAR_DIM = 16
FILTERS = [(1, 8), (2, 8), (3, 16)]          # (kernel_width, num_filters)
N_FILTERS = sum(nf for _, nf in FILTERS)
N_HIGHWAY = 1
PROJ_DIM = 32                                 # config['encoder']['projection_dim']
HIDDEN_DIM = 64                               # LSTM memory-cell size
N_LAYERS = 2
CELL_CLIP = 3.0
PROJ_CLIP = 3.0

_VMEM = pl.BlockSpec(memory_space=pltpu.MemorySpace.VMEM)


# ------------------------------- kernels -----------------------------------
def _token_embedder_kernel(we_ref, x1_ref, x2_ref, x3_ref,
                           w1_ref, w2_ref, w3_ref,
                           b1_ref, b2_ref, b3_ref,
                           hww_ref, hwb_ref, pww_ref, pwc_ref, pb_ref,
                           o_ref, cf_sc):
    """Fused char-CNN (+max-over-time+relu) -> highway -> token projection.

    x{1,2,3}_ref: im2col'd char embeddings, (T_out * N, width * Cd), rows are
    time-major so max-over-time is a max over N-row (sublane-aligned) blocks.
    """
    n_tok = we_ref.shape[0]

    # --- char CNN: one MXU call per filter, bias folded after the max ------
    off = 0
    for x_ref, w_ref, b_ref in ((x1_ref, w1_ref, b1_ref),
                                (x2_ref, w2_ref, b2_ref),
                                (x3_ref, w3_ref, b3_ref)):
        nf = w_ref.shape[1]
        t_out = x_ref.shape[0] // n_tok
        y = jnp.dot(x_ref[...], w_ref[...],
                    preferred_element_type=jnp.float32)      # (T_out*N, nf)
        m = y[0:n_tok]
        for t in range(1, t_out):                            # static, aligned slices
            m = jnp.maximum(m, y[t * n_tok:(t + 1) * n_tok])
        cf_sc[:, off:off + nf] = jnp.maximum(m + b_ref[...], 0.0)
        off += nf
    char_feat = cf_sc[...]                                    # (N, n_filters)

    # --- highway layers (AllenNLP: gate*x + (1-gate)*relu(nonlinear)) ------
    d = char_feat.shape[-1]
    for i in range(hww_ref.shape[0]):
        proj = (jnp.dot(char_feat, hww_ref[i],
                        preferred_element_type=jnp.float32) + hwb_ref[i])
        nonlinear = jnp.maximum(proj[:, :d], 0.0)
        gate = jax.nn.sigmoid(proj[:, d:])
        char_feat = gate * char_feat + (1.0 - gate) * nonlinear

    # --- token projection: concat([word, char]) @ W == split-weight sum ----
    o_ref[...] = (jnp.dot(we_ref[...], pww_ref[...],
                          preferred_element_type=jnp.float32)
                  + jnp.dot(char_feat, pwc_ref[...],
                            preferred_element_type=jnp.float32)
                  + pb_ref[...])


def _lstm_dir_kernel(x_ref, m_ref, wih_ref, whh_ref, b_ref, wproj_ref,
                     o_ref, xw_sc, h_sc, c_sc,
                     *, seq_len, batch, cell_clip, proj_clip):
    """LstmCellWithProjection, one direction per grid point, full sequence.

    x_ref: (1, L*B, D) time-major rows.  m_ref: (1, L*B, 1).  o_ref: (1, L*B, P).
    The input projection is hoisted out of the recurrence; the time loop is a
    static unroll (seq_len is a compile-time constant).
    """
    hid = c_sc.shape[-1]

    # Hoisted input projection: one MXU call covering the whole sequence.
    xw_sc[...] = (jnp.dot(x_ref[0], wih_ref[0],
                          preferred_element_type=jnp.float32) + b_ref[0])
    h_sc[...] = jnp.zeros_like(h_sc)
    c_sc[...] = jnp.zeros_like(c_sc)
    whh = whh_ref[0]
    wproj = wproj_ref[0]

    for t in range(seq_len):                                  # static unroll
        lo, hi = t * batch, (t + 1) * batch
        m_t = m_ref[0, lo:hi, :]                              # (B, 1)
        not_m = 1.0 - m_t
        h_prev = h_sc[...]
        c_prev = c_sc[...]
        gates = xw_sc[lo:hi, :] + jnp.dot(h_prev, whh,
                                          preferred_element_type=jnp.float32)
        i_g = jax.nn.sigmoid(gates[:, 0 * hid:1 * hid])
        f_g = jax.nn.sigmoid(gates[:, 1 * hid:2 * hid])
        g_g = jnp.tanh(gates[:, 2 * hid:3 * hid])
        o_g = jax.nn.sigmoid(gates[:, 3 * hid:4 * hid])
        c_new = jnp.clip(i_g * g_g + f_g * c_prev, -cell_clip, cell_clip)
        h_proj = jnp.clip(jnp.dot(o_g * jnp.tanh(c_new), wproj,
                                  preferred_element_type=jnp.float32),
                          -proj_clip, proj_clip)
        # mask gating == packed-sequence semantics for right-padded batches
        c_sc[...] = m_t * c_new + not_m * c_prev
        h_sc[...] = m_t * h_proj + not_m * h_prev
        o_ref[0, lo:hi, :] = m_t * h_proj


# ------------------------------ wrappers ------------------------------------
def _im2col_char(char_emb, width):
    """(N, Wc, Cd) -> (T_out * N, width * Cd), rows ordered time-major."""
    n, wc, cd = char_emb.shape
    t_out = wc - width + 1
    win = jnp.concatenate([char_emb[:, k:k + t_out, :] for k in range(width)],
                          axis=-1)                            # (N, T_out, W*Cd)
    return jnp.transpose(win, (1, 0, 2)).reshape(t_out * n, width * cd)


def pallas_token_embedder(params, word_inp, chars_inp):
    batch, seq = word_inp.shape
    n = batch * seq
    word_emb = jnp.take(params["word_emb"], word_inp.reshape(n), axis=0)   # (N,Wd)
    char_emb = jnp.take(params["char_emb"],
                        chars_inp.reshape(n, MAX_CHARS), axis=0)           # (N,Wc,Cd)

    xs = [_im2col_char(char_emb, w) for w, _ in FILTERS]
    ws = [params["conv_w"][i].reshape(FILTERS[i][0] * CHAR_DIM, FILTERS[i][1])
          for i in range(len(FILTERS))]
    bs = params["conv_b"]
    hw_w = jnp.stack(params["hw_w"], axis=0)                  # (NH, NF, 2NF)
    hw_b = jnp.stack(params["hw_b"], axis=0)                  # (NH, 1, 2NF)
    pw_word = params["proj_w"][:WORD_DIM]
    pw_char = params["proj_w"][WORD_DIM:]

    token = pl.pallas_call(
        _token_embedder_kernel,
        out_shape=jax.ShapeDtypeStruct((n, PROJ_DIM), jnp.float32),
        in_specs=[_VMEM] * 15,
        out_specs=_VMEM,
        scratch_shapes=[pltpu.VMEM((n, N_FILTERS), jnp.float32)],
    )(word_emb, xs[0], xs[1], xs[2], ws[0], ws[1], ws[2],
      bs[0], bs[1], bs[2], hw_w, hw_b, pw_word, pw_char, params["proj_b"])
    return token.reshape(batch, seq, PROJ_DIM)


def pallas_bilstm_layer(fwd_in, bwd_in, m, m_rev, p_fwd, p_bwd):
    """One bi-LSTM-with-projection layer: both directions in one pallas_call,
    grid=(2,) over directions marked "parallel" (2 TensorCores on v7x)."""
    seq_len, batch, d = fwd_in.shape
    hid = HIDDEN_DIM
    proj = p_fwd["wproj"].shape[1]
    lb = seq_len * batch

    x = jnp.stack([fwd_in.reshape(lb, d),
                   jnp.flip(bwd_in, axis=0).reshape(lb, d)], axis=0)     # (2,L*B,D)
    msk = jnp.stack([m.reshape(lb, 1), m_rev.reshape(lb, 1)], axis=0)    # (2,L*B,1)
    wih = jnp.stack([p_fwd["wih"], p_bwd["wih"]], axis=0)
    whh = jnp.stack([p_fwd["whh"], p_bwd["whh"]], axis=0)
    bias = jnp.stack([p_fwd["b"], p_bwd["b"]], axis=0)
    wproj = jnp.stack([p_fwd["wproj"], p_bwd["wproj"]], axis=0)

    kernel = functools.partial(_lstm_dir_kernel, seq_len=seq_len, batch=batch,
                               cell_clip=CELL_CLIP, proj_clip=PROJ_CLIP)
    out = pl.pallas_call(
        kernel,
        out_shape=jax.ShapeDtypeStruct((2, lb, proj), jnp.float32),
        grid=(2,),
        in_specs=[pl.BlockSpec((1, lb, d), lambda i: (i, 0, 0)),
                  pl.BlockSpec((1, lb, 1), lambda i: (i, 0, 0)),
                  pl.BlockSpec((1, d, 4 * hid), lambda i: (i, 0, 0)),
                  pl.BlockSpec((1, proj, 4 * hid), lambda i: (i, 0, 0)),
                  pl.BlockSpec((1, 1, 4 * hid), lambda i: (i, 0, 0)),
                  pl.BlockSpec((1, hid, proj), lambda i: (i, 0, 0))],
        out_specs=pl.BlockSpec((1, lb, proj), lambda i: (i, 0, 0)),
        scratch_shapes=[pltpu.VMEM((lb, 4 * hid), jnp.float32),   # hoisted x@Wih
                        pltpu.VMEM((batch, proj), jnp.float32),   # h state
                        pltpu.VMEM((batch, hid), jnp.float32)],   # c state
        compiler_params=pltpu.CompilerParams(
            dimension_semantics=("parallel",)),
    )(x, msk, wih, whh, bias, wproj)

    fwd_out = out[0].reshape(seq_len, batch, proj)
    bwd_out = jnp.flip(out[1].reshape(seq_len, batch, proj), axis=0)
    return fwd_out, bwd_out


# --------------------------- params & forward -------------------------------
def init_params(key):
    keys = iter(jax.random.split(key, 64))

    def nrm(shape, scale=0.1):
        return scale * jax.random.normal(next(keys), shape, dtype=jnp.float32)

    params = {
        "word_emb": nrm((WORD_VOCAB, WORD_DIM)),
        "char_emb": nrm((CHAR_VOCAB, CHAR_DIM)),
        "conv_w": [nrm((w, CHAR_DIM, nf)) for w, nf in FILTERS],
        "conv_b": [nrm((1, nf)) for _, nf in FILTERS],
        "hw_w": [nrm((N_FILTERS, 2 * N_FILTERS)) for _ in range(N_HIGHWAY)],
        "hw_b": [nrm((1, 2 * N_FILTERS)) for _ in range(N_HIGHWAY)],
        "proj_w": nrm((WORD_DIM + N_FILTERS, PROJ_DIM)),
        "proj_b": nrm((1, PROJ_DIM)),
        "lstm": [],
    }
    for _ in range(N_LAYERS):
        layer = {}
        for direction in ("fwd", "bwd"):
            layer[direction] = dict(
                wih=nrm((PROJ_DIM, 4 * HIDDEN_DIM)),
                whh=nrm((PROJ_DIM, 4 * HIDDEN_DIM)),
                b=nrm((1, 4 * HIDDEN_DIM)),
                wproj=nrm((HIDDEN_DIM, PROJ_DIM)),
            )
        params["lstm"].append(layer)
    return params


def elmo_forward(params, word_inp, chars_inp, mask):
    batch, seq = mask.shape

    # ---- ConvTokenEmbedder (single fused Pallas kernel) ----
    token = pallas_token_embedder(params, word_inp, chars_inp)          # (B,L,P)

    # ---- ElmobiLm encoder (stacked bi-LSTM with projection + residual) ----
    x = jnp.transpose(token, (1, 0, 2))                                 # (L,B,P)
    m = jnp.transpose(mask.astype(jnp.float32), (1, 0))[:, :, None]     # (L,B,1)
    m_rev = jnp.flip(m, axis=0)

    fwd_in, bwd_in = x, x
    layer_outs = []
    for li in range(N_LAYERS):
        fwd_out, bwd_out = pallas_bilstm_layer(
            fwd_in, bwd_in, m, m_rev,
            params["lstm"][li]["fwd"], params["lstm"][li]["bwd"])
        if li != 0:                       # residual skip (layers > 0)
            fwd_out = fwd_out + fwd_in
            bwd_out = bwd_out + bwd_in
        fwd_in, bwd_in = fwd_out, bwd_out
        layer_outs.append(jnp.concatenate([fwd_out, bwd_out], axis=-1))  # (L,B,2P)

    enc = jnp.stack(layer_outs, axis=0)                  # (n_layers, L, B, 2P)
    enc = jnp.transpose(enc, (0, 2, 1, 3))               # (n_layers, B, L, 2P)

    # ---- Model.forward combination ----
    te2 = jnp.concatenate([token, token], axis=2)[None]  # (1, B, L, 2P)
    return jnp.concatenate([te2, enc], axis=0)           # (n_layers+1, B, L, 2P)
    # TODO(synk): load_model (torch.load of .pkl checkpoints) has no Pallas
    # equivalent; parameters are initialized synthetically instead.


# --------------------------------- main --------------------------------------
if __name__ == "__main__":
    key = jax.random.PRNGKey(0)
    k_param, k_word, k_char = jax.random.split(key, 3)
    params = init_params(k_param)

    word_inp = jax.random.randint(k_word, (BATCH, SEQ), 0, WORD_VOCAB,
                                  dtype=jnp.int32)
    chars_inp = jax.random.randint(k_char, (BATCH, SEQ, MAX_CHARS), 0, CHAR_VOCAB,
                                   dtype=jnp.int32)
    lengths = jnp.array([SEQ, SEQ - 2], dtype=jnp.int32)
    mask = (jnp.arange(SEQ)[None, :] < lengths[:, None]).astype(jnp.int32)

    out = jax.jit(elmo_forward)(params, word_inp, chars_inp, mask)
    out = jax.block_until_ready(out)
    assert out.shape == (N_LAYERS + 1, BATCH, SEQ, 2 * PROJ_DIM), out.shape
    assert out.dtype == jnp.float32
    print("KERNEL_OK")
</pallas_src>

<mosaic_0001>
module attributes {stable_mosaic.version = 11 : i64} {
  func.func @_lstm_dir_kernel(%arg0: i32, %arg1: memref<1x16x32xf32, #tpu.memory_space<vmem>>, %arg2: memref<1x16x1xf32, #tpu.memory_space<vmem>>, %arg3: memref<1x32x256xf32, #tpu.memory_space<vmem>>, %arg4: memref<1x32x256xf32, #tpu.memory_space<vmem>>, %arg5: memref<1x1x256xf32, #tpu.memory_space<vmem>>, %arg6: memref<1x64x32xf32, #tpu.memory_space<vmem>>, %arg7: memref<1x16x32xf32, #tpu.memory_space<vmem>>, %arg8: memref<16x256xf32, #tpu.memory_space<vmem>>, %arg9: memref<2x32xf32, #tpu.memory_space<vmem>>, %arg10: memref<2x64xf32, #tpu.memory_space<vmem>>) attributes {dimension_semantics = [#tpu.dimension_semantics<parallel>], iteration_bounds = array<i64: 2>, scalar_prefetch = 0 : i64, scratch_operands = 3 : i64, tpu.core_type = #tpu.core_type<tc>, window_params = [{transform_indices = @transform_0, window_bounds = array<i64: 1, 16, 32>}, {transform_indices = @transform_1, window_bounds = array<i64: 1, 16, 1>}, {transform_indices = @transform_2, window_bounds = array<i64: 1, 32, 256>}, {transform_indices = @transform_3, window_bounds = array<i64: 1, 32, 256>}, {transform_indices = @transform_4, window_bounds = array<i64: 1, 1, 256>}, {transform_indices = @transform_5, window_bounds = array<i64: 1, 64, 32>}, {transform_indices = @transform_6, window_bounds = array<i64: 1, 16, 32>}]} {
    %c0 = arith.constant 0 : index
    %c0_0 = arith.constant 0 : index
    %c0_1 = arith.constant 0 : index
    %0 = vector.load %arg1[%c0, %c0_0, %c0_1] : memref<1x16x32xf32, #tpu.memory_space<vmem>>, vector<1x16x32xf32>
    %1 = vector.shape_cast %0 : vector<1x16x32xf32> to vector<16x32xf32>
    %c0_2 = arith.constant 0 : index
    %c0_3 = arith.constant 0 : index
    %c0_4 = arith.constant 0 : index
    %2 = vector.load %arg3[%c0_2, %c0_3, %c0_4] : memref<1x32x256xf32, #tpu.memory_space<vmem>>, vector<1x32x256xf32>
    %3 = vector.shape_cast %2 : vector<1x32x256xf32> to vector<32x256xf32>
    %cst = arith.constant dense<0.000000e+00> : vector<16x256xf32>
    %4 = tpu.matmul %1, %3, %cst {dimension_numbers = #tpu.dot_dimension_numbers<[1], [0], [0], [1], [0, 0, 1, 1], [], []>} : vector<16x32xf32>, vector<32x256xf32>, vector<16x256xf32> -> vector<16x256xf32>
    %c0_5 = arith.constant 0 : index
    %c0_6 = arith.constant 0 : index
    %c0_7 = arith.constant 0 : index
    %5 = vector.load %arg5[%c0_5, %c0_6, %c0_7] : memref<1x1x256xf32, #tpu.memory_space<vmem>>, vector<1x1x256xf32>
    %6 = vector.shape_cast %5 : vector<1x1x256xf32> to vector<1x256xf32>
    %7 = vector.broadcast %6 : vector<1x256xf32> to vector<16x256xf32>
    %8 = arith.addf %4, %7 : vector<16x256xf32>
    %c0_8 = arith.constant 0 : index
    %c0_9 = arith.constant 0 : index
    %9 = vector.load %arg8[%c0_8, %c0_9] : memref<16x256xf32, #tpu.memory_space<vmem>>, vector<16x256xf32>
    tpu.vector_store %arg8[%c0_8, %c0_9], %8 {strides = array<i32>} : memref<16x256xf32, #tpu.memory_space<vmem>>, vector<16x256xf32>,
    %cst_10 = arith.constant 0.000000e+00 : f32
    %10 = vector.broadcast %cst_10 : f32 to vector<2x32xf32>
    %c0_11 = arith.constant 0 : index
    %c0_12 = arith.constant 0 : index
    %11 = vector.load %arg9[%c0_11, %c0_12] : memref<2x32xf32, #tpu.memory_space<vmem>>, vector<2x32xf32>
    tpu.vector_store %arg9[%c0_11, %c0_12], %10 {strides = array<i32>} : memref<2x32xf32, #tpu.memory_space<vmem>>, vector<2x32xf32>,
    %cst_13 = arith.constant 0.000000e+00 : f32
    %12 = vector.broadcast %cst_13 : f32 to vector<2x64xf32>
    %c0_14 = arith.constant 0 : index
    %c0_15 = arith.constant 0 : index
    %13 = vector.load %arg10[%c0_14, %c0_15] : memref<2x64xf32, #tpu.memory_space<vmem>>, vector<2x64xf32>
    tpu.vector_store %arg10[%c0_14, %c0_15], %12 {strides = array<i32>} : memref<2x64xf32, #tpu.memory_space<vmem>>, vector<2x64xf32>,
    %c0_16 = arith.constant 0 : index
    %c0_17 = arith.constant 0 : index
    %c0_18 = arith.constant 0 : index
    %14 = vector.load %arg4[%c0_16, %c0_17, %c0_18] : memref<1x32x256xf32, #tpu.memory_space<vmem>>, vector<1x32x256xf32>
    %15 = vector.shape_cast %14 : vector<1x32x256xf32> to vector<32x256xf32>
    %c0_19 = arith.constant 0 : index
    %c0_20 = arith.constant 0 : index
    %c0_21 = arith.constant 0 : index
    %16 = vector.load %arg6[%c0_19, %c0_20, %c0_21] : memref<1x64x32xf32, #tpu.memory_space<vmem>>, vector<1x64x32xf32>
    %17 = vector.shape_cast %16 : vector<1x64x32xf32> to vector<64x32xf32>
    %c0_22 = arith.constant 0 : index
    %c0_23 = arith.constant 0 : index
    %c0_24 = arith.constant 0 : index
    %18 = vector.load %arg2[%c0_22, %c0_23, %c0_24] : memref<1x16x1xf32, #tpu.memory_space<vmem>>, vector<1x2x1xf32>
    %19 = vector.shape_cast %18 : vector<1x2x1xf32> to vector<2x1xf32>
    %cst_25 = arith.constant 1.000000e+00 : f32
    %20 = vector.broadcast %cst_25 : f32 to vector<2x1xf32>
    %21 = arith.subf %20, %19 : vector<2x1xf32>
    %c0_26 = arith.constant 0 : index
    %c0_27 = arith.constant 0 : index
    %22 = vector.load %arg9[%c0_26, %c0_27] : memref<2x32xf32, #tpu.memory_space<vmem>>, vector<2x32xf32>
    %c0_28 = arith.constant 0 : index
    %c0_29 = arith.constant 0 : index
    %23 = vector.load %arg10[%c0_28, %c0_29] : memref<2x64xf32, #tpu.memory_space<vmem>>, vector<2x64xf32>
    %c0_30 = arith.constant 0 : index
    %c0_31 = arith.constant 0 : index
    %24 = vector.load %arg8[%c0_30, %c0_31] : memref<16x256xf32, #tpu.memory_space<vmem>>, vector<2x256xf32>
    %cst_32 = arith.constant dense<0.000000e+00> : vector<2x256xf32>
    %25 = tpu.matmul %22, %15, %cst_32 {dimension_numbers = #tpu.dot_dimension_numbers<[1], [0], [0], [1], [0, 0, 1, 1], [], []>} : vector<2x32xf32>, vector<32x256xf32>, vector<2x256xf32> -> vector<2x256xf32>
    %26 = arith.addf %24, %25 : vector<2x256xf32>
    %27 = vector.extract_strided_slice %26 {offsets = [0, 0], sizes = [2, 64], strides = [1, 1]} : vector<2x256xf32> to vector<2x64xf32>
    %28 = arith.negf %27 : vector<2x64xf32>
    %29 = math.exp %28 : vector<2x64xf32>
    %cst_33 = arith.constant 1.000000e+00 : f32
    %30 = vector.broadcast %cst_33 : f32 to vector<2x64xf32>
    %31 = arith.addf %30, %29 : vector<2x64xf32>
    %32 = arith.divf %30, %31 : vector<2x64xf32>
    %33 = vector.extract_strided_slice %26 {offsets = [0, 64], sizes = [2, 64], strides = [1, 1]} : vector<2x256xf32> to vector<2x64xf32>
    %34 = arith.negf %33 : vector<2x64xf32>
    %35 = math.exp %34 : vector<2x64xf32>
    %cst_34 = arith.constant 1.000000e+00 : f32
    %36 = vector.broadcast %cst_34 : f32 to vector<2x64xf32>
    %37 = arith.addf %36, %35 : vector<2x64xf32>
    %38 = arith.divf %36, %37 : vector<2x64xf32>
    %39 = vector.extract_strided_slice %26 {offsets = [0, 128], sizes = [2, 64], strides = [1, 1]} : vector<2x256xf32> to vector<2x64xf32>
    %40 = math.tanh %39 : vector<2x64xf32>
    %41 = vector.extract_strided_slice %26 {offsets = [0, 192], sizes = [2, 64], strides = [1, 1]} : vector<2x256xf32> to vector<2x64xf32>
    %42 = arith.negf %41 : vector<2x64xf32>
    %43 = math.exp %42 : vector<2x64xf32>
    %cst_35 = arith.constant 1.000000e+00 : f32
    %44 = vector.broadcast %cst_35 : f32 to vector<2x64xf32>
    %45 = arith.addf %44, %43 : vector<2x64xf32>
    %46 = arith.divf %44, %45 : vector<2x64xf32>
    %47 = arith.mulf %32, %40 : vector<2x64xf32>
    %48 = arith.mulf %38, %23 : vector<2x64xf32>
    %49 = arith.addf %47, %48 : vector<2x64xf32>
    %cst_36 = arith.constant -3.000000e+00 : f32
    %cst_37 = arith.constant 3.000000e+00 : f32
    %50 = vector.broadcast %cst_36 : f32 to vector<2x64xf32>
    %51 = arith.maximumf %50, %49 : vector<2x64xf32>
    %52 = vector.broadcast %cst_37 : f32 to vector<2x64xf32>
    %53 = arith.minimumf %52, %51 : vector<2x64xf32>
    %54 = math.tanh %53 : vector<2x64xf32>
    %55 = arith.mulf %46, %54 : vector<2x64xf32>
    %cst_38 = arith.constant dense<0.000000e+00> : vector<2x32xf32>
    %56 = tpu.matmul %55, %17, %cst_38 {dimension_numbers = #tpu.dot_dimension_numbers<[1], [0], [0], [1], [0, 0, 1, 1], [], []>} : vector<2x64xf32>, vector<64x32xf32>, vector<2x32xf32> -> vector<2x32xf32>
    %cst_39 = arith.constant -3.000000e+00 : f32
    %cst_40 = arith.constant 3.000000e+00 : f32
    %57 = vector.broadcast %cst_39 : f32 to vector<2x32xf32>
    %58 = arith.maximumf %57, %56 : vector<2x32xf32>
    %59 = vector.broadcast %cst_40 : f32 to vector<2x32xf32>
    %60 = arith.minimumf %59, %58 : vector<2x32xf32>
    %61 = vector.broadcast %19 : vector<2x1xf32> to vector<2x64xf32>
    %62 = arith.mulf %61, %53 : vector<2x64xf32>
    %63 = vector.broadcast %21 : vector<2x1xf32> to vector<2x64xf32>
    %64 = arith.mulf %63, %23 : vector<2x64xf32>
    %65 = arith.addf %62, %64 : vector<2x64xf32>
    %c0_41 = arith.constant 0 : index
    %c0_42 = arith.constant 0 : index
    %66 = vector.load %arg10[%c0_41, %c0_42] : memref<2x64xf32, #tpu.memory_space<vmem>>, vector<2x64xf32>
    tpu.vector_store %arg10[%c0_41, %c0_42], %65 {strides = array<i32>} : memref<2x64xf32, #tpu.memory_space<vmem>>, vector<2x64xf32>,
    %67 = vector.broadcast %19 : vector<2x1xf32> to vector<2x32xf32>
    %68 = arith.mulf %67, %60 : vector<2x32xf32>
    %69 = vector.broadcast %21 : vector<2x1xf32> to vector<2x32xf32>
    %70 = arith.mulf %69, %22 : vector<2x32xf32>
    %71 = arith.addf %68, %70 : vector<2x32xf32>
    %c0_43 = arith.constant 0 : index
    %c0_44 = arith.constant 0 : index
    %72 = vector.load %arg9[%c0_43, %c0_44] : memref<2x32xf32, #tpu.memory_space<vmem>>, vector<2x32xf32>
    tpu.vector_store %arg9[%c0_43, %c0_44], %71 {strides = array<i32>} : memref<2x32xf32, #tpu.memory_space<vmem>>, vector<2x32xf32>,
    %73 = vector.broadcast %19 : vector<2x1xf32> to vector<2x32xf32>
    %74 = arith.mulf %73, %60 : vector<2x32xf32>
    %c0_45 = arith.constant 0 : index
    %c0_46 = arith.constant 0 : index
    %c0_47 = arith.constant 0 : index
    %75 = vector.load %arg7[%c0_45, %c0_46, %c0_47] : memref<1x16x32xf32, #tpu.memory_space<vmem>>, vector<1x2x32xf32>
    %76 = vector.shape_cast %75 : vector<1x2x32xf32> to vector<2x32xf32>
    %77 = vector.shape_cast %74 : vector<2x32xf32> to vector<1x2x32xf32>
    tpu.vector_store %arg7[%c0_45, %c0_46, %c0_47], %77 {strides = array<i32>} : memref<1x16x32xf32, #tpu.memory_space<vmem>>, vector<1x2x32xf32>,
    %c0_48 = arith.constant 0 : index
    %c2 = arith.constant 2 : index
    %c0_49 = arith.constant 0 : index
    %78 = vector.load %arg2[%c0_48, %c2, %c0_49] : memref<1x16x1xf32, #tpu.memory_space<vmem>>, vector<1x2x1xf32>
    %79 = vector.shape_cast %78 : vector<1x2x1xf32> to vector<2x1xf32>
    %cst_50 = arith.constant 1.000000e+00 : f32
    %80 = vector.broadcast %cst_50 : f32 to vector<2x1xf32>
    %81 = arith.subf %80, %79 : vector<2x1xf32>
    %c0_51 = arith.constant 0 : index
    %c0_52 = arith.constant 0 : index
    %82 = vector.load %arg9[%c0_51, %c0_52] : memref<2x32xf32, #tpu.memory_space<vmem>>, vector<2x32xf32>
    %c0_53 = arith.constant 0 : index
    %c0_54 = arith.constant 0 : index
    %83 = vector.load %arg10[%c0_53, %c0_54] : memref<2x64xf32, #tpu.memory_space<vmem>>, vector<2x64xf32>
    %c2_55 = arith.constant 2 : index
    %c0_56 = arith.constant 0 : index
    %84 = vector.load %arg8[%c2_55, %c0_56] : memref<16x256xf32, #tpu.memory_space<vmem>>, vector<2x256xf32>
    %cst_57 = arith.constant dense<0.000000e+00> : vector<2x256xf32>
    %85 = tpu.matmul %82, %15, %cst_57 {dimension_numbers = #tpu.dot_dimension_numbers<[1], [0], [0], [1], [0, 0, 1, 1], [], []>} : vector<2x32xf32>, vector<32x256xf32>, vector<2x256xf32> -> vector<2x256xf32>
    %86 = arith.addf %84, %85 : vector<2x256xf32>
    %87 = vector.extract_strided_slice %86 {offsets = [0, 0], sizes = [2, 64], strides = [1, 1]} : vector<2x256xf32> to vector<2x64xf32>
    %88 = arith.negf %87 : vector<2x64xf32>
    %89 = math.exp %88 : vector<2x64xf32>
    %cst_58 = arith.constant 1.000000e+00 : f32
    %90 = vector.broadcast %cst_58 : f32 to vector<2x64xf32>
    %91 = arith.addf %90, %89 : vector<2x64xf32>
    %92 = arith.divf %90, %91 : vector<2x64xf32>
    %93 = vector.extract_strided_slice %86 {offsets = [0, 64], sizes = [2, 64], strides = [1, 1]} : vector<2x256xf32> to vector<2x64xf32>
    %94 = arith.negf %93 : vector<2x64xf32>
    %95 = math.exp %94 : vector<2x64xf32>
    %cst_59 = arith.constant 1.000000e+00 : f32
    %96 = vector.broadcast %cst_59 : f32 to vector<2x64xf32>
    %97 = arith.addf %96, %95 : vector<2x64xf32>
    %98 = arith.divf %96, %97 : vector<2x64xf32>
    %99 = vector.extract_strided_slice %86 {offsets = [0, 128], sizes = [2, 64], strides = [1, 1]} : vector<2x256xf32> to vector<2x64xf32>
    %100 = math.tanh %99 : vector<2x64xf32>
    %101 = vector.extract_strided_slice %86 {offsets = [0, 192], sizes = [2, 64], strides = [1, 1]} : vector<2x256xf32> to vector<2x64xf32>
    %102 = arith.negf %101 : vector<2x64xf32>
    %103 = math.exp %102 : vector<2x64xf32>
    %cst_60 = arith.constant 1.000000e+00 : f32
    %104 = vector.broadcast %cst_60 : f32 to vector<2x64xf32>
    %105 = arith.addf %104, %103 : vector<2x64xf32>
    %106 = arith.divf %104, %105 : vector<2x64xf32>
    %107 = arith.mulf %92, %100 : vector<2x64xf32>
    %108 = arith.mulf %98, %83 : vector<2x64xf32>
    %109 = arith.addf %107, %108 : vector<2x64xf32>
    %cst_61 = arith.constant -3.000000e+00 : f32
    %cst_62 = arith.constant 3.000000e+00 : f32
    %110 = vector.broadcast %cst_61 : f32 to vector<2x64xf32>
    %111 = arith.maximumf %110, %109 : vector<2x64xf32>
    %112 = vector.broadcast %cst_62 : f32 to vector<2x64xf32>
    %113 = arith.minimumf %112, %111 : vector<2x64xf32>
    %114 = math.tanh %113 : vector<2x64xf32>
    %115 = arith.mulf %106, %114 : vector<2x64xf32>
    %cst_63 = arith.constant dense<0.000000e+00> : vector<2x32xf32>
    %116 = tpu.matmul %115, %17, %cst_63 {dimension_numbers = #tpu.dot_dimension_numbers<[1], [0], [0], [1], [0, 0, 1, 1], [], []>} : vector<2x64xf32>, vector<64x32xf32>, vector<2x32xf32> -> vector<2x32xf32>
    %cst_64 = arith.constant -3.000000e+00 : f32
    %cst_65 = arith.constant 3.000000e+00 : f32
    %117 = vector.broadcast %cst_64 : f32 to vector<2x32xf32>
    %118 = arith.maximumf %117, %116 : vector<2x32xf32>
    %119 = vector.broadcast %cst_65 : f32 to vector<2x32xf32>
    %120 = arith.minimumf %119, %118 : vector<2x32xf32>
    %121 = vector.broadcast %79 : vector<2x1xf32> to vector<2x64xf32>
    %122 = arith.mulf %121, %113 : vector<2x64xf32>
    %123 = vector.broadcast %81 : vector<2x1xf32> to vector<2x64xf32>
    %124 = arith.mulf %123, %83 : vector<2x64xf32>
    %125 = arith.addf %122, %124 : vector<2x64xf32>
    %c0_66 = arith.constant 0 : index
    %c0_67 = arith.constant 0 : index
    %126 = vector.load %arg10[%c0_66, %c0_67] : memref<2x64xf32, #tpu.memory_space<vmem>>, vector<2x64xf32>
    tpu.vector_store %arg10[%c0_66, %c0_67], %125 {strides = array<i32>} : memref<2x64xf32, #tpu.memory_space<vmem>>, vector<2x64xf32>,
    %127 = vector.broadcast %79 : vector<2x1xf32> to vector<2x32xf32>
    %128 = arith.mulf %127, %120 : vector<2x32xf32>
    %129 = vector.broadcast %81 : vector<2x1xf32> to vector<2x32xf32>
    %130 = arith.mulf %129, %82 : vector<2x32xf32>
    %131 = arith.addf %128, %130 : vector<2x32xf32>
    %c0_68 = arith.constant 0 : index
    %c0_69 = arith.constant 0 : index
    %132 = vector.load %arg9[%c0_68, %c0_69] : memref<2x32xf32, #tpu.memory_space<vmem>>, vector<2x32xf32>
    tpu.vector_store %arg9[%c0_68, %c0_69], %131 {strides = array<i32>} : memref<2x32xf32, #tpu.memory_space<vmem>>, vector<2x32xf32>,
    %133 = vector.broadcast %79 : vector<2x1xf32> to vector<2x32xf32>
    %134 = arith.mulf %133, %120 : vector<2x32xf32>
    %c0_70 = arith.constant 0 : index
    %c2_71 = arith.constant 2 : index
    %c0_72 = arith.constant 0 : index
    %135 = vector.load %arg7[%c0_70, %c2_71, %c0_72] : memref<1x16x32xf32, #tpu.memory_space<vmem>>, vector<1x2x32xf32>
    %136 = vector.shape_cast %135 : vector<1x2x32xf32> to vector<2x32xf32>
    %137 = vector.shape_cast %134 : vector<2x32xf32> to vector<1x2x32xf32>
    tpu.vector_store %arg7[%c0_70, %c2_71, %c0_72], %137 {strides = array<i32>} : memref<1x16x32xf32, #tpu.memory_space<vmem>>, vector<1x2x32xf32>,
    %c0_73 = arith.constant 0 : index
    %c4 = arith.constant 4 : index
    %c0_74 = arith.constant 0 : index
    %138 = vector.load %arg2[%c0_73, %c4, %c0_74] : memref<1x16x1xf32, #tpu.memory_space<vmem>>, vector<1x2x1xf32>
    %139 = vector.shape_cast %138 : vector<1x2x1xf32> to vector<2x1xf32>
    %cst_75 = arith.constant 1.000000e+00 : f32
    %140 = vector.broadcast %cst_75 : f32 to vector<2x1xf32>
    %141 = arith.subf %140, %139 : vector<2x1xf32>
    %c0_76 = arith.constant 0 : index
    %c0_77 = arith.constant 0 : index
    %142 = vector.load %arg9[%c0_76, %c0_77] : memref<2x32xf32, #tpu.memory_space<vmem>>, vector<2x32xf32>
    %c0_78 = arith.constant 0 : index
    %c0_79 = arith.constant 0 : index
    %143 = vector.load %arg10[%c0_78, %c0_79] : memref<2x64xf32, #tpu.memory_space<vmem>>, vector<2x64xf32>
    %c4_80 = arith.constant 4 : index
    %c0_81 = arith.constant 0 : index
    %144 = vector.load %arg8[%c4_80, %c0_81] : memref<16x256xf32, #tpu.memory_space<vmem>>, vector<2x256xf32>
    %cst_82 = arith.constant dense<0.000000e+00> : vector<2x256xf32>
    %145 = tpu.matmul %142, %15, %cst_82 {dimension_numbers = #tpu.dot_dimension_numbers<[1], [0], [0], [1], [0, 0, 1, 1], [], []>} : vector<2x32xf32>, vector<32x256xf32>, vector<2x256xf32> -> vector<2x256xf32>
    %146 = arith.addf %144, %145 : vector<2x256xf32>
    %147 = vector.extract_strided_slice %146 {offsets = [0, 0], sizes = [2, 64], strides = [1, 1]} : vector<2x256xf32> to vector<2x64xf32>
    %148 = arith.negf %147 : vector<2x64xf32>
    %149 = math.exp %148 : vector<2x64xf32>
    %cst_83 = arith.constant 1.000000e+00 : f32
    %150 = vector.broadcast %cst_83 : f32 to vector<2x64xf32>
    %151 = arith.addf %150, %149 : vector<2x64xf32>
    %152 = arith.divf %150, %151 : vector<2x64xf32>
    %153 = vector.extract_strided_slice %146 {offsets = [0, 64], sizes = [2, 64], strides = [1, 1]} : vector<2x256xf32> to vector<2x64xf32>
    %154 = arith.negf %153 : vector<2x64xf32>
    %155 = math.exp %154 : vector<2x64xf32>
    %cst_84 = arith.constant 1.000000e+00 : f32
    %156 = vector.broadcast %cst_84 : f32 to vector<2x64xf32>
    %157 = arith.addf %156, %155 : vector<2x64xf32>
    %158 = arith.divf %156, %157 : vector<2x64xf32>
    %159 = vector.extract_strided_slice %146 {offsets = [0, 128], sizes = [2, 64], strides = [1, 1]} : vector<2x256xf32> to vector<2x64xf32>
    %160 = math.tanh %159 : vector<2x64xf32>
    %161 = vector.extract_strided_slice %146 {offsets = [0, 192], sizes = [2, 64], strides = [1, 1]} : vector<2x256xf32> to vector<2x64xf32>
    %162 = arith.negf %161 : vector<2x64xf32>
    %163 = math.exp %162 : vector<2x64xf32>
    %cst_85 = arith.constant 1.000000e+00 : f32
    %164 = vector.broadcast %cst_85 : f32 to vector<2x64xf32>
    %165 = arith.addf %164, %163 : vector<2x64xf32>
    %166 = arith.divf %164, %165 : vector<2x64xf32>
    %167 = arith.mulf %152, %160 : vector<2x64xf32>
    %168 = arith.mulf %158, %143 : vector<2x64xf32>
    %169 = arith.addf %167, %168 : vector<2x64xf32>
    %cst_86 = arith.constant -3.000000e+00 : f32
    %cst_87 = arith.constant 3.000000e+00 : f32
    %170 = vector.broadcast %cst_86 : f32 to vector<2x64xf32>
    %171 = arith.maximumf %170, %169 : vector<2x64xf32>
    %172 = vector.broadcast %cst_87 : f32 to vector<2x64xf32>
    %173 = arith.minimumf %172, %171 : vector<2x64xf32>
    %174 = math.tanh %173 : vector<2x64xf32>
    %175 = arith.mulf %166, %174 : vector<2x64xf32>
    %cst_88 = arith.constant dense<0.000000e+00> : vector<2x32xf32>
    %176 = tpu.matmul %175, %17, %cst_88 {dimension_numbers = #tpu.dot_dimension_numbers<[1], [0], [0], [1], [0, 0, 1, 1], [], []>} : vector<2x64xf32>, vector<64x32xf32>, vector<2x32xf32> -> vector<2x32xf32>
    %cst_89 = arith.constant -3.000000e+00 : f32
    %cst_90 = arith.constant 3.000000e+00 : f32
    %177 = vector.broadcast %cst_89 : f32 to vector<2x32xf32>
    %178 = arith.maximumf %177, %176 : vector<2x32xf32>
    %179 = vector.broadcast %cst_90 : f32 to vector<2x32xf32>
    %180 = arith.minimumf %179, %178 : vector<2x32xf32>
    %181 = vector.broadcast %139 : vector<2x1xf32> to vector<2x64xf32>
    %182 = arith.mulf %181, %173 : vector<2x64xf32>
    %183 = vector.broadcast %141 : vector<2x1xf32> to vector<2x64xf32>
    %184 = arith.mulf %183, %143 : vector<2x64xf32>
    %185 = arith.addf %182, %184 : vector<2x64xf32>
    %c0_91 = arith.constant 0 : index
    %c0_92 = arith.constant 0 : index
    %186 = vector.load %arg10[%c0_91, %c0_92] : memref<2x64xf32, #tpu.memory_space<vmem>>, vector<2x64xf32>
    tpu.vector_store %arg10[%c0_91, %c0_92], %185 {strides = array<i32>} : memref<2x64xf32, #tpu.memory_space<vmem>>, vector<2x64xf32>,
    %187 = vector.broadcast %139 : vector<2x1xf32> to vector<2x32xf32>
    %188 = arith.mulf %187, %180 : vector<2x32xf32>
    %189 = vector.broadcast %141 : vector<2x1xf32> to vector<2x32xf32>
    %190 = arith.mulf %189, %142 : vector<2x32xf32>
    %191 = arith.addf %188, %190 : vector<2x32xf32>
    %c0_93 = arith.constant 0 : index
    %c0_94 = arith.constant 0 : index
    %192 = vector.load %arg9[%c0_93, %c0_94] : memref<2x32xf32, #tpu.memory_space<vmem>>, vector<2x32xf32>
    tpu.vector_store %arg9[%c0_93, %c0_94], %191 {strides = array<i32>} : memref<2x32xf32, #tpu.memory_space<vmem>>, vector<2x32xf32>,
    %193 = vector.broadcast %139 : vector<2x1xf32> to vector<2x32xf32>
    %194 = arith.mulf %193, %180 : vector<2x32xf32>
    %c0_95 = arith.constant 0 : index
    %c4_96 = arith.constant 4 : index
    %c0_97 = arith.constant 0 : index
    %195 = vector.load %arg7[%c0_95, %c4_96, %c0_97] : memref<1x16x32xf32, #tpu.memory_space<vmem>>, vector<1x2x32xf32>
    %196 = vector.shape_cast %195 : vector<1x2x32xf32> to vector<2x32xf32>
    %197 = vector.shape_cast %194 : vector<2x32xf32> to vector<1x2x32xf32>
    tpu.vector_store %arg7[%c0_95, %c4_96, %c0_97], %197 {strides = array<i32>} : memref<1x16x32xf32, #tpu.memory_space<vmem>>, vector<1x2x32xf32>,
    %c0_98 = arith.constant 0 : index
    %c6 = arith.constant 6 : index
    %c0_99 = arith.constant 0 : index
    %198 = vector.load %arg2[%c0_98, %c6, %c0_99] : memref<1x16x1xf32, #tpu.memory_space<vmem>>, vector<1x2x1xf32>
    %199 = vector.shape_cast %198 : vector<1x2x1xf32> to vector<2x1xf32>
    %cst_100 = arith.constant 1.000000e+00 : f32
    %200 = vector.broadcast %cst_100 : f32 to vector<2x1xf32>
    %201 = arith.subf %200, %199 : vector<2x1xf32>
    %c0_101 = arith.constant 0 : index
    %c0_102 = arith.constant 0 : index
    %202 = vector.load %arg9[%c0_101, %c0_102] : memref<2x32xf32, #tpu.memory_space<vmem>>, vector<2x32xf32>
    %c0_103 = arith.constant 0 : index
    %c0_104 = arith.constant 0 : index
    %203 = vector.load %arg10[%c0_103, %c0_104] : memref<2x64xf32, #tpu.memory_space<vmem>>, vector<2x64xf32>
    %c6_105 = arith.constant 6 : index
    %c0_106 = arith.constant 0 : index
    %204 = vector.load %arg8[%c6_105, %c0_106] : memref<16x256xf32, #tpu.memory_space<vmem>>, vector<2x256xf32>
    %cst_107 = arith.constant dense<0.000000e+00> : vector<2x256xf32>
    %205 = tpu.matmul %202, %15, %cst_107 {dimension_numbers = #tpu.dot_dimension_numbers<[1], [0], [0], [1], [0, 0, 1, 1], [], []>} : vector<2x32xf32>, vector<32x256xf32>, vector<2x256xf32> -> vector<2x256xf32>
    %206 = arith.addf %204, %205 : vector<2x256xf32>
    %207 = vector.extract_strided_slice %206 {offsets = [0, 0], sizes = [2, 64], strides = [1, 1]} : vector<2x256xf32> to vector<2x64xf32>
    %208 = arith.negf %207 : vector<2x64xf32>
    %209 = math.exp %208 : vector<2x64xf32>
    %cst_108 = arith.constant 1.000000e+00 : f32
    %210 = vector.broadcast %cst_108 : f32 to vector<2x64xf32>
    %211 = arith.addf %210, %209 : vector<2x64xf32>
    %212 = arith.divf %210, %211 : vector<2x64xf32>
    %213 = vector.extract_strided_slice %206 {offsets = [0, 64], sizes = [2, 64], strides = [1, 1]} : vector<2x256xf32> to vector<2x64xf32>
    %214 = arith.negf %213 : vector<2x64xf32>
    %215 = math.exp %214 : vector<2x64xf32>
    %cst_109 = arith.constant 1.000000e+00 : f32
    %216 = vector.broadcast %cst_109 : f32 to vector<2x64xf32>
    %217 = arith.addf %216, %215 : vector<2x64xf32>
    %218 = arith.divf %216, %217 : vector<2x64xf32>
    %219 = vector.extract_strided_slice %206 {offsets = [0, 128], sizes = [2, 64], strides = [1, 1]} : vector<2x256xf32> to vector<2x64xf32>
    %220 = math.tanh %219 : vector<2x64xf32>
    %221 = vector.extract_strided_slice %206 {offsets = [0, 192], sizes = [2, 64], strides = [1, 1]} : vector<2x256xf32> to vector<2x64xf32>
    %222 = arith.negf %221 : vector<2x64xf32>
    %223 = math.exp %222 : vector<2x64xf32>
    %cst_110 = arith.constant 1.000000e+00 : f32
    %224 = vector.broadcast %cst_110 : f32 to vector<2x64xf32>
    %225 = arith.addf %224, %223 : vector<2x64xf32>
    %226 = arith.divf %224, %225 : vector<2x64xf32>
    %227 = arith.mulf %212, %220 : vector<2x64xf32>
    %228 = arith.mulf %218, %203 : vector<2x64xf32>
    %229 = arith.addf %227, %228 : vector<2x64xf32>
    %cst_111 = arith.constant -3.000000e+00 : f32
    %cst_112 = arith.constant 3.000000e+00 : f32
    %230 = vector.broadcast %cst_111 : f32 to vector<2x64xf32>
    %231 = arith.maximumf %230, %229 : vector<2x64xf32>
    %232 = vector.broadcast %cst_112 : f32 to vector<2x64xf32>
    %233 = arith.minimumf %232, %231 : vector<2x64xf32>
    %234 = math.tanh %233 : vector<2x64xf32>
    %235 = arith.mulf %226, %234 : vector<2x64xf32>
    %cst_113 = arith.constant dense<0.000000e+00> : vector<2x32xf32>
    %236 = tpu.matmul %235, %17, %cst_113 {dimension_numbers = #tpu.dot_dimension_numbers<[1], [0], [0], [1], [0, 0, 1, 1], [], []>} : vector<2x64xf32>, vector<64x32xf32>, vector<2x32xf32> -> vector<2x32xf32>
    %cst_114 = arith.constant -3.000000e+00 : f32
    %cst_115 = arith.constant 3.000000e+00 : f32
    %237 = vector.broadcast %cst_114 : f32 to vector<2x32xf32>
    %238 = arith.maximumf %237, %236 : vector<2x32xf32>
    %239 = vector.broadcast %cst_115 : f32 to vector<2x32xf32>
    %240 = arith.minimumf %239, %238 : vector<2x32xf32>
    %241 = vector.broadcast %199 : vector<2x1xf32> to vector<2x64xf32>
    %242 = arith.mulf %241, %233 : vector<2x64xf32>
    %243 = vector.broadcast %201 : vector<2x1xf32> to vector<2x64xf32>
    %244 = arith.mulf %243, %203 : vector<2x64xf32>
    %245 = arith.addf %242, %244 : vector<2x64xf32>
    %c0_116 = arith.constant 0 : index
    %c0_117 = arith.constant 0 : index
    %246 = vector.load %arg10[%c0_116, %c0_117] : memref<2x64xf32, #tpu.memory_space<vmem>>, vector<2x64xf32>
    tpu.vector_store %arg10[%c0_116, %c0_117], %245 {strides = array<i32>} : memref<2x64xf32, #tpu.memory_space<vmem>>, vector<2x64xf32>,
    %247 = vector.broadcast %199 : vector<2x1xf32> to vector<2x32xf32>
    %248 = arith.mulf %247, %240 : vector<2x32xf32>
    %249 = vector.broadcast %201 : vector<2x1xf32> to vector<2x32xf32>
    %250 = arith.mulf %249, %202 : vector<2x32xf32>
    %251 = arith.addf %248, %250 : vector<2x32xf32>
    %c0_118 = arith.constant 0 : index
    %c0_119 = arith.constant 0 : index
    %252 = vector.load %arg9[%c0_118, %c0_119] : memref<2x32xf32, #tpu.memory_space<vmem>>, vector<2x32xf32>
    tpu.vector_store %arg9[%c0_118, %c0_119], %251 {strides = array<i32>} : memref<2x32xf32, #tpu.memory_space<vmem>>, vector<2x32xf32>,
    %253 = vector.broadcast %199 : vector<2x1xf32> to vector<2x32xf32>
    %254 = arith.mulf %253, %240 : vector<2x32xf32>
    %c0_120 = arith.constant 0 : index
    %c6_121 = arith.constant 6 : index
    %c0_122 = arith.constant 0 : index
    %255 = vector.load %arg7[%c0_120, %c6_121, %c0_122] : memref<1x16x32xf32, #tpu.memory_space<vmem>>, vector<1x2x32xf32>
    %256 = vector.shape_cast %255 : vector<1x2x32xf32> to vector<2x32xf32>
    %257 = vector.shape_cast %254 : vector<2x32xf32> to vector<1x2x32xf32>
    tpu.vector_store %arg7[%c0_120, %c6_121, %c0_122], %257 {strides = array<i32>} : memref<1x16x32xf32, #tpu.memory_space<vmem>>, vector<1x2x32xf32>,
    %c0_123 = arith.constant 0 : index
    %c8 = arith.constant 8 : index
    %c0_124 = arith.constant 0 : index
    %258 = vector.load %arg2[%c0_123, %c8, %c0_124] : memref<1x16x1xf32, #tpu.memory_space<vmem>>, vector<1x2x1xf32>
    %259 = vector.shape_cast %258 : vector<1x2x1xf32> to vector<2x1xf32>
    %cst_125 = arith.constant 1.000000e+00 : f32
    %260 = vector.broadcast %cst_125 : f32 to vector<2x1xf32>
    %261 = arith.subf %260, %259 : vector<2x1xf32>
    %c0_126 = arith.constant 0 : index
    %c0_127 = arith.constant 0 : index
    %262 = vector.load %arg9[%c0_126, %c0_127] : memref<2x32xf32, #tpu.memory_space<vmem>>, vector<2x32xf32>
    %c0_128 = arith.constant 0 : index
    %c0_129 = arith.constant 0 : index
    %263 = vector.load %arg10[%c0_128, %c0_129] : memref<2x64xf32, #tpu.memory_space<vmem>>, vector<2x64xf32>
    %c8_130 = arith.constant 8 : index
    %c0_131 = arith.constant 0 : index
    %264 = vector.load %arg8[%c8_130, %c0_131] : memref<16x256xf32, #tpu.memory_space<vmem>>, vector<2x256xf32>
    %cst_132 = arith.constant dense<0.000000e+00> : vector<2x256xf32>
    %265 = tpu.matmul %262, %15, %cst_132 {dimension_numbers = #tpu.dot_dimension_numbers<[1], [0], [0], [1], [0, 0, 1, 1], [], []>} : vector<2x32xf32>, vector<32x256xf32>, vector<2x256xf32> -> vector<2x256xf32>
    %266 = arith.addf %264, %265 : vector<2x256xf32>
    %267 = vector.extract_strided_slice %266 {offsets = [0, 0], sizes = [2, 64], strides = [1, 1]} : vector<2x256xf32> to vector<2x64xf32>
    %268 = arith.negf %267 : vector<2x64xf32>
    %269 = math.exp %268 : vector<2x64xf32>
    %cst_133 = arith.constant 1.000000e+00 : f32
    %270 = vector.broadcast %cst_133 : f32 to vector<2x64xf32>
    %271 = arith.addf %270, %269 : vector<2x64xf32>
    %272 = arith.divf %270, %271 : vector<2x64xf32>
    %273 = vector.extract_strided_slice %266 {offsets = [0, 64], sizes = [2, 64], strides = [1, 1]} : vector<2x256xf32> to vector<2x64xf32>
    %274 = arith.negf %273 : vector<2x64xf32>
    %275 = math.exp %274 : vector<2x64xf32>
    %cst_134 = arith.constant 1.000000e+00 : f32
    %276 = vector.broadcast %cst_134 : f32 to vector<2x64xf32>
    %277 = arith.addf %276, %275 : vector<2x64xf32>
    %278 = arith.divf %276, %277 : vector<2x64xf32>
    %279 = vector.extract_strided_slice %266 {offsets = [0, 128], sizes = [2, 64], strides = [1, 1]} : vector<2x256xf32> to vector<2x64xf32>
    %280 = math.tanh %279 : vector<2x64xf32>
    %281 = vector.extract_strided_slice %266 {offsets = [0, 192], sizes = [2, 64], strides = [1, 1]} : vector<2x256xf32> to vector<2x64xf32>
    %282 = arith.negf %281 : vector<2x64xf32>
    %283 = math.exp %282 : vector<2x64xf32>
    %cst_135 = arith.constant 1.000000e+00 : f32
    %284 = vector.broadcast %cst_135 : f32 to vector<2x64xf32>
    %285 = arith.addf %284, %283 : vector<2x64xf32>
    %286 = arith.divf %284, %285 : vector<2x64xf32>
    %287 = arith.mulf %272, %280 : vector<2x64xf32>
    %288 = arith.mulf %278, %263 : vector<2x64xf32>
    %289 = arith.addf %287, %288 : vector<2x64xf32>
    %cst_136 = arith.constant -3.000000e+00 : f32
    %cst_137 = arith.constant 3.000000e+00 : f32
    %290 = vector.broadcast %cst_136 : f32 to vector<2x64xf32>
    %291 = arith.maximumf %290, %289 : vector<2x64xf32>
    %292 = vector.broadcast %cst_137 : f32 to vector<2x64xf32>
    %293 = arith.minimumf %292, %291 : vector<2x64xf32>
    %294 = math.tanh %293 : vector<2x64xf32>
    %295 = arith.mulf %286, %294 : vector<2x64xf32>
    %cst_138 = arith.constant dense<0.000000e+00> : vector<2x32xf32>
    %296 = tpu.matmul %295, %17, %cst_138 {dimension_numbers = #tpu.dot_dimension_numbers<[1], [0], [0], [1], [0, 0, 1, 1], [], []>} : vector<2x64xf32>, vector<64x32xf32>, vector<2x32xf32> -> vector<2x32xf32>
    %cst_139 = arith.constant -3.000000e+00 : f32
    %cst_140 = arith.constant 3.000000e+00 : f32
    %297 = vector.broadcast %cst_139 : f32 to vector<2x32xf32>
    %298 = arith.maximumf %297, %296 : vector<2x32xf32>
    %299 = vector.broadcast %cst_140 : f32 to vector<2x32xf32>
    %300 = arith.minimumf %299, %298 : vector<2x32xf32>
    %301 = vector.broadcast %259 : vector<2x1xf32> to vector<2x64xf32>
    %302 = arith.mulf %301, %293 : vector<2x64xf32>
    %303 = vector.broadcast %261 : vector<2x1xf32> to vector<2x64xf32>
    %304 = arith.mulf %303, %263 : vector<2x64xf32>
    %305 = arith.addf %302, %304 : vector<2x64xf32>
    %c0_141 = arith.constant 0 : index
    %c0_142 = arith.constant 0 : index
    %306 = vector.load %arg10[%c0_141, %c0_142] : memref<2x64xf32, #tpu.memory_space<vmem>>, vector<2x64xf32>
    tpu.vector_store %arg10[%c0_141, %c0_142], %305 {strides = array<i32>} : memref<2x64xf32, #tpu.memory_space<vmem>>, vector<2x64xf32>,
    %307 = vector.broadcast %259 : vector<2x1xf32> to vector<2x32xf32>
    %308 = arith.mulf %307, %300 : vector<2x32xf32>
    %309 = vector.broadcast %261 : vector<2x1xf32> to vector<2x32xf32>
    %310 = arith.mulf %309, %262 : vector<2x32xf32>
    %311 = arith.addf %308, %310 : vector<2x32xf32>
    %c0_143 = arith.constant 0 : index
    %c0_144 = arith.constant 0 : index
    %312 = vector.load %arg9[%c0_143, %c0_144] : memref<2x32xf32, #tpu.memory_space<vmem>>, vector<2x32xf32>
    tpu.vector_store %arg9[%c0_143, %c0_144], %311 {strides = array<i32>} : memref<2x32xf32, #tpu.memory_space<vmem>>, vector<2x32xf32>,
    %313 = vector.broadcast %259 : vector<2x1xf32> to vector<2x32xf32>
    %314 = arith.mulf %313, %300 : vector<2x32xf32>
    %c0_145 = arith.constant 0 : index
    %c8_146 = arith.constant 8 : index
    %c0_147 = arith.constant 0 : index
    %315 = vector.load %arg7[%c0_145, %c8_146, %c0_147] : memref<1x16x32xf32, #tpu.memory_space<vmem>>, vector<1x2x32xf32>
    %316 = vector.shape_cast %315 : vector<1x2x32xf32> to vector<2x32xf32>
    %317 = vector.shape_cast %314 : vector<2x32xf32> to vector<1x2x32xf32>
    tpu.vector_store %arg7[%c0_145, %c8_146, %c0_147], %317 {strides = array<i32>} : memref<1x16x32xf32, #tpu.memory_space<vmem>>, vector<1x2x32xf32>,
    %c0_148 = arith.constant 0 : index
    %c10 = arith.constant 10 : index
    %c0_149 = arith.constant 0 : index
    %318 = vector.load %arg2[%c0_148, %c10, %c0_149] : memref<1x16x1xf32, #tpu.memory_space<vmem>>, vector<1x2x1xf32>
    %319 = vector.shape_cast %318 : vector<1x2x1xf32> to vector<2x1xf32>
    %cst_150 = arith.constant 1.000000e+00 : f32
    %320 = vector.broadcast %cst_150 : f32 to vector<2x1xf32>
    %321 = arith.subf %320, %319 : vector<2x1xf32>
    %c0_151 = arith.constant 0 : index
    %c0_152 = arith.constant 0 : index
    %322 = vector.load %arg9[%c0_151, %c0_152] : memref<2x32xf32, #tpu.memory_space<vmem>>, vector<2x32xf32>
    %c0_153 = arith.constant 0 : index
    %c0_154 = arith.constant 0 : index
    %323 = vector.load %arg10[%c0_153, %c0_154] : memref<2x64xf32, #tpu.memory_space<vmem>>, vector<2x64xf32>
    %c10_155 = arith.constant 10 : index
    %c0_156 = arith.constant 0 : index
    %324 = vector.load %arg8[%c10_155, %c0_156] : memref<16x256xf32, #tpu.memory_space<vmem>>, vector<2x256xf32>
    %cst_157 = arith.constant dense<0.000000e+00> : vector<2x256xf32>
    %325 = tpu.matmul %322, %15, %cst_157 {dimension_numbers = #tpu.dot_dimension_numbers<[1], [0], [0], [1], [0, 0, 1, 1], [], []>} : vector<2x32xf32>, vector<32x256xf32>, vector<2x256xf32> -> vector<2x256xf32>
    %326 = arith.addf %324, %325 : vector<2x256xf32>
    %327 = vector.extract_strided_slice %326 {offsets = [0, 0], sizes = [2, 64], strides = [1, 1]} : vector<2x256xf32> to vector<2x64xf32>
    %328 = arith.negf %327 : vector<2x64xf32>
    %329 = math.exp %328 : vector<2x64xf32>
    %cst_158 = arith.constant 1.000000e+00 : f32
    %330 = vector.broadcast %cst_158 : f32 to vector<2x64xf32>
    %331 = arith.addf %330, %329 : vector<2x64xf32>
    %332 = arith.divf %330, %331 : vector<2x64xf32>
    %333 = vector.extract_strided_slice %326 {offsets = [0, 64], sizes = [2, 64], strides = [1, 1]} : vector<2x256xf32> to vector<2x64xf32>
    %334 = arith.negf %333 : vector<2x64xf32>
    %335 = math.exp %334 : vector<2x64xf32>
    %cst_159 = arith.constant 1.000000e+00 : f32
    %336 = vector.broadcast %cst_159 : f32 to vector<2x64xf32>
    %337 = arith.addf %336, %335 : vector<2x64xf32>
    %338 = arith.divf %336, %337 : vector<2x64xf32>
    %339 = vector.extract_strided_slice %326 {offsets = [0, 128], sizes = [2, 64], strides = [1, 1]} : vector<2x256xf32> to vector<2x64xf32>
    %340 = math.tanh %339 : vector<2x64xf32>
    %341 = vector.extract_strided_slice %326 {offsets = [0, 192], sizes = [2, 64], strides = [1, 1]} : vector<2x256xf32> to vector<2x64xf32>
    %342 = arith.negf %341 : vector<2x64xf32>
    %343 = math.exp %342 : vector<2x64xf32>
    %cst_160 = arith.constant 1.000000e+00 : f32
    %344 = vector.broadcast %cst_160 : f32 to vector<2x64xf32>
    %345 = arith.addf %344, %343 : vector<2x64xf32>
    %346 = arith.divf %344, %345 : vector<2x64xf32>
    %347 = arith.mulf %332, %340 : vector<2x64xf32>
    %348 = arith.mulf %338, %323 : vector<2x64xf32>
    %349 = arith.addf %347, %348 : vector<2x64xf32>
    %cst_161 = arith.constant -3.000000e+00 : f32
    %cst_162 = arith.constant 3.000000e+00 : f32
    %350 = vector.broadcast %cst_161 : f32 to vector<2x64xf32>
    %351 = arith.maximumf %350, %349 : vector<2x64xf32>
    %352 = vector.broadcast %cst_162 : f32 to vector<2x64xf32>
    %353 = arith.minimumf %352, %351 : vector<2x64xf32>
    %354 = math.tanh %353 : vector<2x64xf32>
    %355 = arith.mulf %346, %354 : vector<2x64xf32>
    %cst_163 = arith.constant dense<0.000000e+00> : vector<2x32xf32>
    %356 = tpu.matmul %355, %17, %cst_163 {dimension_numbers = #tpu.dot_dimension_numbers<[1], [0], [0], [1], [0, 0, 1, 1], [], []>} : vector<2x64xf32>, vector<64x32xf32>, vector<2x32xf32> -> vector<2x32xf32>
    %cst_164 = arith.constant -3.000000e+00 : f32
    %cst_165 = arith.constant 3.000000e+00 : f32
    %357 = vector.broadcast %cst_164 : f32 to vector<2x32xf32>
    %358 = arith.maximumf %357, %356 : vector<2x32xf32>
    %359 = vector.broadcast %cst_165 : f32 to vector<2x32xf32>
    %360 = arith.minimumf %359, %358 : vector<2x32xf32>
    %361 = vector.broadcast %319 : vector<2x1xf32> to vector<2x64xf32>
    %362 = arith.mulf %361, %353 : vector<2x64xf32>
    %363 = vector.broadcast %321 : vector<2x1xf32> to vector<2x64xf32>
    %364 = arith.mulf %363, %323 : vector<2x64xf32>
    %365 = arith.addf %362, %364 : vector<2x64xf32>
    %c0_166 = arith.constant 0 : index
    %c0_167 = arith.constant 0 : index
    %366 = vector.load %arg10[%c0_166, %c0_167] : memref<2x64xf32, #tpu.memory_space<vmem>>, vector<2x64xf32>
    tpu.vector_store %arg10[%c0_166, %c0_167], %365 {strides = array<i32>} : memref<2x64xf32, #tpu.memory_space<vmem>>, vector<2x64xf32>,
    %367 = vector.broadcast %319 : vector<2x1xf32> to vector<2x32xf32>
    %368 = arith.mulf %367, %360 : vector<2x32xf32>
    %369 = vector.broadcast %321 : vector<2x1xf32> to vector<2x32xf32>
    %370 = arith.mulf %369, %322 : vector<2x32xf32>
    %371 = arith.addf %368, %370 : vector<2x32xf32>
    %c0_168 = arith.constant 0 : index
    %c0_169 = arith.constant 0 : index
    %372 = vector.load %arg9[%c0_168, %c0_169] : memref<2x32xf32, #tpu.memory_space<vmem>>, vector<2x32xf32>
    tpu.vector_store %arg9[%c0_168, %c0_169], %371 {strides = array<i32>} : memref<2x32xf32, #tpu.memory_space<vmem>>, vector<2x32xf32>,
    %373 = vector.broadcast %319 : vector<2x1xf32> to vector<2x32xf32>
    %374 = arith.mulf %373, %360 : vector<2x32xf32>
    %c0_170 = arith.constant 0 : index
    %c10_171 = arith.constant 10 : index
    %c0_172 = arith.constant 0 : index
    %375 = vector.load %arg7[%c0_170, %c10_171, %c0_172] : memref<1x16x32xf32, #tpu.memory_space<vmem>>, vector<1x2x32xf32>
    %376 = vector.shape_cast %375 : vector<1x2x32xf32> to vector<2x32xf32>
    %377 = vector.shape_cast %374 : vector<2x32xf32> to vector<1x2x32xf32>
    tpu.vector_store %arg7[%c0_170, %c10_171, %c0_172], %377 {strides = array<i32>} : memref<1x16x32xf32, #tpu.memory_space<vmem>>, vector<1x2x32xf32>,
    %c0_173 = arith.constant 0 : index
    %c12 = arith.constant 12 : index
    %c0_174 = arith.constant 0 : index
    %378 = vector.load %arg2[%c0_173, %c12, %c0_174] : memref<1x16x1xf32, #tpu.memory_space<vmem>>, vector<1x2x1xf32>
    %379 = vector.shape_cast %378 : vector<1x2x1xf32> to vector<2x1xf32>
    %cst_175 = arith.constant 1.000000e+00 : f32
    %380 = vector.broadcast %cst_175 : f32 to vector<2x1xf32>
    %381 = arith.subf %380, %379 : vector<2x1xf32>
    %c0_176 = arith.constant 0 : index
    %c0_177 = arith.constant 0 : index
    %382 = vector.load %arg9[%c0_176, %c0_177] : memref<2x32xf32, #tpu.memory_space<vmem>>, vector<2x32xf32>
    %c0_178 = arith.constant 0 : index
    %c0_179 = arith.constant 0 : index
    %383 = vector.load %arg10[%c0_178, %c0_179] : memref<2x64xf32, #tpu.memory_space<vmem>>, vector<2x64xf32>
    %c12_180 = arith.constant 12 : index
    %c0_181 = arith.constant 0 : index
    %384 = vector.load %arg8[%c12_180, %c0_181] : memref<16x256xf32, #tpu.memory_space<vmem>>, vector<2x256xf32>
    %cst_182 = arith.constant dense<0.000000e+00> : vector<2x256xf32>
    %385 = tpu.matmul %382, %15, %cst_182 {dimension_numbers = #tpu.dot_dimension_numbers<[1], [0], [0], [1], [0, 0, 1, 1], [], []>} : vector<2x32xf32>, vector<32x256xf32>, vector<2x256xf32> -> vector<2x256xf32>
    %386 = arith.addf %384, %385 : vector<2x256xf32>
    %387 = vector.extract_strided_slice %386 {offsets = [0, 0], sizes = [2, 64], strides = [1, 1]} : vector<2x256xf32> to vector<2x64xf32>
    %388 = arith.negf %387 : vector<2x64xf32>
    %389 = math.exp %388 : vector<2x64xf32>
    %cst_183 = arith.constant 1.000000e+00 : f32
    %390 = vector.broadcast %cst_183 : f32 to vector<2x64xf32>
    %391 = arith.addf %390, %389 : vector<2x64xf32>
    %392 = arith.divf %390, %391 : vector<2x64xf32>
    %393 = vector.extract_strided_slice %386 {offsets = [0, 64], sizes = [2, 64], strides = [1, 1]} : vector<2x256xf32> to vector<2x64xf32>
    %394 = arith.negf %393 : vector<2x64xf32>
    %395 = math.exp %394 : vector<2x64xf32>
    %cst_184 = arith.constant 1.000000e+00 : f32
    %396 = vector.broadcast %cst_184 : f32 to vector<2x64xf32>
    %397 = arith.addf %396, %395 : vector<2x64xf32>
    %398 = arith.divf %396, %397 : vector<2x64xf32>
    %399 = vector.extract_strided_slice %386 {offsets = [0, 128], sizes = [2, 64], strides = [1, 1]} : vector<2x256xf32> to vector<2x64xf32>
    %400 = math.tanh %399 : vector<2x64xf32>
    %401 = vector.extract_strided_slice %386 {offsets = [0, 192], sizes = [2, 64], strides = [1, 1]} : vector<2x256xf32> to vector<2x64xf32>
    %402 = arith.negf %401 : vector<2x64xf32>
    %403 = math.exp %402 : vector<2x64xf32>
    %cst_185 = arith.constant 1.000000e+00 : f32
    %404 = vector.broadcast %cst_185 : f32 to vector<2x64xf32>
    %405 = arith.addf %404, %403 : vector<2x64xf32>
    %406 = arith.divf %404, %405 : vector<2x64xf32>
    %407 = arith.mulf %392, %400 : vector<2x64xf32>
    %408 = arith.mulf %398, %383 : vector<2x64xf32>
    %409 = arith.addf %407, %408 : vector<2x64xf32>
    %cst_186 = arith.constant -3.000000e+00 : f32
    %cst_187 = arith.constant 3.000000e+00 : f32
    %410 = vector.broadcast %cst_186 : f32 to vector<2x64xf32>
    %411 = arith.maximumf %410, %409 : vector<2x64xf32>
    %412 = vector.broadcast %cst_187 : f32 to vector<2x64xf32>
    %413 = arith.minimumf %412, %411 : vector<2x64xf32>
    %414 = math.tanh %413 : vector<2x64xf32>
    %415 = arith.mulf %406, %414 : vector<2x64xf32>
    %cst_188 = arith.constant dense<0.000000e+00> : vector<2x32xf32>
    %416 = tpu.matmul %415, %17, %cst_188 {dimension_numbers = #tpu.dot_dimension_numbers<[1], [0], [0], [1], [0, 0, 1, 1], [], []>} : vector<2x64xf32>, vector<64x32xf32>, vector<2x32xf32> -> vector<2x32xf32>
    %cst_189 = arith.constant -3.000000e+00 : f32
    %cst_190 = arith.constant 3.000000e+00 : f32
    %417 = vector.broadcast %cst_189 : f32 to vector<2x32xf32>
    %418 = arith.maximumf %417, %416 : vector<2x32xf32>
    %419 = vector.broadcast %cst_190 : f32 to vector<2x32xf32>
    %420 = arith.minimumf %419, %418 : vector<2x32xf32>
    %421 = vector.broadcast %379 : vector<2x1xf32> to vector<2x64xf32>
    %422 = arith.mulf %421, %413 : vector<2x64xf32>
    %423 = vector.broadcast %381 : vector<2x1xf32> to vector<2x64xf32>
    %424 = arith.mulf %423, %383 : vector<2x64xf32>
    %425 = arith.addf %422, %424 : vector<2x64xf32>
    %c0_191 = arith.constant 0 : index
    %c0_192 = arith.constant 0 : index
    %426 = vector.load %arg10[%c0_191, %c0_192] : memref<2x64xf32, #tpu.memory_space<vmem>>, vector<2x64xf32>
    tpu.vector_store %arg10[%c0_191, %c0_192], %425 {strides = array<i32>} : memref<2x64xf32, #tpu.memory_space<vmem>>, vector<2x64xf32>,
    %427 = vector.broadcast %379 : vector<2x1xf32> to vector<2x32xf32>
    %428 = arith.mulf %427, %420 : vector<2x32xf32>
    %429 = vector.broadcast %381 : vector<2x1xf32> to vector<2x32xf32>
    %430 = arith.mulf %429, %382 : vector<2x32xf32>
    %431 = arith.addf %428, %430 : vector<2x32xf32>
    %c0_193 = arith.constant 0 : index
    %c0_194 = arith.constant 0 : index
    %432 = vector.load %arg9[%c0_193, %c0_194] : memref<2x32xf32, #tpu.memory_space<vmem>>, vector<2x32xf32>
    tpu.vector_store %arg9[%c0_193, %c0_194], %431 {strides = array<i32>} : memref<2x32xf32, #tpu.memory_space<vmem>>, vector<2x32xf32>,
    %433 = vector.broadcast %379 : vector<2x1xf32> to vector<2x32xf32>
    %434 = arith.mulf %433, %420 : vector<2x32xf32>
    %c0_195 = arith.constant 0 : index
    %c12_196 = arith.constant 12 : index
    %c0_197 = arith.constant 0 : index
    %435 = vector.load %arg7[%c0_195, %c12_196, %c0_197] : memref<1x16x32xf32, #tpu.memory_space<vmem>>, vector<1x2x32xf32>
    %436 = vector.shape_cast %435 : vector<1x2x32xf32> to vector<2x32xf32>
    %437 = vector.shape_cast %434 : vector<2x32xf32> to vector<1x2x32xf32>
    tpu.vector_store %arg7[%c0_195, %c12_196, %c0_197], %437 {strides = array<i32>} : memref<1x16x32xf32, #tpu.memory_space<vmem>>, vector<1x2x32xf32>,
    %c0_198 = arith.constant 0 : index
    %c14 = arith.constant 14 : index
    %c0_199 = arith.constant 0 : index
    %438 = vector.load %arg2[%c0_198, %c14, %c0_199] : memref<1x16x1xf32, #tpu.memory_space<vmem>>, vector<1x2x1xf32>
    %439 = vector.shape_cast %438 : vector<1x2x1xf32> to vector<2x1xf32>
    %cst_200 = arith.constant 1.000000e+00 : f32
    %440 = vector.broadcast %cst_200 : f32 to vector<2x1xf32>
    %441 = arith.subf %440, %439 : vector<2x1xf32>
    %c0_201 = arith.constant 0 : index
    %c0_202 = arith.constant 0 : index
    %442 = vector.load %arg9[%c0_201, %c0_202] : memref<2x32xf32, #tpu.memory_space<vmem>>, vector<2x32xf32>
    %c0_203 = arith.constant 0 : index
    %c0_204 = arith.constant 0 : index
    %443 = vector.load %arg10[%c0_203, %c0_204] : memref<2x64xf32, #tpu.memory_space<vmem>>, vector<2x64xf32>
    %c14_205 = arith.constant 14 : index
    %c0_206 = arith.constant 0 : index
    %444 = vector.load %arg8[%c14_205, %c0_206] : memref<16x256xf32, #tpu.memory_space<vmem>>, vector<2x256xf32>
    %cst_207 = arith.constant dense<0.000000e+00> : vector<2x256xf32>
    %445 = tpu.matmul %442, %15, %cst_207 {dimension_numbers = #tpu.dot_dimension_numbers<[1], [0], [0], [1], [0, 0, 1, 1], [], []>} : vector<2x32xf32>, vector<32x256xf32>, vector<2x256xf32> -> vector<2x256xf32>
    %446 = arith.addf %444, %445 : vector<2x256xf32>
    %447 = vector.extract_strided_slice %446 {offsets = [0, 0], sizes = [2, 64], strides = [1, 1]} : vector<2x256xf32> to vector<2x64xf32>
    %448 = arith.negf %447 : vector<2x64xf32>
    %449 = math.exp %448 : vector<2x64xf32>
    %cst_208 = arith.constant 1.000000e+00 : f32
    %450 = vector.broadcast %cst_208 : f32 to vector<2x64xf32>
    %451 = arith.addf %450, %449 : vector<2x64xf32>
    %452 = arith.divf %450, %451 : vector<2x64xf32>
    %453 = vector.extract_strided_slice %446 {offsets = [0, 64], sizes = [2, 64], strides = [1, 1]} : vector<2x256xf32> to vector<2x64xf32>
    %454 = arith.negf %453 : vector<2x64xf32>
    %455 = math.exp %454 : vector<2x64xf32>
    %cst_209 = arith.constant 1.000000e+00 : f32
    %456 = vector.broadcast %cst_209 : f32 to vector<2x64xf32>
    %457 = arith.addf %456, %455 : vector<2x64xf32>
    %458 = arith.divf %456, %457 : vector<2x64xf32>
    %459 = vector.extract_strided_slice %446 {offsets = [0, 128], sizes = [2, 64], strides = [1, 1]} : vector<2x256xf32> to vector<2x64xf32>
    %460 = math.tanh %459 : vector<2x64xf32>
    %461 = vector.extract_strided_slice %446 {offsets = [0, 192], sizes = [2, 64], strides = [1, 1]} : vector<2x256xf32> to vector<2x64xf32>
    %462 = arith.negf %461 : vector<2x64xf32>
    %463 = math.exp %462 : vector<2x64xf32>
    %cst_210 = arith.constant 1.000000e+00 : f32
    %464 = vector.broadcast %cst_210 : f32 to vector<2x64xf32>
    %465 = arith.addf %464, %463 : vector<2x64xf32>
    %466 = arith.divf %464, %465 : vector<2x64xf32>
    %467 = arith.mulf %452, %460 : vector<2x64xf32>
    %468 = arith.mulf %458, %443 : vector<2x64xf32>
    %469 = arith.addf %467, %468 : vector<2x64xf32>
    %cst_211 = arith.constant -3.000000e+00 : f32
    %cst_212 = arith.constant 3.000000e+00 : f32
    %470 = vector.broadcast %cst_211 : f32 to vector<2x64xf32>
    %471 = arith.maximumf %470, %469 : vector<2x64xf32>
    %472 = vector.broadcast %cst_212 : f32 to vector<2x64xf32>
    %473 = arith.minimumf %472, %471 : vector<2x64xf32>
    %474 = math.tanh %473 : vector<2x64xf32>
    %475 = arith.mulf %466, %474 : vector<2x64xf32>
    %cst_213 = arith.constant dense<0.000000e+00> : vector<2x32xf32>
    %476 = tpu.matmul %475, %17, %cst_213 {dimension_numbers = #tpu.dot_dimension_numbers<[1], [0], [0], [1], [0, 0, 1, 1], [], []>} : vector<2x64xf32>, vector<64x32xf32>, vector<2x32xf32> -> vector<2x32xf32>
    %cst_214 = arith.constant -3.000000e+00 : f32
    %cst_215 = arith.constant 3.000000e+00 : f32
    %477 = vector.broadcast %cst_214 : f32 to vector<2x32xf32>
    %478 = arith.maximumf %477, %476 : vector<2x32xf32>
    %479 = vector.broadcast %cst_215 : f32 to vector<2x32xf32>
    %480 = arith.minimumf %479, %478 : vector<2x32xf32>
    %481 = vector.broadcast %439 : vector<2x1xf32> to vector<2x64xf32>
    %482 = arith.mulf %481, %473 : vector<2x64xf32>
    %483 = vector.broadcast %441 : vector<2x1xf32> to vector<2x64xf32>
    %484 = arith.mulf %483, %443 : vector<2x64xf32>
    %485 = arith.addf %482, %484 : vector<2x64xf32>
    %c0_216 = arith.constant 0 : index
    %c0_217 = arith.constant 0 : index
    %486 = vector.load %arg10[%c0_216, %c0_217] : memref<2x64xf32, #tpu.memory_space<vmem>>, vector<2x64xf32>
    tpu.vector_store %arg10[%c0_216, %c0_217], %485 {strides = array<i32>} : memref<2x64xf32, #tpu.memory_space<vmem>>, vector<2x64xf32>,
    %487 = vector.broadcast %439 : vector<2x1xf32> to vector<2x32xf32>
    %488 = arith.mulf %487, %480 : vector<2x32xf32>
    %489 = vector.broadcast %441 : vector<2x1xf32> to vector<2x32xf32>
    %490 = arith.mulf %489, %442 : vector<2x32xf32>
    %491 = arith.addf %488, %490 : vector<2x32xf32>
    %c0_218 = arith.constant 0 : index
    %c0_219 = arith.constant 0 : index
    %492 = vector.load %arg9[%c0_218, %c0_219] : memref<2x32xf32, #tpu.memory_space<vmem>>, vector<2x32xf32>
    tpu.vector_store %arg9[%c0_218, %c0_219], %491 {strides = array<i32>} : memref<2x32xf32, #tpu.memory_space<vmem>>, vector<2x32xf32>,
    %493 = vector.broadcast %439 : vector<2x1xf32> to vector<2x32xf32>
    %494 = arith.mulf %493, %480 : vector<2x32xf32>
    %c0_220 = arith.constant 0 : index
    %c14_221 = arith.constant 14 : index
    %c0_222 = arith.constant 0 : index
    %495 = vector.load %arg7[%c0_220, %c14_221, %c0_222] : memref<1x16x32xf32, #tpu.memory_space<vmem>>, vector<1x2x32xf32>
    %496 = vector.shape_cast %495 : vector<1x2x32xf32> to vector<2x32xf32>
    %497 = vector.shape_cast %494 : vector<2x32xf32> to vector<1x2x32xf32>
    tpu.vector_store %arg7[%c0_220, %c14_221, %c0_222], %497 {strides = array<i32>} : memref<1x16x32xf32, #tpu.memory_space<vmem>>, vector<1x2x32xf32>,
    return
  }
  func.func @transform_0(%arg0: i32) -> (i32, i32, i32) {
    %c0_i32 = arith.constant 0 : i32
    %c0_i32_0 = arith.constant 0 : i32
    %c0_i32_1 = arith.constant 0 : i32
    return %arg0, %c0_i32, %c0_i32_0 : i32, i32, i32
  }
  func.func @transform_1(%arg0: i32) -> (i32, i32, i32) {
    %c0_i32 = arith.constant 0 : i32
    %c0_i32_0 = arith.constant 0 : i32
    %c0_i32_1 = arith.constant 0 : i32
    return %arg0, %c0_i32, %c0_i32_0 : i32, i32, i32
  }
  func.func @transform_2(%arg0: i32) -> (i32, i32, i32) {
    %c0_i32 = arith.constant 0 : i32
    %c0_i32_0 = arith.constant 0 : i32
    %c0_i32_1 = arith.constant 0 : i32
    return %arg0, %c0_i32, %c0_i32_0 : i32, i32, i32
  }
  func.func @transform_3(%arg0: i32) -> (i32, i32, i32) {
    %c0_i32 = arith.constant 0 : i32
    %c0_i32_0 = arith.constant 0 : i32
    %c0_i32_1 = arith.constant 0 : i32
    return %arg0, %c0_i32, %c0_i32_0 : i32, i32, i32
  }
  func.func @transform_4(%arg0: i32) -> (i32, i32, i32) {
    %c0_i32 = arith.constant 0 : i32
    %c0_i32_0 = arith.constant 0 : i32
    %c0_i32_1 = arith.constant 0 : i32
    return %arg0, %c0_i32, %c0_i32_0 : i32, i32, i32
  }
  func.func @transform_5(%arg0: i32) -> (i32, i32, i32) {
    %c0_i32 = arith.constant 0 : i32
    %c0_i32_0 = arith.constant 0 : i32
    %c0_i32_1 = arith.constant 0 : i32
    return %arg0, %c0_i32, %c0_i32_0 : i32, i32, i32
  }
  func.func @transform_6(%arg0: i32) -> (i32, i32, i32) {
    %c0_i32 = arith.constant 0 : i32
    %c0_i32_0 = arith.constant 0 : i32
    %c0_i32_1 = arith.constant 0 : i32
    return %arg0, %c0_i32, %c0_i32_0 : i32, i32, i32
  }
}

module attributes {stable_mosaic.version = 11 : i64} {
  func.func @_token_embedder_kernel(%arg0: memref<16x32xf32, #tpu.memory_space<vmem>>, %arg1: memref<112x16xf32, #tpu.memory_space<vmem>>, %arg2: memref<96x32xf32, #tpu.memory_space<vmem>>, %arg3: memref<80x48xf32, #tpu.memory_space<vmem>>, %arg4: memref<16x8xf32, #tpu.memory_space<vmem>>, %arg5: memref<32x8xf32, #tpu.memory_space<vmem>>, %arg6: memref<48x16xf32, #tpu.memory_space<vmem>>, %arg7: memref<1x8xf32, #tpu.memory_space<vmem>>, %arg8: memref<1x8xf32, #tpu.memory_space<vmem>>, %arg9: memref<1x16xf32, #tpu.memory_space<vmem>>, %arg10: memref<1x32x64xf32, #tpu.memory_space<vmem>>, %arg11: memref<1x1x64xf32, #tpu.memory_space<vmem>>, %arg12: memref<32x32xf32, #tpu.memory_space<vmem>>, %arg13: memref<32x32xf32, #tpu.memory_space<vmem>>, %arg14: memref<1x32xf32, #tpu.memory_space<vmem>>, %arg15: memref<16x32xf32, #tpu.memory_space<vmem>>, %arg16: memref<16x32xf32, #tpu.memory_space<vmem>>) attributes {dimension_semantics = [], scalar_prefetch = 0 : i64, scratch_operands = 1 : i64, tpu.core_type = #tpu.core_type<tc>} {
    %c0 = arith.constant 0 : index
    %c0_0 = arith.constant 0 : index
    %0 = vector.load %arg1[%c0, %c0_0] : memref<112x16xf32, #tpu.memory_space<vmem>>, vector<112x16xf32>
    %c0_1 = arith.constant 0 : index
    %c0_2 = arith.constant 0 : index
    %1 = vector.load %arg4[%c0_1, %c0_2] : memref<16x8xf32, #tpu.memory_space<vmem>>, vector<16x8xf32>
    %cst = arith.constant dense<0.000000e+00> : vector<112x8xf32>
    %2 = tpu.matmul %0, %1, %cst {dimension_numbers = #tpu.dot_dimension_numbers<[1], [0], [0], [1], [0, 0, 1, 1], [], []>} : vector<112x16xf32>, vector<16x8xf32>, vector<112x8xf32> -> vector<112x8xf32>
    %3 = vector.extract_strided_slice %2 {offsets = [0, 0], sizes = [16, 8], strides = [1, 1]} : vector<112x8xf32> to vector<16x8xf32>
    %4 = vector.extract_strided_slice %2 {offsets = [16, 0], sizes = [16, 8], strides = [1, 1]} : vector<112x8xf32> to vector<16x8xf32>
    %5 = arith.maximumf %3, %4 : vector<16x8xf32>
    %6 = vector.extract_strided_slice %2 {offsets = [32, 0], sizes = [16, 8], strides = [1, 1]} : vector<112x8xf32> to vector<16x8xf32>
    %7 = arith.maximumf %5, %6 : vector<16x8xf32>
    %8 = vector.extract_strided_slice %2 {offsets = [48, 0], sizes = [16, 8], strides = [1, 1]} : vector<112x8xf32> to vector<16x8xf32>
    %9 = arith.maximumf %7, %8 : vector<16x8xf32>
    %10 = vector.extract_strided_slice %2 {offsets = [64, 0], sizes = [16, 8], strides = [1, 1]} : vector<112x8xf32> to vector<16x8xf32>
    %11 = arith.maximumf %9, %10 : vector<16x8xf32>
    %12 = vector.extract_strided_slice %2 {offsets = [80, 0], sizes = [16, 8], strides = [1, 1]} : vector<112x8xf32> to vector<16x8xf32>
    %13 = arith.maximumf %11, %12 : vector<16x8xf32>
    %14 = vector.extract_strided_slice %2 {offsets = [96, 0], sizes = [16, 8], strides = [1, 1]} : vector<112x8xf32> to vector<16x8xf32>
    %15 = arith.maximumf %13, %14 : vector<16x8xf32>
    %c0_3 = arith.constant 0 : index
    %c0_4 = arith.constant 0 : index
    %16 = vector.load %arg7[%c0_3, %c0_4] : memref<1x8xf32, #tpu.memory_space<vmem>>, vector<1x8xf32>
    %17 = vector.broadcast %16 : vector<1x8xf32> to vector<16x8xf32>
    %18 = arith.addf %15, %17 : vector<16x8xf32>
    %cst_5 = arith.constant 0.000000e+00 : f32
    %19 = vector.broadcast %cst_5 : f32 to vector<16x8xf32>
    %20 = arith.maximumf %18, %19 : vector<16x8xf32>
    %c0_6 = arith.constant 0 : index
    %c0_7 = arith.constant 0 : index
    %21 = vector.load %arg16[%c0_6, %c0_7] : memref<16x32xf32, #tpu.memory_space<vmem>>, vector<16x8xf32>
    tpu.vector_store %arg16[%c0_6, %c0_7], %20 {strides = array<i32>} : memref<16x32xf32, #tpu.memory_space<vmem>>, vector<16x8xf32>,
    %c0_8 = arith.constant 0 : index
    %c0_9 = arith.constant 0 : index
    %22 = vector.load %arg2[%c0_8, %c0_9] : memref<96x32xf32, #tpu.memory_space<vmem>>, vector<96x32xf32>
    %c0_10 = arith.constant 0 : index
    %c0_11 = arith.constant 0 : index
    %23 = vector.load %arg5[%c0_10, %c0_11] : memref<32x8xf32, #tpu.memory_space<vmem>>, vector<32x8xf32>
    %cst_12 = arith.constant dense<0.000000e+00> : vector<96x8xf32>
    %24 = tpu.matmul %22, %23, %cst_12 {dimension_numbers = #tpu.dot_dimension_numbers<[1], [0], [0], [1], [0, 0, 1, 1], [], []>} : vector<96x32xf32>, vector<32x8xf32>, vector<96x8xf32> -> vector<96x8xf32>
    %25 = vector.extract_strided_slice %24 {offsets = [0, 0], sizes = [16, 8], strides = [1, 1]} : vector<96x8xf32> to vector<16x8xf32>
    %26 = vector.extract_strided_slice %24 {offsets = [16, 0], sizes = [16, 8], strides = [1, 1]} : vector<96x8xf32> to vector<16x8xf32>
    %27 = arith.maximumf %25, %26 : vector<16x8xf32>
    %28 = vector.extract_strided_slice %24 {offsets = [32, 0], sizes = [16, 8], strides = [1, 1]} : vector<96x8xf32> to vector<16x8xf32>
    %29 = arith.maximumf %27, %28 : vector<16x8xf32>
    %30 = vector.extract_strided_slice %24 {offsets = [48, 0], sizes = [16, 8], strides = [1, 1]} : vector<96x8xf32> to vector<16x8xf32>
    %31 = arith.maximumf %29, %30 : vector<16x8xf32>
    %32 = vector.extract_strided_slice %24 {offsets = [64, 0], sizes = [16, 8], strides = [1, 1]} : vector<96x8xf32> to vector<16x8xf32>
    %33 = arith.maximumf %31, %32 : vector<16x8xf32>
    %34 = vector.extract_strided_slice %24 {offsets = [80, 0], sizes = [16, 8], strides = [1, 1]} : vector<96x8xf32> to vector<16x8xf32>
    %35 = arith.maximumf %33, %34 : vector<16x8xf32>
    %c0_13 = arith.constant 0 : index
    %c0_14 = arith.constant 0 : index
    %36 = vector.load %arg8[%c0_13, %c0_14] : memref<1x8xf32, #tpu.memory_space<vmem>>, vector<1x8xf32>
    %37 = vector.broadcast %36 : vector<1x8xf32> to vector<16x8xf32>
    %38 = arith.addf %35, %37 : vector<16x8xf32>
    %cst_15 = arith.constant 0.000000e+00 : f32
    %39 = vector.broadcast %cst_15 : f32 to vector<16x8xf32>
    %40 = arith.maximumf %38, %39 : vector<16x8xf32>
    %c0_16 = arith.constant 0 : index
    %c8 = arith.constant 8 : index
    %41 = vector.load %arg16[%c0_16, %c8] : memref<16x32xf32, #tpu.memory_space<vmem>>, vector<16x8xf32>
    tpu.vector_store %arg16[%c0_16, %c8], %40 {strides = array<i32>} : memref<16x32xf32, #tpu.memory_space<vmem>>, vector<16x8xf32>,
    %c0_17 = arith.constant 0 : index
    %c0_18 = arith.constant 0 : index
    %42 = vector.load %arg3[%c0_17, %c0_18] : memref<80x48xf32, #tpu.memory_space<vmem>>, vector<80x48xf32>
    %c0_19 = arith.constant 0 : index
    %c0_20 = arith.constant 0 : index
    %43 = vector.load %arg6[%c0_19, %c0_20] : memref<48x16xf32, #tpu.memory_space<vmem>>, vector<48x16xf32>
    %cst_21 = arith.constant dense<0.000000e+00> : vector<80x16xf32>
    %44 = tpu.matmul %42, %43, %cst_21 {dimension_numbers = #tpu.dot_dimension_numbers<[1], [0], [0], [1], [0, 0, 1, 1], [], []>} : vector<80x48xf32>, vector<48x16xf32>, vector<80x16xf32> -> vector<80x16xf32>
    %45 = vector.extract_strided_slice %44 {offsets = [0, 0], sizes = [16, 16], strides = [1, 1]} : vector<80x16xf32> to vector<16x16xf32>
    %46 = vector.extract_strided_slice %44 {offsets = [16, 0], sizes = [16, 16], strides = [1, 1]} : vector<80x16xf32> to vector<16x16xf32>
    %47 = arith.maximumf %45, %46 : vector<16x16xf32>
    %48 = vector.extract_strided_slice %44 {offsets = [32, 0], sizes = [16, 16], strides = [1, 1]} : vector<80x16xf32> to vector<16x16xf32>
    %49 = arith.maximumf %47, %48 : vector<16x16xf32>
    %50 = vector.extract_strided_slice %44 {offsets = [48, 0], sizes = [16, 16], strides = [1, 1]} : vector<80x16xf32> to vector<16x16xf32>
    %51 = arith.maximumf %49, %50 : vector<16x16xf32>
    %52 = vector.extract_strided_slice %44 {offsets = [64, 0], sizes = [16, 16], strides = [1, 1]} : vector<80x16xf32> to vector<16x16xf32>
    %53 = arith.maximumf %51, %52 : vector<16x16xf32>
    %c0_22 = arith.constant 0 : index
    %c0_23 = arith.constant 0 : index
    %54 = vector.load %arg9[%c0_22, %c0_23] : memref<1x16xf32, #tpu.memory_space<vmem>>, vector<1x16xf32>
    %55 = vector.broadcast %54 : vector<1x16xf32> to vector<16x16xf32>
    %56 = arith.addf %53, %55 : vector<16x16xf32>
    %cst_24 = arith.constant 0.000000e+00 : f32
    %57 = vector.broadcast %cst_24 : f32 to vector<16x16xf32>
    %58 = arith.maximumf %56, %57 : vector<16x16xf32>
    %c0_25 = arith.constant 0 : index
    %c16 = arith.constant 16 : index
    %59 = vector.load %arg16[%c0_25, %c16] : memref<16x32xf32, #tpu.memory_space<vmem>>, vector<16x16xf32>
    tpu.vector_store %arg16[%c0_25, %c16], %58 {strides = array<i32>} : memref<16x32xf32, #tpu.memory_space<vmem>>, vector<16x16xf32>,
    %c0_26 = arith.constant 0 : index
    %c0_27 = arith.constant 0 : index
    %60 = vector.load %arg16[%c0_26, %c0_27] : memref<16x32xf32, #tpu.memory_space<vmem>>, vector<16x32xf32>
    %c0_28 = arith.constant 0 : index
    %c0_29 = arith.constant 0 : index
    %c0_30 = arith.constant 0 : index
    %61 = vector.load %arg10[%c0_28, %c0_29, %c0_30] : memref<1x32x64xf32, #tpu.memory_space<vmem>>, vector<1x32x64xf32>
    %62 = vector.shape_cast %61 : vector<1x32x64xf32> to vector<32x64xf32>
    %cst_31 = arith.constant dense<0.000000e+00> : vector<16x64xf32>
    %63 = tpu.matmul %60, %62, %cst_31 {dimension_numbers = #tpu.dot_dimension_numbers<[1], [0], [0], [1], [0, 0, 1, 1], [], []>} : vector<16x32xf32>, vector<32x64xf32>, vector<16x64xf32> -> vector<16x64xf32>
    %c0_32 = arith.constant 0 : index
    %c0_33 = arith.constant 0 : index
    %c0_34 = arith.constant 0 : index
    %64 = vector.load %arg11[%c0_32, %c0_33, %c0_34] : memref<1x1x64xf32, #tpu.memory_space<vmem>>, vector<1x1x64xf32>
    %65 = vector.shape_cast %64 : vector<1x1x64xf32> to vector<1x64xf32>
    %66 = vector.broadcast %65 : vector<1x64xf32> to vector<16x64xf32>
    %67 = arith.addf %63, %66 : vector<16x64xf32>
    %68 = vector.extract_strided_slice %67 {offsets = [0, 0], sizes = [16, 32], strides = [1, 1]} : vector<16x64xf32> to vector<16x32xf32>
    %cst_35 = arith.constant 0.000000e+00 : f32
    %69 = vector.broadcast %cst_35 : f32 to vector<16x32xf32>
    %70 = arith.maximumf %68, %69 : vector<16x32xf32>
    %71 = vector.extract_strided_slice %67 {offsets = [0, 32], sizes = [16, 32], strides = [1, 1]} : vector<16x64xf32> to vector<16x32xf32>
    %72 = arith.negf %71 : vector<16x32xf32>
    %73 = math.exp %72 : vector<16x32xf32>
    %cst_36 = arith.constant 1.000000e+00 : f32
    %74 = vector.broadcast %cst_36 : f32 to vector<16x32xf32>
    %75 = arith.addf %74, %73 : vector<16x32xf32>
    %76 = arith.divf %74, %75 : vector<16x32xf32>
    %77 = arith.mulf %76, %60 : vector<16x32xf32>
    %cst_37 = arith.constant 1.000000e+00 : f32
    %78 = vector.broadcast %cst_37 : f32 to vector<16x32xf32>
    %79 = arith.subf %78, %76 : vector<16x32xf32>
    %80 = arith.mulf %79, %70 : vector<16x32xf32>
    %81 = arith.addf %77, %80 : vector<16x32xf32>
    %c0_38 = arith.constant 0 : index
    %c0_39 = arith.constant 0 : index
    %82 = vector.load %arg0[%c0_38, %c0_39] : memref<16x32xf32, #tpu.memory_space<vmem>>, vector<16x32xf32>
    %c0_40 = arith.constant 0 : index
    %c0_41 = arith.constant 0 : index
    %83 = vector.load %arg12[%c0_40, %c0_41] : memref<32x32xf32, #tpu.memory_space<vmem>>, vector<32x32xf32>
    %cst_42 = arith.constant dense<0.000000e+00> : vector<16x32xf32>
    %84 = tpu.matmul %82, %83, %cst_42 {dimension_numbers = #tpu.dot_dimension_numbers<[1], [0], [0], [1], [0, 0, 1, 1], [], []>} : vector<16x32xf32>, vector<32x32xf32>, vector<16x32xf32> -> vector<16x32xf32>
    %c0_43 = arith.constant 0 : index
    %c0_44 = arith.constant 0 : index
    %85 = vector.load %arg13[%c0_43, %c0_44] : memref<32x32xf32, #tpu.memory_space<vmem>>, vector<32x32xf32>
    %cst_45 = arith.constant dense<0.000000e+00> : vector<16x32xf32>
    %86 = tpu.matmul %81, %85, %cst_45 {dimension_numbers = #tpu.dot_dimension_numbers<[1], [0], [0], [1], [0, 0, 1, 1], [], []>} : vector<16x32xf32>, vector<32x32xf32>, vector<16x32xf32> -> vector<16x32xf32>
    %87 = arith.addf %84, %86 : vector<16x32xf32>
    %c0_46 = arith.constant 0 : index
    %c0_47 = arith.constant 0 : index
    %88 = vector.load %arg14[%c0_46, %c0_47] : memref<1x32xf32, #tpu.memory_space<vmem>>, vector<1x32xf32>
    %89 = vector.broadcast %88 : vector<1x32xf32> to vector<16x32xf32>
    %90 = arith.addf %87, %89 : vector<16x32xf32>
    %c0_48 = arith.constant 0 : index
    %c0_49 = arith.constant 0 : index
    %91 = vector.load %arg15[%c0_48, %c0_49] : memref<16x32xf32, #tpu.memory_space<vmem>>, vector<16x32xf32>
    tpu.vector_store %arg15[%c0_48, %c0_49], %90 {strides = array<i32>} : memref<16x32xf32, #tpu.memory_space<vmem>>, vector<16x32xf32>,
    return
  }
}

</mosaic_0001>

<bundles_post_ra>
// kernel: reverse
= control target key start
LH: loop header
LB: loop body
LE: loop exit
PB: predicated region body
PF: predicated region fallthrough
CT: control target
= control target key end

     0   :  { %v2_v0 = vlaneseq  ;;  %s109_s0 = inlined_call_operand.vmem [shape: f32[8,2], index: 0, kind: input, shape index: {}]   ;;  %s110_s1 = inlined_call_operand.vmem [shape: f32[8,2], index: 1, kind: output, shape index: {}]  }
   0x2   :  { %v3_v1 = vsub.s32 7, %v2_v0 }
   0x4   :  { %4 = vset.pattern.permute.xlu0 %v3_v1 }
   0x5   :  { %v21_v2 = vld [vmem:[%s109_s0] sm:$0x3] }
   0x6   :  { %22 = vst [vmem:[#allocation1] sm:$0x3] %v21_v2 }
   0xd   :  { %v40_v3 = vld [vmem:[#allocation1] sm:$0x3] }
   0xe   :  { %41 = vst [vmem:[#allocation0] sm:$0x3] %v40_v3 }
  0x15   :  { %v42_v4 = vld [vmem:[#allocation0] sm:$0xff] }
  0x16   :  { %43 = vperm.xlu0 %4, %v42_v4  }
  0x88   :  { %v44_v5 = vpop.permute.xlu0 %43 }
  0x89   :  { %45 = vst [vmem:[#allocation2] sm:$0xff] %v44_v5 }
  0x90   :  { %v48_v6 = vld [vmem:[#allocation2] sm:$0x3] }
  0x91   :  { %51 = vst [vmem:[#allocation3] sm:$0x3] %v48_v6 }
  0x98   :  { %v68_v7 = vld [vmem:[#allocation3] sm:$0x3] }
  0x99   :  { %69 = vst [vmem:[%s110_s1] sm:$0x3] %v68_v7 }

// kernel: elmo_forward.3
= control target key start
LH: loop header
LB: loop body
LE: loop exit
PB: predicated region body
PF: predicated region fallthrough
CT: control target
= control target key end

     0   :  { %vm66_vm0 = vcmask 130048   ;;  %vm207_vm1 = vcmask 261120   ;;  %vm342_vm2 = vcmask 392192   ;;  %vm188_vm3 = vcmask 64512   ;;  %s1039_s4 = inlined_call_operand.vmem [shape: f32[16,8], index: 4, kind: input, shape index: {}]   ;;  %s1040_s5 = inlined_call_operand.vmem [shape: f32[32,8], index: 5, kind: input, shape index: {}]   ;;  %s1041_s6 = inlined_call_operand.vmem [shape: f32[48,16], index: 6, kind: input, shape index: {}]   ;;  %s1042_s1 = inlined_call_operand.vmem [shape: f32[112,16], index: 1, kind: input, shape index: {}]   ;;  %s1043_s2 = inlined_call_operand.vmem [shape: f32[96,32], index: 2, kind: input, shape index: {}]   ;;  %s1044_s3 = inlined_call_operand.vmem [shape: f32[80,48], index: 3, kind: input, shape index: {}]   ;;  %s1045_s7 = inlined_call_operand.vmem [shape: f32[1,8], index: 7, kind: input, shape index: {}]   ;;  %s1046_s9 = inlined_call_operand.vmem [shape: f32[1,16], index: 9, kind: input, shape index: {}]   ;;  %s1047_s8 = inlined_call_operand.vmem [shape: f32[1,8], index: 8, kind: input, shape index: {}]   ;;  %s1048_s10 = inlined_call_operand.vmem [shape: f32[1,32,64], index: 10, kind: input, shape index: {}]   ;;  %s1049_s11 = inlined_call_operand.vmem [shape: f32[1,1,64], index: 11, kind: input, shape index: {}]   ;;  %s1050_s13 = inlined_call_operand.vmem [shape: f32[32,32], index: 13, kind: input, shape index: {}]   ;;  %s1051_s12 = inlined_call_operand.vmem [shape: f32[32,32], index: 12, kind: input, shape index: {}]   ;;  %s1052_s0 = inlined_call_operand.vmem [shape: f32[16,32], index: 0, kind: input, shape index: {}]   ;;  %s1053_s14 = inlined_call_operand.vmem [shape: f32[1,32], index: 14, kind: input, shape index: {}]   ;;  %s1054_s15 = inlined_call_operand.vmem [shape: f32[16,32], index: 15, kind: output, shape index: {}]  }
   0x1   :  { %v65_v0 = vld [vmem:[%s1039_s4 + $0x8] sm:$0xff]  ;;  %v206_v1 = vld [vmem:[%s1040_s5 + $0x18] sm:$0xff]  ;;  %v64_v3 = vld [vmem:[%s1039_s4] sm:$0xff]  ;;  %vm323_vm4 = vcmask 130112   ;;  %vm444_vm5 = vcmask 261248  }
   0x2   :  { %v341_v2 = vld [vmem:[%s1041_s6 + $0x28] sm:$0xff]  ;;  %123 = vmatpush.msra.mxu0 %v65_v0  ;;  %256 = vmatpush.msra.mxu1 %v206_v1  ;;  %v205_v4 = vld [vmem:[%s1040_s5 + $0x10] sm:$0xff]  ;;  %v340_v5 = vld [vmem:[%s1041_s6 + $0x20] sm:$0xff] }
   0x3   :  { %383 = vmatpush.msra.mxu2 %v341_v2  ;;  %v50_v6 = vld [vmem:[%s1042_s1] sm:$0xff]  ;;  %v204_v7 = vld [vmem:[%s1040_s5 + $0x8] sm:$0xff]  ;;  %676 = vmatpush.msra.mxu3 %v65_v0  ;;  %v339_v8 = vld [vmem:[%s1041_s6 + $0x18] sm:$0xff] }
   0x4   :  { %124 = vmatpush.msra.mxu0 %v64_v3  ;;  %257 = vmatpush.msra.mxu1 %v205_v4  ;;  %v203_v9 = vld [vmem:[%s1040_s5] sm:$0xff]  ;;  %v338_v10 = vld [vmem:[%s1041_s6 + $0x10] sm:$0xff]  ;;  %v337_v12 = vld [vmem:[%s1041_s6 + $0x8] sm:$0xff]  ;;  %s700_s5 = smov 16  }
   0x5   :  { %384 = vmatpush.msra.mxu2 %v340_v5  ;;  %632 = vmatmul.msk.f32.vlgmr.msra.gmra.mxu0 %vm66_vm0, %v50_v6  ;;  %v191_v11 = vld [vmem:[%s1043_s2] sm:$0xff]  ;;  %v51_v14 = vld [vmem:[%s1042_s1 + $0x8] sm:$0xff]  ;;  %v52_v17 = vld [vmem:[%s1042_s1 + $0x10] sm:$0xff] }
   0x6   :  { %258 = vmatpush.msra.mxu1 %v204_v7  ;;  %677 = vmatpush.msra.mxu3 %v64_v3  ;;  %v336_v13 = vld [vmem:[%s1041_s6] sm:$0xff]  ;;  %v192_v16 = vld [vmem:[%s1043_s2 + $0x8] sm:$0xff]  ;;  %v61_v19 = vld [vmem:[%s1042_s1 + $0x58] sm:$0xff]  ;;  %s701_s6 = smov 32  }
   0x7   :  { %385 = vmatpush.msra.mxu2 %v339_v8  ;;  %v326_v15 = vld [vmem:[%s1044_s3] sm:$0xff]  ;;  %v327_v18 = vld [vmem:[%s1044_s3 + $0x8] sm:$0xff]  ;;  %v193_v20 = vld [vmem:[%s1043_s2 + $0x10] sm:$0xff]  ;;  %643 = vmatmul.msk.f32.vlgmr.msra.gmra.mxu3 %vm66_vm0, %v61_v19 }
   0x8   :  { %678 = vmatpush.msrb.mxu3 %v206_v1  ;;  %259 = vmatpush.msra.mxu1 %v203_v9  ;;  %v53_v21 = vld [vmem:[%s1042_s1 + $0x18] sm:$0xff]  ;;  %v328_v22 = vld [vmem:[%s1044_s3 + $0x10] sm:$0xff]  ;;  %v62_v23 = vld [vmem:[%s1042_s1 + $0x60] sm:$0xff] }
   0x9   :  { %386 = vmatpush.msra.mxu2 %v338_v10  ;;  %646 = vmatmul.msk.f32.vlgmr.msra.gmra.mxu1 %vm207_vm1, %v191_v11  ;;  %v194_v24 = vld [vmem:[%s1043_s2 + $0x18] sm:$0xff]  ;;  %v54_v25 = vld [vmem:[%s1042_s1 + $0x20] sm:$0xff]  ;;  %v63_v27 = vld [vmem:[%s1042_s1 + $0x68] sm:$0xff] }
   0xa   :  { %679 = vmatpush.msrb.mxu3 %v205_v4  ;;  %v329_v26 = vld [vmem:[%s1044_s3 + $0x18] sm:$0xff]  ;;  %v195_v28 = vld [vmem:[%s1043_s2 + $0x20] sm:$0xff]  ;;  %v55_v29 = vld [vmem:[%s1042_s1 + $0x28] sm:$0xff] }
   0xb   :  { %387 = vmatpush.msra.mxu2 %v337_v12  ;;  %v330_v30 = vld [vmem:[%s1044_s3 + $0x20] sm:$0xff]  ;;  %v202_v31 = vld [vmem:[%s1043_s2 + $0x58] sm:$0xff]  ;;  %v196_v32 = vld [vmem:[%s1043_s2 + $0x28] sm:$0xff] }
   0xc   :  { %680 = vmatpush.msrb.mxu3 %v204_v7  ;;  %v56_v33 = vld [vmem:[%s1042_s1 + $0x30] sm:$0xff]  ;;  %v331_v34 = vld [vmem:[%s1044_s3 + $0x28] sm:$0xff]  ;;  %v57_v36 = vld [vmem:[%s1042_s1 + $0x38] sm:$0xff] }
   0xd   :  { %388 = vmatpush.msra.mxu2 %v336_v13  ;;  %633 = vmatmul.msk.f32.gmra.mxu0 %vm66_vm0, %v51_v14  ;;  %v197_v35 = vld [vmem:[%s1043_s2 + $0x30] sm:$0xff]  ;;  %v198_v38 = vld [vmem:[%s1043_s2 + $0x38] sm:$0xff]  ;;  %v58_v39 = vld [vmem:[%s1042_s1 + $0x40] sm:$0xff] }
   0xe   :  { %658 = vmatmul.msk.f32.vlgmr.msra.gmra.mxu2 %vm342_vm2, %v326_v15  ;;  %681 = vmatpush.msrb.mxu3 %v203_v9  ;;  %v332_v37 = vld [vmem:[%s1044_s3 + $0x30] sm:$0xff]  ;;  %v333_v40 = vld [vmem:[%s1044_s3 + $0x38] sm:$0xff]  ;;  %v199_v41 = vld [vmem:[%s1043_s2 + $0x40] sm:$0xff] }
   0xf   :  { %644 = vmatmul.msk.f32.gmra.mxu3 %vm66_vm0, %v62_v23  ;;  %v59_v42 = vld [vmem:[%s1042_s1 + $0x48] sm:$0xff]  ;;  %v334_v43 = vld [vmem:[%s1044_s3 + $0x40] sm:$0xff]  ;;  %v60_v45 = vld [vmem:[%s1042_s1 + $0x50] sm:$0xff] }
  0x10   :  { %v200_v44 = vld [vmem:[%s1043_s2 + $0x48] sm:$0xff]  ;;  %v201_v47 = vld [vmem:[%s1043_s2 + $0x50] sm:$0xff] }
  0x11   :  { %647 = vmatmul.msk.f32.gmra.mxu1 %vm207_vm1, %v192_v16  ;;  %v335_v46 = vld [vmem:[%s1044_s3 + $0x48] sm:$0xff] }
  0x15   :  { %634 = vmatmul.msk.f32.gmra.mxu0 %vm66_vm0, %v52_v17 }
  0x16   :  { %659 = vmatmul.msk.f32.gmra.mxu2 %vm342_vm2, %v327_v18 }
  0x17   :  { %645 = vmatmul.msk.f32.gmra.mxu3 %vm66_vm0, %v63_v27 }
  0x19   :  { %648 = vmatmul.msk.f32.gmra.mxu1 %vm207_vm1, %v193_v20 }
  0x1d   :  { %635 = vmatmul.msk.f32.gmra.mxu0 %vm66_vm0, %v53_v21 }
  0x1e   :  { %660 = vmatmul.msk.f32.gmra.mxu2 %vm342_vm2, %v328_v22 }
  0x1f   :  { %657 = vmatmul.msk.f32.vlgmr.msrb.gmra.mxu3 %vm207_vm1, %v202_v31 }
  0x21   :  { %649 = vmatmul.msk.f32.gmra.mxu1 %vm207_vm1, %v194_v24 }
  0x25   :  { %636 = vmatmul.msk.f32.gmra.mxu0 %vm66_vm0, %v54_v25  ;;  %v687_v25 = vld [vmem:[%s1045_s7] ss:$0 sm:$0xff]  ;;  %s699_s7 = smov 8  }
  0x26   :  { %661 = vmatmul.msk.f32.gmra.mxu2 %vm342_vm2, %v329_v26 }
  0x29   :  { %650 = vmatmul.msk.f32.gmra.mxu1 %vm207_vm1, %v195_v28 }
  0x2d   :  { %637 = vmatmul.msk.f32.gmra.mxu0 %vm66_vm0, %v55_v29 }
  0x2e   :  { %662 = vmatmul.msk.f32.gmra.mxu2 %vm342_vm2, %v330_v30 }
  0x31   :  { %651 = vmatmul.msk.f32.gmra.mxu1 %vm207_vm1, %v196_v32  ;;  %v688_v32 = vld [vmem:[%s1047_s8] ss:$0 sm:$0xff] }
  0x35   :  { %638 = vmatmul.msk.f32.gmra.mxu0 %vm66_vm0, %v56_v33 }
  0x36   :  { %663 = vmatmul.msk.f32.gmra.mxu2 %vm342_vm2, %v331_v34 }
  0x39   :  { %652 = vmatmul.msk.f32.gmra.mxu1 %vm207_vm1, %v197_v35 }
  0x3d   :  { %639 = vmatmul.msk.f32.gmra.mxu0 %vm66_vm0, %v57_v36 }
  0x3e   :  { %664 = vmatmul.msk.f32.gmra.mxu2 %vm342_vm2, %v332_v37 }
  0x41   :  { %653 = vmatmul.msk.f32.gmra.mxu1 %vm207_vm1, %v198_v38 }
  0x45   :  { %640 = vmatmul.msk.f32.gmra.mxu0 %vm66_vm0, %v58_v39 }
  0x46   :  { %665 = vmatmul.msk.f32.gmra.mxu2 %vm342_vm2, %v333_v40 }
  0x49   :  { %654 = vmatmul.msk.f32.gmra.mxu1 %vm207_vm1, %v199_v41 }
  0x4d   :  { %641 = vmatmul.msk.f32.gmra.mxu0 %vm66_vm0, %v59_v42 }
  0x4e   :  { %666 = vmatmul.msk.f32.gmra.mxu2 %vm342_vm2, %v334_v43 }
  0x51   :  { %655 = vmatmul.msk.f32.gmra.mxu1 %vm207_vm1, %v200_v44 }
  0x55   :  { %642 = vmatmul.msk.f32.gmra.mxu0 %vm66_vm0, %v60_v45 }
  0x56   :  { %667 = vmatmul.msk.f32.gmra.mxu2 %vm342_vm2, %v335_v46 }
  0x59   :  { %656 = vmatmul.msk.f32.gmra.mxu1 %vm207_vm1, %v201_v47 }
  0x82   :  { %v126_v48 = vpop.f32.mrf.mxu0 }
  0x86   :  { %v261_v49 = vpop.f32.mrf.mxu1 }
  0x8a   :  { %v129_v50 = vpop.f32.mrf.mxu0  ;;  %v159_v0 = vpop.f32.mrf.mxu3 }
  0x8e   :  { %v264_v51 = vpop.f32.mrf.mxu1 }
  0x91   :  { %v963_v52 = vpop.f32.mrf.mxu2 }
  0x92   :  { %v132_v53 = vpop.f32.mrf.mxu0  ;;  %v162_v6 = vpop.f32.mrf.mxu3 }
  0x93   :  { %v168_v11 = vmax.f32 %v126_v48, %v132_v53 }
  0x96   :  { %v267_v54 = vpop.f32.mrf.mxu1 }
  0x97   :  { %v297_v28 = vmax.f32 %v261_v49, %v267_v54 }
  0x99   :  { %v393_v55 = vpop.f32.mrf.mxu2 }
  0x9a   :  { %v135_v56 = vpop.f32.mrf.mxu0  ;;  %v165_v13 = vpop.f32.mrf.mxu3 }
  0x9b   :  { %v169_v8 = vmax.f32 %v129_v50, %v135_v56 }
  0x9e   :  { %v270_v57 = vpop.f32.mrf.mxu1 }
  0x9f   :  { %v298_v17 = vmax.f32 %v264_v51, %v270_v57 }
  0xa1   :  { %v396_v58 = vpop.f32.mrf.mxu2 }
  0xa2   :  { %v138_v59 = vpop.f32.mrf.mxu0  ;;  %v294_v27 = vpop.f32.mrf.mxu3  ;;  %v420_v43 = vmax.f32 %v963_v52, %v396_v58  ;;  %v686_v52 = vld [vmem:[%s1046_s9] ss:$0 sm:$0xff] }
  0xa3   :  { %v170_v15 = vmax.f32 %v168_v11, %v138_v59  ;;  %v689_v11 = vld [vmem:[%s1049_s11] ss:$0 sm:$0xff]  ;;  %s702_s11 = smov 96  }
  0xa6   :  { %v273_v60 = vpop.f32.mrf.mxu1 }
  0xa7   :  { %v299_v33 = vmax.f32 %v297_v28, %v273_v60 }
  0xa9   :  { %v399_v61 = vpop.f32.mrf.mxu2 }
  0xaa   :  { %v141_v62 = vpop.f32.mrf.mxu0  ;;  %v421_v42 = vmax.f32 %v393_v55, %v399_v61 }
  0xab   :  { %v171_v12 = vmax.f32 %v169_v8, %v141_v62 }
  0xae   :  { %v276_v63 = vpop.f32.mrf.mxu1 }
  0xaf   :  { %v300_v20 = vmax.f32 %v298_v17, %v276_v63 }
  0xb1   :  { %v402_v1 = vpop.f32.mrf.mxu2 }
  0xb2   :  { %v144_v2 = vpop.f32.mrf.mxu0  ;;  %v422_v49 = vmax.f32 %v420_v43, %v402_v1  ;;  %v452_v1 = vld [vmem:[%s1048_s10 + $0x18] sm:$0xff]  ;;  %v555_v43 = vld [vmem:[%s1050_s13 + $0x8] sm:$0xff] }
  0xb3   :  { %v172_v21 = vmax.f32 %v170_v15, %v144_v2  ;;  %v451_v2 = vld [vmem:[%s1048_s10 + $0x10] sm:$0xff]  ;;  %475 = vmatpush.msra.mxu3 %v452_v1 }
  0xb5   :  { %476 = vmatpush.msra.mxu3 %v451_v2  ;;  %v548_v2 = vld [vmem:[%s1052_s0] sm:$0xff] }
  0xb6   :  { %v279_v3 = vpop.f32.mrf.mxu1 }
  0xb7   :  { %v301_v38 = vmax.f32 %v299_v33, %v279_v3  ;;  %v450_v3 = vld [vmem:[%s1048_s10 + $0x8] sm:$0xff] }
  0xb8   :  { %477 = vmatpush.msra.mxu3 %v450_v3  ;;  %v549_v3 = vld [vmem:[%s1052_s0 + $0x8] sm:$0xff] }
  0xb9   :  { %v405_v4 = vpop.f32.mrf.mxu2 }
  0xba   :  { %v147_v5 = vpop.f32.mrf.mxu0  ;;  %v423_v47 = vmax.f32 %v421_v42, %v405_v4  ;;  %v449_v4 = vld [vmem:[%s1048_s10] sm:$0xff] }
  0xbb   :  { %v173_v16 = vmax.f32 %v171_v12, %v147_v5  ;;  %478 = vmatpush.msra.mxu3 %v449_v4 }
  0xbe   :  { %v282_v7 = vpop.f32.mrf.mxu1 }
  0xbf   :  { %v302_v23 = vmax.f32 %v300_v20, %v282_v7 }
  0xc1   :  { %v408_v9 = vpop.f32.mrf.mxu2 }
  0xc2   :  { %v150_v10 = vpop.f32.mrf.mxu0  ;;  %v424_v54 = vmax.f32 %v422_v49, %v408_v9 }
  0xc3   :  { %v174_v29 = vmax.f32 %v172_v21, %v150_v10 }
  0xc6   :  { %v285_v14 = vpop.f32.mrf.mxu1 }
  0xc7   :  { %v303_v44 = vmax.f32 %v301_v38, %v285_v14 }
  0xc9   :  { %v411_v18 = vpop.f32.mrf.mxu2 }
  0xca   :  { %v153_v19 = vpop.f32.mrf.mxu0  ;;  %v425_v53 = vmax.f32 %v423_v47, %v411_v18 }
  0xcb   :  { %v175_v22 = vmax.f32 %v173_v16, %v153_v19 }
  0xcd   :  { %v177_v24 = vmax.f32 %v175_v22, %v159_v0 }
  0xce   :  { %v288_v26 = vpop.f32.mrf.mxu1 }
  0xcf   :  { %v179_v30 = vmax.f32 %v177_v24, %v165_v13  ;;  %v304_v31 = vmax.f32 %v302_v23, %v288_v26 }
  0xd1   :  { %v306_v34 = vmax.f32 %v304_v31, %v294_v27  ;;  %v414_v35 = vpop.f32.mrf.mxu2  ;;  %v185_v36 = vadd.f32 %v687_v25, %v179_v30 }
  0xd2   :  { %v156_v37 = vpop.f32.mrf.mxu0  ;;  %v426_v58 = vmax.f32 %v424_v54, %v414_v35 }
  0xd3   :  { %v176_v39 = vmax.f32 %v174_v29, %v156_v37  ;;  %v312_v40 = vadd.f32 %v688_v32, %v306_v34  ;;  %v187_v41 = vmax.f32 %v185_v36, 0.0 }
  0xd4   :  { %v432_v63 = vadd.f32 %v686_v52, %v426_v58 }
  0xd5   :  { %v178_v45 = vmax.f32 %v176_v39, %v162_v6  ;;  %v314_v46 = vmax.f32 %v312_v40, 0.0  ;;  %190 = vst.msk [vmem:[#allocation2 + $0x8] sm:$0xff] %vm188_vm3, %v187_v41  ;;  %v557_v40 = vld [vmem:[%s1050_s13 + $0x18] sm:$0xff]  ;;  %v556_v41 = vld [vmem:[%s1050_s13 + $0x10] sm:$0xff] }
  0xd6   :  { %v291_v48 = vpop.f32.mrf.mxu1  ;;  %v434_v0 = vmax.f32 %v432_v63, 0.0  ;;  %580 = vmatpush.msrb.mxu3 %v557_v40  ;;  %v551_v63 = vld [vmem:[%s1051_s12 + $0x8] sm:$0xff] }
  0xd7   :  { %v184_v50 = vadd.f32 %v687_v25, %v178_v45  ;;  %v305_v51 = vmax.f32 %v303_v44, %v291_v48  ;;  %319 = vrot.lane.b32.xlu1 %v314_v46, %s699_s7  ;;  %v554_v45 = vld [vmem:[%s1050_s13] sm:$0xff] }
  0xd8   :  { %581 = vmatpush.msrb.mxu3 %v556_v41 }
  0xd9   :  { %v186_v56 = vmax.f32 %v184_v50, 0.0  ;;  %v417_v57 = vpop.f32.mrf.mxu2  ;;  %v311_v59 = vadd.f32 %v688_v32, %v305_v51 }
  0xda   :  { %v427_v55 = vmax.f32 %v425_v53, %v417_v57  ;;  %582 = vmatpush.msrb.mxu3 %v555_v43 }
  0xdb   :  { %v313_v60 = vmax.f32 %v311_v59, 0.0  ;;  %189 = vst.msk [vmem:[#allocation2] sm:$0xff] %vm188_vm3, %v186_v56 }
  0xdc   :  { %v433_v61 = vadd.f32 %v686_v52, %v427_v55  ;;  %583 = vmatpush.msrb.mxu3 %v554_v45 }
  0xdd   :  { %317 = vrot.lane.b32.xlu0 %v313_v60, %s699_s7  ;;  %v553_v60 = vld [vmem:[%s1051_s12 + $0x18] sm:$0xff] }
  0xde   :  { %v435_v62 = vmax.f32 %v433_v61, 0.0  ;;  %v552_v61 = vld [vmem:[%s1051_s12 + $0x10] sm:$0xff] }
  0xe0   :  { %440 = vrot.lane.b32.xlu1 %v435_v62, %s700_s5 }
  0xe5   :  { %438 = vrot.lane.b32.xlu0 %v434_v0, %s700_s5  ;;  %v550_v0 = vld [vmem:[%s1051_s12] sm:$0xff] }
 0x149   :  { %v320_v5 = vpop.permute.xlu1 %319 }
 0x14a   :  { %325 = vst.msk [vmem:[#allocation2 + $0x8] sm:$0xff] %vm323_vm4, %v320_v5 }
 0x14f   :  { %v318_v6 = vpop.permute.xlu0 %317 }
 0x150   :  { %324 = vst.msk [vmem:[#allocation2] sm:$0xff] %vm323_vm4, %v318_v6  ;;  %v690_v6 = vld [vmem:[%s1053_s14] ss:$0 sm:$0xff] }
 0x152   :  { %v441_v7 = vpop.permute.xlu1 %440 }
 0x153   :  { %446 = vst.msk [vmem:[#allocation2 + $0x8] sm:$0xff] %vm444_vm5, %v441_v7 }
 0x157   :  { %v439_v8 = vpop.permute.xlu0 %438 }
 0x158   :  { %445 = vst.msk [vmem:[#allocation2] sm:$0xff] %vm444_vm5, %v439_v8 }
 0x15a   :  { %v448_v9 = vld [vmem:[#allocation2 + $0x8] sm:$0xff] }
 0x15b   :  { %528 = vrot.lane.b32.xlu0 %v448_v9, %s701_s6 }
 0x15f   :  { %v447_v10 = vld [vmem:[#allocation2] sm:$0xff] }
 0x160   :  { %526 = vrot.lane.b32.xlu2 %v447_v10, %s701_s6  ;;  %668 = vmatmul.msk.f32.vlgmr.msra.gmra.mxu3 %vm207_vm1, %v447_v10 }
 0x161   :  { %609 = vmatpush.msra.mxu3 %v553_v60 }
 0x163   :  { %610 = vmatpush.msra.mxu3 %v552_v61 }
 0x165   :  { %611 = vmatpush.msra.mxu3 %v551_v63 }
 0x167   :  { %612 = vmatpush.msra.mxu3 %v550_v0 }
 0x168   :  { %669 = vmatmul.msk.f32.gmra.mxu3 %vm207_vm1, %v448_v9 }
 0x1ba   :  { %v527_v29 = vpop.permute.xlu2 %526 }
 0x1cd   :  { %v529_v57 = vpop.permute.xlu0 %528 }
 0x1e3   :  { %v480_v12 = vpop.f32.mrf.mxu3 }
 0x1e4   :  { %v481_v13 = vadd.f32 %v689_v11, %v480_v12 }
 0x1e6   :  { %v486_v14 = vmax.f32 %v481_v13, 0.0  ;;  %v670_v18 = vmul.f32 -1.442695, %v481_v13 }
 0x1e8   :  { %538 = vrot.lane.b32.xlu2 %v486_v14, %s701_s6  ;;  %691 = vpow2.f32 %v670_v18 }
 0x1eb   :  { %v483_v15 = vpop.f32.mrf.mxu3 }
 0x1ec   :  { %v484_v16 = vadd.f32 %v689_v11, %v483_v15 }
 0x1ee   :  { %v487_v17 = vmax.f32 %v484_v16, 0.0  ;;  %v692_v19 = vpop.eup %691  ;;  %v671_v24 = vmul.f32 -1.442695, %v484_v16 }
 0x1ef   :  { %v494_v20 = vadd.f32 1.0, %v692_v19 }
 0x1f0   :  { %540 = vrot.lane.b32.xlu1 %v487_v17, %s701_s6 }
 0x1f1   :  { %693 = vrcp.f32 %v494_v20  ;;  %v507_v27 = vand.u32 2147483648, %v494_v20  ;;  %vm501_vm7 = vweird.f32 %v494_v20  ;;  %v505_v28 = vand.u32 2147483647, %v494_v20 }
 0x1f2   :  { %695 = vpow2.f32 %v671_v24 }
 0x1f3   :  { %v508_v32 = vor.u32 1.1754944e-38, %v507_v27  ;;  %vm506_vm9 = vcmp.eq.f32.partialorder %v505_v28, 8.507059e+37 }
 0x1f7   :  { %v694_v21 = vpop.eup %693 }
 0x1f8   :  { %v497_v22 = vmul.f32 %v694_v21, %v494_v20  ;;  %vm502_vm6 = vweird.f32 %v694_v21  ;;  %v696_v30 = vpop.eup %695 }
 0x1f9   :  { %vm503_vm8 = vmor %vm501_vm7, %vm502_vm6  ;;  %v495_v33 = vadd.f32 1.0, %v696_v30 }
 0x1fa   :  { %v498_v23 = vsub.f32 1.0, %v497_v22 }
 0x1fb   :  { %697 = vrcp.f32 %v495_v33  ;;  %v522_v49 = vand.u32 2147483648, %v495_v33  ;;  %vm516_vm11 = vweird.f32 %v495_v33  ;;  %v520_v50 = vand.u32 2147483647, %v495_v33 }
 0x1fc   :  { %v499_v25 = vmul.f32 %v694_v21, %v498_v23 }
 0x1fd   :  { %v523_v53 = vor.u32 1.1754944e-38, %v522_v49  ;;  %vm521_vm13 = vcmp.eq.f32.partialorder %v520_v50, 8.507059e+37 }
 0x1fe   :  { %v500_v26 = vadd.f32 %v694_v21, %v499_v25 }
 0x200   :  { %v504_v31 = vsel %vm503_vm8, %v694_v21, %v500_v26 }
 0x201   :  { %v509_v34 = vsel %vm506_vm9, %v508_v32, %v504_v31  ;;  %v698_v42 = vpop.eup %697 }
 0x202   :  { %v534_v35 = vsub.f32 1.0, %v509_v34  ;;  %v532_v37 = vmul.f32 %v527_v29, %v509_v34  ;;  %v512_v44 = vmul.f32 %v698_v42, %v495_v33  ;;  %vm517_vm10 = vweird.f32 %v698_v42 }
 0x203   :  { %vm518_vm12 = vmor %vm516_vm11, %vm517_vm10 }
 0x204   :  { %v513_v46 = vsub.f32 1.0, %v512_v44 }
 0x206   :  { %v514_v47 = vmul.f32 %v698_v42, %v513_v46 }
 0x208   :  { %v515_v48 = vadd.f32 %v698_v42, %v514_v47 }
 0x20a   :  { %v519_v51 = vsel %vm518_vm12, %v698_v42, %v515_v48 }
 0x20b   :  { %v524_v54 = vsel %vm521_vm13, %v523_v53, %v519_v51 }
 0x20c   :  { %v535_v56 = vsub.f32 1.0, %v524_v54  ;;  %v533_v52 = vmul.f32 %v529_v57, %v524_v54 }
 0x242   :  { %v539_v36 = vpop.permute.xlu2 %538 }
 0x243   :  { %v544_v38 = vmul.f32 %v539_v36, %v534_v35 }
 0x245   :  { %v546_v39 = vadd.f32 %v544_v38, %v532_v37 }
 0x247   :  { %560 = vrot.lane.b32.xlu2 %v546_v39, %s702_s11 }
 0x262   :  { %v541_v59 = vpop.permute.xlu1 %540 }
 0x263   :  { %v545_v55 = vmul.f32 %v541_v59, %v535_v56 }
 0x265   :  { %v547_v58 = vadd.f32 %v545_v55, %v533_v52 }
 0x267   :  { %562 = vrot.lane.b32.xlu0 %v547_v58, %s702_s11 }
 0x2a1   :  { %v561_v62 = vpop.permute.xlu2 %560 }
 0x2a2   :  { %672 = vmatmul.msk.f32.vlgmr.msrb.gmra.mxu3 %vm207_vm1, %v561_v62 }
 0x2d9   :  { %v563_v1 = vpop.permute.xlu0 %562 }
 0x2da   :  { %673 = vmatmul.msk.f32.gmra.mxu3 %vm207_vm1, %v563_v1 }
 0x2e2   :  { %674 = vmatmul.msk.f32.vlgmr.msra.gmra.mxu3 %vm207_vm1, %v548_v2 }
 0x2ea   :  { %675 = vmatmul.msk.f32.gmra.mxu3 %vm207_vm1, %v549_v3 }
 0x325   :  { %v585_v4 = vpop.f32.mrf.mxu3 }
 0x35d   :  { %v588_v5 = vpop.f32.mrf.mxu3 }
 0x365   :  { %v614_v7 = vpop.f32.mrf.mxu3 }
 0x366   :  { %v615_v8 = vadd.f32 %v614_v7, %v585_v4 }
 0x368   :  { %v624_v9 = vadd.f32 %v690_v6, %v615_v8 }
 0x36a   :  { %626 = vst.msk [vmem:[%s1054_s15] sm:$0xff] %vm207_vm1, %v624_v9 }
 0x36d   :  { %v617_v10 = vpop.f32.mrf.mxu3 }
 0x36e   :  { %v618_v11 = vadd.f32 %v617_v10, %v588_v5 }
 0x370   :  { %v625_v12 = vadd.f32 %v690_v6, %v618_v11 }
 0x372   :  { %627 = vst.msk [vmem:[%s1054_s15 + $0x8] sm:$0xff] %vm207_vm1, %v625_v12 }

// kernel: elmo_forward.4
= control target key start
LH: loop header
LB: loop body
LE: loop exit
PB: predicated region body
PF: predicated region fallthrough
CT: control target
= control target key end

     0   :  { %s2114_s21 = smov 0   ;;  %s2561_s0 = inlined_call_operand.vmem [shape: f32[2,16,32], index: 0, kind: input, shape index: {}]   ;;  %s2562_s1 = inlined_call_operand.vmem [shape: f32[2,16,1], index: 1, kind: input, shape index: {}]   ;;  %s2563_s2 = inlined_call_operand.vmem [shape: f32[2,32,256], index: 2, kind: input, shape index: {}]   ;;  %s2564_s3 = inlined_call_operand.vmem [shape: f32[2,32,256], index: 3, kind: input, shape index: {}]   ;;  %s2565_s4 = inlined_call_operand.vmem [shape: f32[2,1,256], index: 4, kind: input, shape index: {}]   ;;  %s2566_s5 = inlined_call_operand.vmem [shape: f32[2,64,32], index: 5, kind: input, shape index: {}]   ;;  %s2567_s6 = inlined_call_operand.vmem [shape: f32[2,16,32], index: 6, kind: output, shape index: {}]  }
   0x1 LB: > { %s1864_s22 = sadd.s32 4294967295, %s2074_s21   ;;  %p1868_p0 = scmp.ge.s32.totalorder %s2074_s21, 1  ;;  %s2074_s21 = sphi %s2114_s21, %s16_s21  }
   0x2   : > { %p261_p1 = scmp.lt.s32.totalorder %s2074_s21, 3 }
   0x4   : > { %p262_p2 = pnand %p1868_p0, %p261_p1 }
   0x5   : > { %p315_p3 = scmp.lt.s32.totalorder (!%p262_p2), %s1864_s22, 1  ;;  %s2077_s10 = smov (!%p262_p2), 64  }
   0x6   : > { %265 = sbr.rel (%p262_p2) target bundleno = 5159 (0x1427), region = 44 }
   0xb   : > { %vm422_vm0 = vcmask 254976   ;;  %vm424_vm1 = vcmask 517120   ;;  %v2076_v0 = vmov 0.0   ;;  %s2569_s22 = smov (!%p315_p3, %s1864_s22), 1  ;;  %vm365_vm2 = vcmask 261120  }
   0xc   : > { %423 = vst.msk [vmem:[#allocation3] sm:$0x3] %vm422_vm0, %v2076_v0  ;;  %s2127_s23 = sshll.u32 %s2569_s22, 6  ;;  %s2130_s24 = sshll.u32 %s2569_s22, 4  ;;  %v2078_v31 = vmov 0   ;;  %vm554_vm11 = vcmask 523264  }
   0xd   : > { %425 = vst.msk [vmem:[#allocation4] sm:$0x3] %vm424_vm1, %v2076_v0  ;;  %s2136_s27 = scalar_lea.vmem %s2563_s2, %s2127_s23  ;;  %s2142_s30 = scalar_lea.vmem %s2564_s3, %s2127_s23  ;;  %1961 = vset.pattern.permute.xlu2 %v2078_v31  ;;  %1962 = vset.pattern.permute.xlu1 %v2078_v31 }
   0xe   : > { %v357_v1 = vld [vmem:[%s2136_s27 + $0x30] sm:$0xff]  ;;  %v355_v2 = vld [vmem:[%s2136_s27 + $0x20] sm:$0xff]  ;;  %s2158_s9 = scalar_lea.vmem %s2561_s0, %s2130_s24  ;;  %v358_v7 = vld [vmem:[%s2136_s27 + $0x38] sm:$0xff]  ;;  %s1877_s11 = sshll.u32 %s2569_s22, 1  ;;  %1963 = vset.pattern.permute.xlu0 %v2078_v31 }
   0xf   : > { %384 = vmatpush.msra.mxu0 %v357_v1  ;;  %v2147_v3 = vld [vmem:[%s2142_s30 + $0x30] sm:$0xff]  ;;  %v2150_v4 = vld [vmem:[%s2142_s30 + $0x20] sm:$0xff]  ;;  %v356_v8 = vld [vmem:[%s2136_s27 + $0x28] sm:$0xff]  ;;  %407 = vmatpush.msra.mxu1 %v358_v7  ;;  %s338_s14 = scalar_lea.vmem %s2565_s4, %s1877_s11  ;;  %s2235_s17 = scalar_lea.vmem %s2562_s1, %s2130_s24 }
  0x10   : > { %v353_v5 = vld [vmem:[%s2136_s27 + $0x10] sm:$0xff]  ;;  %463 = vmatpush.msra.mxu2 %v2147_v3  ;;  %v351_v9 = vld [vmem:[%s2136_s27] sm:$0xff]  ;;  %v2168_v10 = vld [vmem:[%s2142_s30 + $0x38] sm:$0xff]  ;;  %s343_s20 = scalar_lea.vmem %s2566_s5, %s2127_s23  ;;  %s2319_s25 = scalar_lea.vmem %s2567_s6, %s2130_s24 }
  0x11   : > { %385 = vmatpush.msra.mxu0 %v355_v2  ;;  %v2161_v6 = vld [vmem:[%s2142_s30 + $0x10] sm:$0xff]  ;;  %v349_v11 = vld [vmem:[%s2158_s9] sm:$0xff]  ;;  %483 = vmatpush.msra.mxu3 %v2168_v10  ;;  %v2176_v13 = vld [vmem:[%s2142_s30 + $0x28] sm:$0xff] }
  0x12   : > { %464 = vmatpush.msra.mxu2 %v2150_v4  ;;  %v2172_v12 = vld [vmem:[%s2142_s30] sm:$0xff]  ;;  %408 = vmatpush.msra.mxu1 %v356_v8  ;;  %v354_v15 = vld [vmem:[%s2136_s27 + $0x18] sm:$0xff]  ;;  %v352_v18 = vld [vmem:[%s2136_s27 + $0x8] sm:$0xff] }
  0x13   : > { %386 = vmatpush.msra.mxu0 %v353_v5  ;;  %v2179_v14 = vld [vmem:[#allocation3] sm:$0x3]  ;;  %484 = vmatpush.msra.mxu3 %v2176_v13  ;;  %v2184_v16 = vld [vmem:[%s2142_s30 + $0x18] sm:$0xff]  ;;  %v2194_v19 = vld [vmem:[%s2142_s30 + $0x8] sm:$0xff] }
  0x14   : > { %465 = vmatpush.msra.mxu2 %v2161_v6  ;;  %v2186_v17 = vld [vmem:[#allocation4] sm:$0x3]  ;;  %409 = vmatpush.msra.mxu1 %v354_v15  ;;  %v2223_v20 = vld [vmem:[%s338_s14] sm:$0x3]  ;;  %v2256_v5 = vld [vmem:[%s343_s20 + $0x38] sm:$0xff] }
  0x15   : > { %387 = vmatpush.msra.mxu0 %v351_v9  ;;  %485 = vmatpush.msra.mxu3 %v2184_v16  ;;  %v361_v21 = vperm.slane %v2223_v20, 0  ;;  %v362_v24 = vperm.slane %v2223_v20, 1  ;;  %v442_v30 = vld [vmem:[%s2235_s17] sm:$0x3]  ;;  %v2258_v7 = vld [vmem:[%s343_s20 + $0x30] sm:$0xff]  ;;  %v350_v8 = vld [vmem:[%s2158_s9 + $0x8] sm:$0xff] }
  0x16   : > { %1882 = vmatmul.msk.f32.vlgmr.msra.gmra.mxu0 %vm365_vm2, %v349_v11  ;;  %466 = vmatpush.msra.mxu2 %v2172_v12  ;;  %v443_v33 = vsub.f32 1.0, %v442_v30  ;;  %v2263_v9 = vld [vmem:[%s343_s20 + $0x28] sm:$0xff]  ;;  %v2269_v15 = vld [vmem:[%s343_s20 + $0x20] sm:$0xff] }
  0x17   : > { %1886 = vmatmul.msk.f32.vlgmr.msra.gmra.mxu2 %vm365_vm2, %v2179_v14  ;;  %534 = vrot.lane.b32.xlu0 %v2186_v17, %s2077_s10 }
  0x18   : > { %410 = vmatpush.msra.mxu1 %v352_v18  ;;  %619 = vmatpush.msrb.mxu2 %v2147_v3  ;;  %v2273_v18 = vld [vmem:[%s343_s20 + $0x18] sm:$0xff] }
  0x19   : > { %1884 = vmatmul.msk.f32.vlgmr.msra.gmra.mxu1 %vm365_vm2, %v349_v11  ;;  %486 = vmatpush.msra.mxu3 %v2194_v19 }
  0x1a   : > { %1887 = vmatmul.msk.f32.vlgmr.msra.gmra.mxu3 %vm365_vm2, %v2179_v14  ;;  %620 = vmatpush.msrb.mxu2 %v2150_v4 }
  0x1b   : > { %639 = vmatpush.msrb.mxu3 %v2168_v10  ;;  %581 = vperm.xlu2 %1961, %v442_v30  }
  0x1c   : > { %621 = vmatpush.msrb.mxu2 %v2161_v6  ;;  %565 = vmatpush.msrb.mxu0 %v2256_v5 }
  0x1d   : > { %640 = vmatpush.msrb.mxu3 %v2176_v13  ;;  %728 = vmatpush.msrb.mxu1 %v2256_v5 }
  0x1e   : > { %622 = vmatpush.msrb.mxu2 %v2172_v12  ;;  %1883 = vmatmul.msk.f32.gmra.mxu0 %vm365_vm2, %v350_v8 }
  0x1f   : > { %641 = vmatpush.msrb.mxu3 %v2184_v16  ;;  %566 = vmatpush.msrb.mxu0 %v2258_v7 }
  0x20   : > { %785 = vmatpush.msra.mxu2 %v2147_v3  ;;  %729 = vmatpush.msrb.mxu1 %v2258_v7 }
  0x21   : > { %642 = vmatpush.msrb.mxu3 %v2194_v19  ;;  %1885 = vmatmul.msk.f32.gmra.mxu1 %vm365_vm2, %v350_v8 }
  0x22   : > { %786 = vmatpush.msra.mxu2 %v2150_v4  ;;  %567 = vmatpush.msrb.mxu0 %v2263_v9 }
  0x23   : > { %805 = vmatpush.msra.mxu3 %v2168_v10  ;;  %587 = vperm.xlu2 %1961, %v443_v33  }
  0x24   : > { %787 = vmatpush.msra.mxu2 %v2161_v6  ;;  %730 = vmatpush.msrb.mxu1 %v2263_v9 }
  0x25   : > { %806 = vmatpush.msra.mxu3 %v2176_v13  ;;  %568 = vmatpush.msrb.mxu0 %v2269_v15 }
  0x26   : > { %788 = vmatpush.msra.mxu2 %v2172_v12  ;;  %731 = vmatpush.msrb.mxu1 %v2269_v15 }
  0x27   : > { %807 = vmatpush.msra.mxu3 %v2184_v16  ;;  %569 = vmatpush.msrb.mxu0 %v2273_v18 }
  0x28   : > { %732 = vmatpush.msrb.mxu1 %v2273_v18 }
  0x29   : > { %808 = vmatpush.msra.mxu3 %v2194_v19 }
  0x75   : > { %v2239_v51 = vpop.permute.xlu2 %581 }
  0x7d   : > { %v2241_v55 = vpop.permute.xlu2 %587 }
  0x7e   : > { %v590_v58 = vmul.f32 %v2241_v55, %v2186_v17 }
  0x89   : > { %v535_v43 = vpop.permute.xlu0 %534 }
  0x93   : > { %v389_v22 = vpop.f32.mrf.mxu0 }
  0x94   : > { %v390_v23 = vadd.f32 %v389_v22, %v361_v21  ;;  %v2277_v22 = vld [vmem:[%s343_s20 + $0x10] sm:$0xff] }
  0x95   : > { %570 = vmatpush.msrb.mxu0 %v2277_v22  ;;  %733 = vmatpush.msrb.mxu1 %v2277_v22 }
  0x96   : > { %418 = vst [vmem:[#allocation2 + $0x10] sm:$0xff] %v390_v23  ;;  %v412_v25 = vpop.f32.mrf.mxu1 }
  0x97   : > { %v413_v26 = vadd.f32 %v412_v25, %v362_v24  ;;  %v2281_v25 = vld [vmem:[%s343_s20 + $0x8] sm:$0xff] }
  0x98   : > { %571 = vmatpush.msrb.mxu0 %v2281_v25  ;;  %734 = vmatpush.msrb.mxu1 %v2281_v25 }
  0x99   : > { %419 = vst [vmem:[#allocation2] sm:$0xff] %v413_v26  ;;  %v2285_v26 = vld [vmem:[%s343_s20] sm:$0xff] }
  0x9a   : > { %v468_v27 = vpop.f32.mrf.mxu2  ;;  %572 = vmatpush.msrb.mxu0 %v2285_v26  ;;  %735 = vmatpush.msrb.mxu1 %v2285_v26 }
  0x9c   : > { %894 = vmatpush.msra.mxu0 %v2256_v5  ;;  %951 = vmatpush.msra.mxu1 %v2147_v3 }
  0x9d   : > { %v446_v28 = vld [vmem:[#allocation2 + $0x10] sm:$0x3]  ;;  %v488_v49 = vpop.f32.mrf.mxu3 }
  0x9e   : > { %v491_v29 = vadd.f32 %v468_v27, %v446_v28  ;;  %895 = vmatpush.msra.mxu0 %v2258_v7  ;;  %952 = vmatpush.msra.mxu1 %v2150_v4 }
  0xa0   : > { %v1888_v32 = vmul.f32 -1.442695, %v491_v29  ;;  %v447_v48 = vld [vmem:[#allocation2] sm:$0x3]  ;;  %896 = vmatpush.msra.mxu0 %v2263_v9  ;;  %953 = vmatpush.msra.mxu1 %v2161_v6 }
  0xa1   : > { %v492_v50 = vadd.f32 %v488_v49, %v447_v48 }
  0xa2   : > { %1964 = vpow2.f32 %v1888_v32  ;;  %897 = vmatpush.msra.mxu0 %v2269_v15  ;;  %954 = vmatpush.msra.mxu1 %v2172_v12 }
  0xa3   : > { %v1889_v0 = vmul.f32 -1.442695, %v492_v50 }
  0xa4   : > { %898 = vmatpush.msra.mxu0 %v2273_v18 }
  0xa6   : > { %899 = vmatpush.msra.mxu0 %v2277_v22 }
  0xa8   : > { %v1965_v34 = vpop.eup %1964  ;;  %900 = vmatpush.msra.mxu0 %v2281_v25 }
  0xa9   : > { %v496_v35 = vadd.f32 1.0, %v1965_v34 }
  0xaa   : > { %901 = vmatpush.msra.mxu0 %v2285_v26 }
  0xab   : > { %1966 = vrcp.f32 %v496_v35  ;;  %v508_v39 = vand.u32 2147483648, %v496_v35  ;;  %v506_v41 = vand.u32 2147483647, %v496_v35  ;;  %vm502_vm4 = vweird.f32 %v496_v35 }
  0xac   : > { %1968 = vtanh.f32 %v492_v50 }
  0xad   : > { %v509_v44 = vor.u32 1.1754944e-38, %v508_v39  ;;  %vm507_vm6 = vcmp.eq.f32.partialorder %v506_v41, 8.507059e+37 }
  0xb1   : > { %v1967_v36 = vpop.eup %1966 }
  0xb2   : > { %v498_v37 = vmul.f32 %v1967_v36, %v496_v35  ;;  %vm503_vm3 = vweird.f32 %v1967_v36  ;;  %v1969_v52 = vpop.eup %1968 }
  0xb3   : > { %vm504_vm5 = vmor %vm502_vm4, %vm503_vm3 }
  0xb4   : > { %v499_v38 = vsub.f32 1.0, %v498_v37 }
  0xb6   : > { %v500_v40 = vmul.f32 %v1967_v36, %v499_v38 }
  0xb8   : > { %v501_v42 = vadd.f32 %v1967_v36, %v500_v40  ;;  %v594_v40 = vmul.f32 %v2241_v55, %v2179_v14 }
  0xba   : > { %v505_v45 = vsel %vm504_vm5, %v1967_v36, %v501_v42  ;;  %v392_v36 = vpop.f32.mrf.mxu0 }
  0xbb   : > { %v510_v46 = vsel %vm507_vm6, %v509_v44, %v505_v45  ;;  %v393_v37 = vadd.f32 %v392_v36, %v361_v21  ;;  %v602_v45 = vld [vmem:[#allocation2 + $0x10] sm:$0xc] }
  0xbc   : > { %v537_v47 = vmul.f32 %v535_v43, %v510_v46  ;;  %v532_v53 = vmul.f32 %v1969_v52, %v510_v46 }
  0xbd   : > { %420 = vst [vmem:[#allocation2 + $0x18] sm:$0xff] %v393_v37 }
  0xbe   : > { %539 = vrot.lane.b32.xlu0 %v537_v47, %s2077_s10 }
 0x130   : > { %v540_v54 = vpop.permute.xlu0 %539 }
 0x131   : > { %v542_v56 = vadd.f32 %v540_v54, %v532_v53 }
 0x133   : > { %v1890_v57 = vclamps-f32 %v542_v56, 3.0 }
 0x135   : > { %1970 = vtanh.f32 %v1890_v57  ;;  %v584_v59 = vmul.f32 %v1890_v57, %v2239_v51 }
 0x136   : > { %1972 = vpow2.f32 %v1889_v0 }
 0x137   : > { %v591_v60 = vadd.f32 %v590_v58, %v584_v59 }
 0x139   : > { %592 = vst.msk [vmem:[#allocation4] sm:$0x3] %vm424_vm1, %v591_v60 }
 0x13b   : > { %v1971_v61 = vpop.eup %1970 }
 0x13c   : > { %547 = vrot.lane.b32.xlu1 %v1971_v61, %s2077_s10  ;;  %v1973_v1 = vpop.eup %1972 }
 0x13d   : > { %v516_v2 = vadd.f32 1.0, %v1973_v1 }
 0x13f   : > { %1974 = vrcp.f32 %v516_v2  ;;  %vm522_vm7 = vweird.f32 %v516_v2  ;;  %v528_v28 = vand.u32 2147483648, %v516_v2  ;;  %v526_v30 = vand.u32 2147483647, %v516_v2 }
 0x140   : > { %v2248_v62 = vld [vmem:[#allocation4] sm:$0x3] }
 0x141   : > { %v696_v63 = vrot.slane %v2248_v62, 6  ;;  %v529_v31 = vor.u32 1.1754944e-38, %v528_v28  ;;  %vm527_vm10 = vcmp.eq.f32.partialorder %v526_v30, 8.507059e+37 }
 0x143   : > { %697 = vrot.lane.b32.xlu0 %v696_v63, %s2077_s10  ;;  %v598_v63 = vld [vmem:[%s2235_s17 + $0x2] sm:$0x3] }
 0x144   : > { %v599_v30 = vsub.f32 1.0, %v598_v63 }
 0x145   : > { %v1975_v11 = vpop.eup %1974 }
 0x146   : > { %v518_v17 = vmul.f32 %v1975_v11, %v516_v2  ;;  %vm523_vm8 = vweird.f32 %v1975_v11  ;;  %v603_v2 = vld [vmem:[#allocation2] sm:$0xc] }
 0x147   : > { %vm524_vm9 = vmor %vm522_vm7, %vm523_vm8 }
 0x148   : > { %v519_v23 = vsub.f32 1.0, %v518_v17 }
 0x14a   : > { %v520_v27 = vmul.f32 %v1975_v11, %v519_v23 }
 0x14c   : > { %v521_v29 = vadd.f32 %v1975_v11, %v520_v27 }
 0x14e   : > { %v525_v32 = vsel %vm524_vm9, %v1975_v11, %v521_v29 }
 0x14f   : > { %v530_v33 = vsel %vm527_vm10, %v529_v31, %v525_v32 }
 0x1ae   : > { %v548_v34 = vpop.permute.xlu1 %547 }
 0x1af   : > { %v550_v35 = vmul.f32 %v548_v34, %v530_v33 }
 0x1b1   : > { %552 = vrot.lane.b32.xlu1 %v550_v35, %s2077_s10 }
 0x1b5   : > { %v698_v59 = vpop.permute.xlu0 %697 }
 0x223   : > { %v553_v38 = vpop.permute.xlu1 %552 }
 0x224   : > { %1891 = vmatmul.msk.f32.vlgmr.msrb.gmra.mxu0 %vm554_vm11, %v553_v38 }
 0x225   : > { %1218 = vmatpush.msrb.mxu0 %v2256_v5 }
 0x227   : > { %1219 = vmatpush.msrb.mxu0 %v2258_v7 }
 0x229   : > { %1220 = vmatpush.msrb.mxu0 %v2263_v9 }
 0x22b   : > { %1221 = vmatpush.msrb.mxu0 %v2269_v15 }
 0x22d   : > { %1222 = vmatpush.msrb.mxu0 %v2273_v18 }
 0x22f   : > { %1223 = vmatpush.msrb.mxu0 %v2277_v22 }
 0x231   : > { %1224 = vmatpush.msrb.mxu0 %v2281_v25 }
 0x233   : > { %1225 = vmatpush.msrb.mxu0 %v2285_v26 }
 0x2a1   : > { %v574_v21 = vpop.f32.mrf.mxu0 }
 0x2a2   : > { %v1892_v39 = vclamps-f32 %v574_v21, 3.0 }
 0x2a4   : > { %v593_v41 = vmul.f32 %v1892_v39, %v2239_v51 }
 0x2a6   : > { %v595_v42 = vadd.f32 %v594_v40, %v593_v41  ;;  %597 = vst.msk [vmem:[%s2319_s25] sm:$0x3] %vm422_vm0, %v593_v41 }
 0x2a8   : > { %596 = vst.msk [vmem:[#allocation3] sm:$0x3] %vm422_vm0, %v595_v42 }
 0x2af   : > { %v2327_v43 = vld [vmem:[#allocation3] sm:$0x3] }
 0x2b0   : > { %1893 = vmatmul.msk.f32.vlgmr.msrb.gmra.mxu2 %vm365_vm2, %v2327_v43  ;;  %1894 = vmatmul.msk.f32.vlgmr.msrb.gmra.mxu3 %vm365_vm2, %v2327_v43 }
 0x2b1   : > { %971 = vmatpush.msrb.mxu2 %v2168_v10  ;;  %1060 = vmatpush.msrb.mxu3 %v2256_v5 }
 0x2b3   : > { %972 = vmatpush.msrb.mxu2 %v2176_v13  ;;  %1061 = vmatpush.msrb.mxu3 %v2258_v7 }
 0x2b5   : > { %973 = vmatpush.msrb.mxu2 %v2184_v16  ;;  %1062 = vmatpush.msrb.mxu3 %v2263_v9 }
 0x2b7   : > { %974 = vmatpush.msrb.mxu2 %v2194_v19  ;;  %1063 = vmatpush.msrb.mxu3 %v2269_v15 }
 0x2b9   : > { %1064 = vmatpush.msrb.mxu3 %v2273_v18 }
 0x2bb   : > { %1065 = vmatpush.msrb.mxu3 %v2277_v22 }
 0x2bd   : > { %1066 = vmatpush.msrb.mxu3 %v2281_v25 }
 0x2bf   : > { %1067 = vmatpush.msrb.mxu3 %v2285_v26 }
 0x333   : > { %v624_v14 = vpop.f32.mrf.mxu2  ;;  %v644_v0 = vpop.f32.mrf.mxu3 }
 0x334   : > { %v649_v44 = vrot.slane %v624_v14, 6  ;;  %v650_v1 = vrot.slane %v644_v0, 6 }
 0x336   : > { %v653_v46 = vadd.f32 %v649_v44, %v602_v45  ;;  %v654_v8 = vadd.f32 %v650_v1, %v603_v2 }
 0x338   : > { %v1895_v47 = vmul.f32 -1.442695, %v653_v46  ;;  %v1896_v31 = vmul.f32 -1.442695, %v654_v8 }
 0x33a   : > { %1976 = vpow2.f32 %v1895_v47 }
 0x340   : > { %v1977_v48 = vpop.eup %1976 }
 0x341   : > { %v658_v49 = vadd.f32 1.0, %v1977_v48 }
 0x343   : > { %1978 = vrcp.f32 %v658_v49  ;;  %v670_v53 = vand.u32 2147483648, %v658_v49  ;;  %v668_v55 = vand.u32 2147483647, %v658_v49  ;;  %vm664_vm13 = vweird.f32 %v658_v49 }
 0x344   : > { %1980 = vtanh.f32 %v654_v8 }
 0x345   : > { %v671_v57 = vor.u32 1.1754944e-38, %v670_v53  ;;  %vm669_vm15 = vcmp.eq.f32.partialorder %v668_v55, 8.507059e+37 }
 0x349   : > { %v1979_v50 = vpop.eup %1978 }
 0x34a   : > { %v660_v51 = vmul.f32 %v1979_v50, %v658_v49  ;;  %vm665_vm12 = vweird.f32 %v1979_v50  ;;  %v1981_v11 = vpop.eup %1980 }
 0x34b   : > { %vm666_vm14 = vmor %vm664_vm13, %vm665_vm12 }
 0x34c   : > { %v661_v52 = vsub.f32 1.0, %v660_v51 }
 0x34e   : > { %v662_v54 = vmul.f32 %v1979_v50, %v661_v52 }
 0x350   : > { %v663_v56 = vadd.f32 %v1979_v50, %v662_v54  ;;  %v415_v54 = vpop.f32.mrf.mxu1 }
 0x351   : > { %v416_v55 = vadd.f32 %v415_v54, %v362_v24 }
 0x352   : > { %v667_v58 = vsel %vm666_vm14, %v1979_v50, %v663_v56 }
 0x353   : > { %v672_v60 = vsel %vm669_vm15, %v671_v57, %v667_v58  ;;  %421 = vst [vmem:[#allocation2 + $0x8] sm:$0xff] %v416_v55 }
 0x354   : > { %v700_v61 = vmul.f32 %v698_v59, %v672_v60  ;;  %v694_v17 = vmul.f32 %v1981_v11, %v672_v60 }
 0x356   : > { %702 = vrot.lane.b32.xlu1 %v700_v61, %s2077_s10  ;;  %v768_v61 = vld [vmem:[#allocation2 + $0x10] sm:$0x30] }
 0x35e   : > { %744 = vperm.xlu1 %1962, %v598_v63  }
 0x3c8   : > { %v703_v23 = vpop.permute.xlu1 %702 }
 0x3c9   : > { %v705_v27 = vadd.f32 %v703_v23, %v694_v17 }
 0x3cb   : > { %v1897_v28 = vclamps-f32 %v705_v27, 3.0 }
 0x3cd   : > { %1982 = vtanh.f32 %v1897_v28  ;;  %v748_v47 = vrot.slane %v1897_v28, 2 }
 0x3ce   : > { %1984 = vpow2.f32 %v1896_v31 }
 0x3d0   : > { %v745_v46 = vpop.permute.xlu1 %744 }
 0x3d1   : > { %v750_v49 = vmul.f32 %v748_v47, %v745_v46 }
 0x3d3   : > { %v1983_v29 = vpop.eup %1982 }
 0x3d4   : > { %710 = vrot.lane.b32.xlu2 %v1983_v29, %s2077_s10  ;;  %v1985_v32 = vpop.eup %1984 }
 0x3d5   : > { %v678_v33 = vadd.f32 1.0, %v1985_v32 }
 0x3d7   : > { %1986 = vrcp.f32 %v678_v33  ;;  %v690_v21 = vand.u32 2147483648, %v678_v33  ;;  %vm684_vm4 = vweird.f32 %v678_v33  ;;  %v688_v39 = vand.u32 2147483647, %v678_v33 }
 0x3d9   : > { %v691_v41 = vor.u32 1.1754944e-38, %v690_v21  ;;  %vm689_vm6 = vcmp.eq.f32.partialorder %v688_v39, 8.507059e+37 }
 0x3dc   : > { %753 = vperm.xlu2 %1961, %v599_v30  }
 0x3dd   : > { %v1987_v34 = vpop.eup %1986 }
 0x3de   : > { %v680_v35 = vmul.f32 %v1987_v34, %v678_v33  ;;  %vm685_vm3 = vweird.f32 %v1987_v34 }
 0x3df   : > { %vm686_vm5 = vmor %vm684_vm4, %vm685_vm3 }
 0x3e0   : > { %v681_v36 = vsub.f32 1.0, %v680_v35  ;;  %v764_v35 = vld [vmem:[%s2235_s17 + $0x4] sm:$0x3] }
 0x3e2   : > { %v682_v37 = vmul.f32 %v1987_v34, %v681_v36 }
 0x3e4   : > { %v683_v38 = vadd.f32 %v1987_v34, %v682_v37 }
 0x3e6   : > { %v687_v40 = vsel %vm686_vm5, %v1987_v34, %v683_v38  ;;  %v769_v38 = vld [vmem:[#allocation2] sm:$0x30] }
 0x3e7   : > { %v692_v42 = vsel %vm689_vm6, %v691_v41, %v687_v40 }
 0x42e   : > { %v711_v14 = vpop.permute.xlu2 %710 }
 0x42f   : > { %v713_v44 = vmul.f32 %v711_v14, %v692_v42 }
 0x431   : > { %v715_v45 = vrot.slane %v713_v44, 2 }
 0x433   : > { %716 = vrot.lane.b32.xlu0 %v715_v45, %s2077_s10  ;;  %v765_v45 = vsub.f32 1.0, %v764_v35 }
 0x436   : > { %v754_v48 = vpop.permute.xlu2 %753 }
 0x437   : > { %v756_v50 = vmul.f32 %v754_v48, %v2248_v62  ;;  %v760_v58 = vmul.f32 %v754_v48, %v2327_v43 }
 0x439   : > { %v757_v51 = vadd.f32 %v756_v50, %v750_v49 }
 0x43b   : > { %758 = vst.msk [vmem:[#allocation4] sm:$0x3] %vm424_vm1, %v757_v51 }
 0x442   : > { %v2351_v52 = vld [vmem:[#allocation4] sm:$0x3] }
 0x443   : > { %v862_v53 = vrot.slane %v2351_v52, 4 }
 0x445   : > { %863 = vrot.lane.b32.xlu0 %v862_v53, %s2077_s10 }
 0x4a5   : > { %v717_v56 = vpop.permute.xlu0 %716 }
 0x4a6   : > { %1898 = vmatmul.msk.f32.vlgmr.msrb.gmra.mxu1 %vm554_vm11, %v717_v56 }
 0x4a7   : > { %1117 = vmatpush.msrb.mxu1 %v2147_v3 }
 0x4a9   : > { %1118 = vmatpush.msrb.mxu1 %v2150_v4 }
 0x4ab   : > { %1119 = vmatpush.msrb.mxu1 %v2161_v6 }
 0x4ad   : > { %1120 = vmatpush.msrb.mxu1 %v2172_v12 }
 0x4b7   : > { %v864_v32 = vpop.permute.xlu0 %863 }
 0x523   : > { %v737_v62 = vpop.f32.mrf.mxu1 }
 0x524   : > { %v1899_v57 = vclamps-f32 %v737_v62, 3.0 }
 0x526   : > { %v759_v59 = vmul.f32 %v1899_v57, %v745_v46 }
 0x528   : > { %v761_v60 = vadd.f32 %v760_v58, %v759_v59  ;;  %763 = vst.msk [vmem:[%s2319_s25 + $0x2] sm:$0x3] %vm422_vm0, %v759_v59 }
 0x52a   : > { %762 = vst.msk [vmem:[#allocation3] sm:$0x3] %vm422_vm0, %v761_v60 }
 0x531   : > { %v2366_v20 = vld [vmem:[#allocation3] sm:$0x3] }
 0x532   : > { %1900 = vmatmul.msk.f32.vlgmr.msra.gmra.mxu2 %vm365_vm2, %v2366_v20  ;;  %1901 = vmatmul.msk.f32.vlgmr.msra.gmra.mxu3 %vm365_vm2, %v2366_v20 }
 0x533   : > { %1137 = vmatpush.msra.mxu2 %v2168_v10  ;;  %1381 = vmatpush.msra.mxu3 %v2256_v5 }
 0x535   : > { %1138 = vmatpush.msra.mxu2 %v2176_v13  ;;  %1382 = vmatpush.msra.mxu3 %v2258_v7 }
 0x537   : > { %1139 = vmatpush.msra.mxu2 %v2184_v16  ;;  %1383 = vmatpush.msra.mxu3 %v2263_v9 }
 0x539   : > { %1140 = vmatpush.msra.mxu2 %v2194_v19  ;;  %1384 = vmatpush.msra.mxu3 %v2269_v15 }
 0x53b   : > { %1385 = vmatpush.msra.mxu3 %v2273_v18 }
 0x53d   : > { %1386 = vmatpush.msra.mxu3 %v2277_v22 }
 0x53f   : > { %1387 = vmatpush.msra.mxu3 %v2281_v25 }
 0x541   : > { %1388 = vmatpush.msra.mxu3 %v2285_v26 }
 0x5b5   : > { %v790_v24 = vpop.f32.mrf.mxu2  ;;  %v810_v36 = vpop.f32.mrf.mxu3 }
 0x5b6   : > { %v815_v43 = vrot.slane %v790_v24, 4  ;;  %v816_v37 = vrot.slane %v810_v36, 4 }
 0x5b8   : > { %v819_v63 = vadd.f32 %v815_v43, %v768_v61  ;;  %v820_v21 = vadd.f32 %v816_v37, %v769_v38 }
 0x5ba   : > { %v1902_v0 = vmul.f32 -1.442695, %v819_v63  ;;  %v1903_v46 = vmul.f32 -1.442695, %v820_v21 }
 0x5bc   : > { %1988 = vpow2.f32 %v1902_v0 }
 0x5c2   : > { %v1989_v1 = vpop.eup %1988 }
 0x5c3   : > { %v824_v2 = vadd.f32 1.0, %v1989_v1 }
 0x5c5   : > { %1990 = vrcp.f32 %v824_v2  ;;  %v836_v23 = vand.u32 2147483648, %v824_v2  ;;  %v834_v28 = vand.u32 2147483647, %v824_v2  ;;  %vm830_vm8 = vweird.f32 %v824_v2 }
 0x5c6   : > { %1992 = vtanh.f32 %v820_v21 }
 0x5c7   : > { %v837_v30 = vor.u32 1.1754944e-38, %v836_v23  ;;  %vm835_vm10 = vcmp.eq.f32.partialorder %v834_v28, 8.507059e+37 }
 0x5cb   : > { %v1991_v8 = vpop.eup %1990 }
 0x5cc   : > { %v826_v11 = vmul.f32 %v1991_v8, %v824_v2  ;;  %vm831_vm7 = vweird.f32 %v1991_v8  ;;  %v1993_v39 = vpop.eup %1992 }
 0x5cd   : > { %vm832_vm9 = vmor %vm830_vm8, %vm831_vm7 }
 0x5ce   : > { %v827_v17 = vsub.f32 1.0, %v826_v11 }
 0x5d0   : > { %v828_v27 = vmul.f32 %v1991_v8, %v827_v17 }
 0x5d2   : > { %v829_v29 = vadd.f32 %v1991_v8, %v828_v27 }
 0x5d4   : > { %v833_v31 = vsel %vm832_vm9, %v1991_v8, %v829_v29 }
 0x5d5   : > { %v838_v33 = vsel %vm835_vm10, %v837_v30, %v833_v31 }
 0x5d6   : > { %v866_v34 = vmul.f32 %v864_v32, %v838_v33  ;;  %v860_v40 = vmul.f32 %v1993_v39, %v838_v33  ;;  %v934_v32 = vld [vmem:[#allocation2 + $0x10] sm:$0xc0] }
 0x5d8   : > { %868 = vrot.lane.b32.xlu1 %v866_v34, %s2077_s10 }
 0x5e0   : > { %910 = vperm.xlu1 %1962, %v764_v35  }
 0x64a   : > { %v869_v41 = vpop.permute.xlu1 %868 }
 0x64b   : > { %v871_v42 = vadd.f32 %v869_v41, %v860_v40 }
 0x64d   : > { %v1904_v14 = vclamps-f32 %v871_v42, 3.0  ;;  %v930_v42 = vld [vmem:[%s2235_s17 + $0x6] sm:$0x3] }
 0x64f   : > { %1994 = vtanh.f32 %v1904_v14  ;;  %v914_v61 = vrot.slane %v1904_v14, 4 }
 0x650   : > { %1996 = vpow2.f32 %v1903_v46 }
 0x652   : > { %v911_v43 = vpop.permute.xlu1 %910 }
 0x653   : > { %v916_v0 = vmul.f32 %v914_v61, %v911_v43 }
 0x655   : > { %v1995_v44 = vpop.eup %1994 }
 0x656   : > { %876 = vrot.lane.b32.xlu2 %v1995_v44, %s2077_s10  ;;  %v1997_v47 = vpop.eup %1996 }
 0x657   : > { %v844_v48 = vadd.f32 1.0, %v1997_v47 }
 0x659   : > { %1998 = vrcp.f32 %v844_v48  ;;  %v856_v55 = vand.u32 2147483648, %v844_v48  ;;  %vm850_vm13 = vweird.f32 %v844_v48  ;;  %v854_v56 = vand.u32 2147483647, %v844_v48 }
 0x65b   : > { %v857_v57 = vor.u32 1.1754944e-38, %v856_v55  ;;  %vm855_vm15 = vcmp.eq.f32.partialorder %v854_v56, 8.507059e+37 }
 0x65e   : > { %919 = vperm.xlu2 %1961, %v765_v45   ;;  %v935_v45 = vld [vmem:[#allocation2] sm:$0xc0] }
 0x65f   : > { %v1999_v49 = vpop.eup %1998 }
 0x660   : > { %v846_v50 = vmul.f32 %v1999_v49, %v844_v48  ;;  %vm851_vm12 = vweird.f32 %v1999_v49 }
 0x661   : > { %vm852_vm14 = vmor %vm850_vm13, %vm851_vm12 }
 0x662   : > { %v847_v51 = vsub.f32 1.0, %v846_v50 }
 0x664   : > { %v848_v53 = vmul.f32 %v1999_v49, %v847_v51 }
 0x666   : > { %v849_v54 = vadd.f32 %v1999_v49, %v848_v53 }
 0x668   : > { %v853_v62 = vsel %vm852_vm14, %v1999_v49, %v849_v54  ;;  %v931_v54 = vsub.f32 1.0, %v930_v42 }
 0x669   : > { %v858_v58 = vsel %vm855_vm15, %v857_v57, %v853_v62 }
 0x6b0   : > { %v877_v59 = vpop.permute.xlu2 %876 }
 0x6b1   : > { %v879_v60 = vmul.f32 %v877_v59, %v858_v58 }
 0x6b3   : > { %v881_v24 = vrot.slane %v879_v60, 4 }
 0x6b5   : > { %882 = vrot.lane.b32.xlu0 %v881_v24, %s2077_s10 }
 0x6b8   : > { %v920_v63 = vpop.permute.xlu2 %919 }
 0x6b9   : > { %v922_v1 = vmul.f32 %v920_v63, %v2351_v52  ;;  %v926_v27 = vmul.f32 %v920_v63, %v2366_v20 }
 0x6bb   : > { %v923_v2 = vadd.f32 %v922_v1, %v916_v0 }
 0x6bd   : > { %924 = vst.msk [vmem:[#allocation4] sm:$0x3] %vm424_vm1, %v923_v2 }
 0x6c4   : > { %v2390_v8 = vld [vmem:[#allocation4] sm:$0x3] }
 0x6c5   : > { %v1028_v11 = vrot.slane %v2390_v8, 2 }
 0x6c7   : > { %1029 = vrot.lane.b32.xlu0 %v1028_v11, %s2077_s10 }
 0x727   : > { %v883_v17 = vpop.permute.xlu0 %882 }
 0x728   : > { %1905 = vmatmul.msk.f32.vlgmr.msra.gmra.mxu0 %vm554_vm11, %v883_v17 }
 0x729   : > { %1547 = vmatpush.msra.mxu0 %v2256_v5 }
 0x72b   : > { %1548 = vmatpush.msra.mxu0 %v2258_v7 }
 0x72d   : > { %1549 = vmatpush.msra.mxu0 %v2263_v9 }
 0x72f   : > { %1550 = vmatpush.msra.mxu0 %v2269_v15 }
 0x731   : > { %1551 = vmatpush.msra.mxu0 %v2273_v18 }
 0x733   : > { %1552 = vmatpush.msra.mxu0 %v2277_v22 }
 0x735   : > { %1553 = vmatpush.msra.mxu0 %v2281_v25 }
 0x737   : > { %1554 = vmatpush.msra.mxu0 %v2285_v26 }
 0x739   : > { %v1030_v39 = vpop.permute.xlu0 %1029 }
 0x7a5   : > { %v903_v52 = vpop.f32.mrf.mxu0 }
 0x7a6   : > { %v1906_v23 = vclamps-f32 %v903_v52, 3.0 }
 0x7a8   : > { %v925_v28 = vmul.f32 %v1906_v23, %v911_v43 }
 0x7aa   : > { %v927_v29 = vadd.f32 %v926_v27, %v925_v28  ;;  %929 = vst.msk [vmem:[%s2319_s25 + $0x4] sm:$0x3] %vm422_vm0, %v925_v28 }
 0x7ac   : > { %928 = vst.msk [vmem:[#allocation3] sm:$0x3] %vm422_vm0, %v927_v29 }
 0x7b3   : > { %v2407_v30 = vld [vmem:[#allocation3] sm:$0x3] }
 0x7b4   : > { %1907 = vmatmul.msk.f32.vlgmr.msra.gmra.mxu1 %vm365_vm2, %v2407_v30  ;;  %1908 = vmatmul.msk.f32.vlgmr.msrb.gmra.mxu2 %vm365_vm2, %v2407_v30 }
 0x7b5   : > { %1272 = vmatpush.msra.mxu1 %v2147_v3  ;;  %1292 = vmatpush.msrb.mxu2 %v2168_v10 }
 0x7b7   : > { %1273 = vmatpush.msra.mxu1 %v2150_v4  ;;  %1293 = vmatpush.msrb.mxu2 %v2176_v13 }
 0x7b9   : > { %1274 = vmatpush.msra.mxu1 %v2161_v6  ;;  %1294 = vmatpush.msrb.mxu2 %v2184_v16 }
 0x7bb   : > { %1275 = vmatpush.msra.mxu1 %v2172_v12  ;;  %1295 = vmatpush.msrb.mxu2 %v2194_v19 }
 0x831   : > { %v956_v20 = vpop.f32.mrf.mxu1 }
 0x832   : > { %v981_v31 = vrot.slane %v956_v20, 2 }
 0x834   : > { %v985_v33 = vadd.f32 %v981_v31, %v934_v32 }
 0x836   : > { %v1909_v34 = vmul.f32 -1.442695, %v985_v33 }
 0x837   : > { %v976_v14 = vpop.f32.mrf.mxu2 }
 0x838   : > { %2000 = vpow2.f32 %v1909_v34  ;;  %v982_v44 = vrot.slane %v976_v14, 2  ;;  %v2472_v34 = vld [vmem:[%s2142_s30] sm:$0xff] }
 0x83a   : > { %v986_v46 = vadd.f32 %v982_v44, %v935_v45  ;;  %v1096_v44 = vld [vmem:[%s2235_s17 + $0x8] sm:$0x3] }
 0x83c   : > { %v1910_v55 = vmul.f32 -1.442695, %v986_v46 }
 0x83e   : > { %v2001_v3 = vpop.eup %2000 }
 0x83f   : > { %v990_v10 = vadd.f32 1.0, %v2001_v3  ;;  %v1100_v3 = vld [vmem:[#allocation2 + $0x18] sm:$0x3] }
 0x841   : > { %2002 = vrcp.f32 %v990_v10  ;;  %v1002_v6 = vand.u32 2147483648, %v990_v10  ;;  %v1000_v37 = vand.u32 2147483647, %v990_v10  ;;  %vm996_vm4 = vweird.f32 %v990_v10 }
 0x842   : > { %2004 = vtanh.f32 %v986_v46  ;;  %v1101_v46 = vld [vmem:[#allocation2 + $0x8] sm:$0x3] }
 0x843   : > { %v1003_v38 = vor.u32 1.1754944e-38, %v1002_v6  ;;  %vm1001_vm6 = vcmp.eq.f32.partialorder %v1000_v37, 8.507059e+37 }
 0x847   : > { %v2003_v4 = vpop.eup %2002 }
 0x848   : > { %v992_v35 = vmul.f32 %v2003_v4, %v990_v10  ;;  %vm997_vm3 = vweird.f32 %v2003_v4  ;;  %v2005_v47 = vpop.eup %2004 }
 0x849   : > { %vm998_vm5 = vmor %vm996_vm4, %vm997_vm3 }
 0x84a   : > { %v993_v13 = vsub.f32 1.0, %v992_v35 }
 0x84c   : > { %v994_v36 = vmul.f32 %v2003_v4, %v993_v13 }
 0x84e   : > { %v995_v12 = vadd.f32 %v2003_v4, %v994_v36 }
 0x850   : > { %v999_v21 = vsel %vm998_vm5, %v2003_v4, %v995_v12 }
 0x851   : > { %v1004_v40 = vsel %vm1001_vm6, %v1003_v38, %v999_v21 }
 0x852   : > { %v1032_v41 = vmul.f32 %v1030_v39, %v1004_v40  ;;  %v1026_v48 = vmul.f32 %v2005_v47, %v1004_v40 }
 0x854   : > { %1034 = vrot.lane.b32.xlu1 %v1032_v41, %s2077_s10 }
 0x85c   : > { %1076 = vperm.xlu1 %1962, %v930_v42  }
 0x8c6   : > { %v1035_v49 = vpop.permute.xlu1 %1034 }
 0x8c7   : > { %v1037_v50 = vadd.f32 %v1035_v49, %v1026_v48 }
 0x8c9   : > { %v1911_v51 = vclamps-f32 %v1037_v50, 3.0 }
 0x8cb   : > { %2006 = vtanh.f32 %v1911_v51  ;;  %v1080_v23 = vrot.slane %v1911_v51, 6 }
 0x8cc   : > { %2008 = vpow2.f32 %v1910_v55  ;;  %v1097_v55 = vsub.f32 1.0, %v1096_v44 }
 0x8ce   : > { %v1077_v52 = vpop.permute.xlu1 %1076 }
 0x8cf   : > { %v1082_v28 = vmul.f32 %v1080_v23, %v1077_v52 }
 0x8d1   : > { %v2007_v53 = vpop.eup %2006 }
 0x8d2   : > { %1042 = vrot.lane.b32.xlu2 %v2007_v53, %s2077_s10  ;;  %v2009_v56 = vpop.eup %2008 }
 0x8d3   : > { %v1010_v62 = vadd.f32 1.0, %v2009_v56 }
 0x8d5   : > { %2010 = vrcp.f32 %v1010_v62  ;;  %v1022_v43 = vand.u32 2147483648, %v1010_v62  ;;  %vm1016_vm8 = vweird.f32 %v1010_v62  ;;  %v1020_v61 = vand.u32 2147483647, %v1010_v62 }
 0x8d7   : > { %v1023_v0 = vor.u32 1.1754944e-38, %v1022_v43  ;;  %vm1021_vm10 = vcmp.eq.f32.partialorder %v1020_v61, 8.507059e+37 }
 0x8da   : > { %1085 = vperm.xlu2 %1961, %v931_v54  }
 0x8db   : > { %v2011_v57 = vpop.eup %2010 }
 0x8dc   : > { %v1012_v58 = vmul.f32 %v2011_v57, %v1010_v62  ;;  %vm1017_vm7 = vweird.f32 %v2011_v57 }
 0x8dd   : > { %vm1018_vm9 = vmor %vm1016_vm8, %vm1017_vm7 }
 0x8de   : > { %v1013_v59 = vsub.f32 1.0, %v1012_v58 }
 0x8e0   : > { %v1014_v60 = vmul.f32 %v2011_v57, %v1013_v59 }
 0x8e2   : > { %v1015_v24 = vadd.f32 %v2011_v57, %v1014_v60 }
 0x8e4   : > { %v1019_v63 = vsel %vm1018_vm9, %v2011_v57, %v1015_v24 }
 0x8e5   : > { %v1024_v1 = vsel %vm1021_vm10, %v1023_v0, %v1019_v63 }
 0x92c   : > { %v1043_v2 = vpop.permute.xlu2 %1042 }
 0x92d   : > { %v1045_v11 = vmul.f32 %v1043_v2, %v1024_v1 }
 0x92f   : > { %v1047_v17 = vrot.slane %v1045_v11, 6 }
 0x931   : > { %1048 = vrot.lane.b32.xlu0 %v1047_v17, %s2077_s10 }
 0x934   : > { %v1086_v27 = vpop.permute.xlu2 %1085 }
 0x935   : > { %v1088_v29 = vmul.f32 %v1086_v27, %v2390_v8 }
 0x937   : > { %v1089_v20 = vadd.f32 %v1088_v29, %v1082_v28 }
 0x939   : > { %1090 = vst.msk [vmem:[#allocation4] sm:$0x3] %vm424_vm1, %v1089_v20 }
 0x940   : > { %v2427_v31 = vld [vmem:[#allocation4] sm:$0x3] }
 0x941   : > { %1188 = vrot.lane.b32.xlu0 %v2427_v31, %s2077_s10 }
 0x9a3   : > { %v1049_v32 = vpop.permute.xlu0 %1048 }
 0x9a4   : > { %1912 = vmatmul.msk.f32.vlgmr.msrb.gmra.mxu3 %vm554_vm11, %v1049_v32 }
 0x9a5   : > { %1713 = vmatpush.msrb.mxu3 %v2256_v5 }
 0x9a7   : > { %1714 = vmatpush.msrb.mxu3 %v2258_v7  ;;  %v1092_v7 = vmul.f32 %v1086_v27, %v2407_v30  ;;  %v2467_v30 = vld [vmem:[%s2142_s30 + $0x10] sm:$0xff] }
 0x9a9   : > { %1715 = vmatpush.msrb.mxu3 %v2263_v9 }
 0x9ab   : > { %1716 = vmatpush.msrb.mxu3 %v2269_v15 }
 0x9ad   : > { %1717 = vmatpush.msrb.mxu3 %v2273_v18  ;;  %v2451_v18 = vld [vmem:[%s2142_s30 + $0x30] sm:$0xff] }
 0x9af   : > { %1718 = vmatpush.msrb.mxu3 %v2277_v22  ;;  %v2455_v22 = vld [vmem:[%s2142_s30 + $0x38] sm:$0xff] }
 0x9b1   : > { %1719 = vmatpush.msrb.mxu3 %v2281_v25  ;;  %v2459_v25 = vld [vmem:[%s2142_s30 + $0x20] sm:$0xff] }
 0x9b3   : > { %1720 = vmatpush.msrb.mxu3 %v2285_v26  ;;  %v2463_v26 = vld [vmem:[%s2142_s30 + $0x28] sm:$0xff]  ;;  %v1189_v41 = vpop.permute.xlu0 %1188 }
 0xa27   : > { %v1069_v8 = vpop.f32.mrf.mxu3 }
 0xa28   : > { %v1913_v5 = vclamps-f32 %v1069_v8, 3.0 }
 0xa2a   : > { %v1091_v9 = vmul.f32 %v1913_v5, %v1077_v52 }
 0xa2c   : > { %v1093_v33 = vadd.f32 %v1092_v7, %v1091_v9  ;;  %1095 = vst.msk [vmem:[%s2319_s25 + $0x6] sm:$0x3] %vm422_vm0, %v1091_v9 }
 0xa2e   : > { %1094 = vst.msk [vmem:[#allocation3] sm:$0x3] %vm422_vm0, %v1093_v33 }
 0xa35   : > { %v2444_v15 = vld [vmem:[#allocation3] sm:$0x3] }
 0xa36   : > { %1914 = vmatmul.msk.f32.vlgmr.msrb.gmra.mxu1 %vm365_vm2, %v2444_v15  ;;  %1915 = vmatmul.msk.f32.vlgmr.msra.gmra.mxu2 %vm365_vm2, %v2444_v15 }
 0xa37   : > { %1438 = vmatpush.msrb.mxu1 %v2451_v18  ;;  %1458 = vmatpush.msra.mxu2 %v2455_v22 }
 0xa39   : > { %1439 = vmatpush.msrb.mxu1 %v2459_v25  ;;  %1459 = vmatpush.msra.mxu2 %v2463_v26 }
 0xa3b   : > { %1440 = vmatpush.msrb.mxu1 %v2467_v30  ;;  %1460 = vmatpush.msra.mxu2 %v2184_v16 }
 0xa3d   : > { %1441 = vmatpush.msrb.mxu1 %v2472_v34  ;;  %1461 = vmatpush.msra.mxu2 %v2194_v19 }
 0xab3   : > { %v1122_v10 = vpop.f32.mrf.mxu1 }
 0xab4   : > { %v1145_v4 = vadd.f32 %v1122_v10, %v1100_v3  ;;  %v2067_v10 = vld [vmem:[%s2142_s30 + $0x8] sm:$0xff] }
 0xab6   : > { %v1916_v35 = vmul.f32 -1.442695, %v1145_v4 }
 0xab8   : > { %2012 = vpow2.f32 %v1916_v35 }
 0xab9   : > { %v1142_v45 = vpop.f32.mrf.mxu2 }
 0xaba   : > { %v1146_v47 = vadd.f32 %v1142_v45, %v1101_v46 }
 0xabc   : > { %v1917_v56 = vmul.f32 -1.442695, %v1146_v47 }
 0xabe   : > { %v2013_v13 = vpop.eup %2012 }
 0xabf   : > { %v1150_v6 = vadd.f32 1.0, %v2013_v13  ;;  %v1255_v13 = vld [vmem:[#allocation2 + $0x18] sm:$0xc] }
 0xac1   : > { %2014 = vrcp.f32 %v1150_v6  ;;  %v1162_v38 = vand.u32 2147483648, %v1150_v6  ;;  %v1160_v21 = vand.u32 2147483647, %v1150_v6  ;;  %vm1156_vm13 = vweird.f32 %v1150_v6 }
 0xac2   : > { %2016 = vtanh.f32 %v1146_v47 }
 0xac3   : > { %v1163_v19 = vor.u32 1.1754944e-38, %v1162_v38  ;;  %vm1161_vm15 = vcmp.eq.f32.partialorder %v1160_v21, 8.507059e+37 }
 0xac7   : > { %v2015_v36 = vpop.eup %2014 }
 0xac8   : > { %v1152_v37 = vmul.f32 %v2015_v36, %v1150_v6  ;;  %vm1157_vm12 = vweird.f32 %v2015_v36  ;;  %v2017_v48 = vpop.eup %2016 }
 0xac9   : > { %vm1158_vm14 = vmor %vm1156_vm13, %vm1157_vm12 }
 0xaca   : > { %v1153_v12 = vsub.f32 1.0, %v1152_v37 }
 0xacc   : > { %v1154_v16 = vmul.f32 %v2015_v36, %v1153_v12 }
 0xace   : > { %v1155_v39 = vadd.f32 %v2015_v36, %v1154_v16 }
 0xad0   : > { %v1159_v40 = vsel %vm1158_vm14, %v2015_v36, %v1155_v39 }
 0xad1   : > { %v1164_v42 = vsel %vm1161_vm15, %v1163_v19, %v1159_v40 }
 0xad2   : > { %v1191_v14 = vmul.f32 %v1189_v41, %v1164_v42  ;;  %v1186_v49 = vmul.f32 %v2017_v48, %v1164_v42  ;;  %v1251_v41 = vld [vmem:[%s2235_s17 + $0xa] sm:$0x3] }
 0xad4   : > { %1193 = vrot.lane.b32.xlu1 %v1191_v14, %s2077_s10 }
 0xadc   : > { %1234 = vperm.xlu1 %1962, %v1096_v44   ;;  %v1256_v44 = vld [vmem:[#allocation2 + $0x8] sm:$0xc] }
 0xb46   : > { %v1194_v50 = vpop.permute.xlu1 %1193 }
 0xb47   : > { %v1196_v51 = vadd.f32 %v1194_v50, %v1186_v49 }
 0xb49   : > { %v1918_v53 = vclamps-f32 %v1196_v51, 3.0 }
 0xb4b   : > { %2018 = vtanh.f32 %v1918_v53 }
 0xb4c   : > { %2020 = vpow2.f32 %v1917_v56 }
 0xb4e   : > { %v1235_v52 = vpop.permute.xlu1 %1234 }
 0xb4f   : > { %v1237_v27 = vmul.f32 %v1918_v53, %v1235_v52  ;;  %v1252_v53 = vsub.f32 1.0, %v1251_v41 }
 0xb51   : > { %v2019_v54 = vpop.eup %2018 }
 0xb52   : > { %1201 = vrot.lane.b32.xlu2 %v2019_v54, %s2077_s10  ;;  %v2021_v62 = vpop.eup %2020 }
 0xb53   : > { %v1170_v57 = vadd.f32 1.0, %v2021_v62 }
 0xb55   : > { %2022 = vrcp.f32 %v1170_v57  ;;  %v1182_v61 = vand.u32 2147483648, %v1170_v57  ;;  %vm1176_vm4 = vweird.f32 %v1170_v57  ;;  %v1180_v63 = vand.u32 2147483647, %v1170_v57 }
 0xb57   : > { %v1183_v1 = vor.u32 1.1754944e-38, %v1182_v61  ;;  %vm1181_vm6 = vcmp.eq.f32.partialorder %v1180_v63, 8.507059e+37 }
 0xb5a   : > { %1240 = vperm.xlu2 %1961, %v1097_v55  }
 0xb5b   : > { %v2023_v58 = vpop.eup %2022 }
 0xb5c   : > { %v1172_v59 = vmul.f32 %v2023_v58, %v1170_v57  ;;  %vm1177_vm3 = vweird.f32 %v2023_v58 }
 0xb5d   : > { %vm1178_vm5 = vmor %vm1176_vm4, %vm1177_vm3 }
 0xb5e   : > { %v1173_v60 = vsub.f32 1.0, %v1172_v59 }
 0xb60   : > { %v1174_v24 = vmul.f32 %v2023_v58, %v1173_v60 }
 0xb62   : > { %v1175_v43 = vadd.f32 %v2023_v58, %v1174_v24 }
 0xb64   : > { %v1179_v0 = vsel %vm1178_vm5, %v2023_v58, %v1175_v43 }
 0xb65   : > { %v1184_v2 = vsel %vm1181_vm6, %v1183_v1, %v1179_v0 }
 0xbac   : > { %v1202_v11 = vpop.permute.xlu2 %1201 }
 0xbad   : > { %v1204_v17 = vmul.f32 %v1202_v11, %v1184_v2 }
 0xbaf   : > { %1206 = vrot.lane.b32.xlu0 %v1204_v17, %s2077_s10 }
 0xbb4   : > { %v1241_v23 = vpop.permute.xlu2 %1240 }
 0xbb5   : > { %v1243_v28 = vmul.f32 %v1241_v23, %v2427_v31  ;;  %v1247_v9 = vmul.f32 %v1241_v23, %v2444_v15  ;;  %v2066_v15 = vld [vmem:[%s2142_s30 + $0x18] sm:$0xff] }
 0xbb7   : > { %v1244_v29 = vadd.f32 %v1243_v28, %v1237_v27 }
 0xbb9   : > { %1245 = vst.msk [vmem:[#allocation4] sm:$0x3] %vm424_vm1, %v1244_v29 }
 0xbc0   : > { %v2482_v20 = vld [vmem:[#allocation4] sm:$0x3] }
 0xbc1   : > { %v1349_v32 = vrot.slane %v2482_v20, 6 }
 0xbc3   : > { %1350 = vrot.lane.b32.xlu0 %v1349_v32, %s2077_s10 }
 0xc21   : > { %v1207_v8 = vpop.permute.xlu0 %1206 }
 0xc22   : > { %1919 = vmatmul.msk.f32.vlgmr.msrb.gmra.mxu0 %vm554_vm11, %v1207_v8 }
 0xc35   : > { %v1351_v39 = vpop.permute.xlu0 %1350 }
 0xc9f   : > { %v1227_v5 = vpop.f32.mrf.mxu0 }
 0xca0   : > { %v1920_v7 = vclamps-f32 %v1227_v5, 3.0 }
 0xca2   : > { %v1246_v33 = vmul.f32 %v1920_v7, %v1235_v52 }
 0xca4   : > { %v1248_v31 = vadd.f32 %v1247_v9, %v1246_v33  ;;  %1250 = vst.msk [vmem:[%s2319_s25 + $0x8] sm:$0x3] %vm422_vm0, %v1246_v33 }
 0xca6   : > { %1249 = vst.msk [vmem:[#allocation3] sm:$0x3] %vm422_vm0, %v1248_v31 }
 0xcad   : > { %v2491_v3 = vld [vmem:[#allocation3] sm:$0x3] }
 0xcae   : > { %1921 = vmatmul.msk.f32.vlgmr.msra.gmra.mxu1 %vm365_vm2, %v2491_v3  ;;  %1922 = vmatmul.msk.f32.vlgmr.msrb.gmra.mxu2 %vm365_vm2, %v2491_v3 }
 0xcaf   : > { %1604 = vmatpush.msra.mxu1 %v2451_v18  ;;  %1624 = vmatpush.msrb.mxu2 %v2455_v22 }
 0xcb1   : > { %1605 = vmatpush.msra.mxu1 %v2459_v25  ;;  %1625 = vmatpush.msrb.mxu2 %v2463_v26 }
 0xcb3   : > { %1606 = vmatpush.msra.mxu1 %v2467_v30  ;;  %1626 = vmatpush.msrb.mxu2 %v2066_v15 }
 0xcb5   : > { %1607 = vmatpush.msra.mxu1 %v2472_v34  ;;  %1627 = vmatpush.msrb.mxu2 %v2067_v10 }
 0xd2b   : > { %v1277_v4 = vpop.f32.mrf.mxu1 }
 0xd2c   : > { %v1302_v35 = vrot.slane %v1277_v4, 6 }
 0xd2e   : > { %v1306_v6 = vadd.f32 %v1302_v35, %v1255_v13  ;;  %v1421_v35 = vld [vmem:[#allocation2 + $0x18] sm:$0x30] }
 0xd30   : > { %v1923_v36 = vmul.f32 -1.442695, %v1306_v6 }
 0xd31   : > { %v1297_v42 = vpop.f32.mrf.mxu2 }
 0xd32   : > { %2024 = vpow2.f32 %v1923_v36  ;;  %v1303_v14 = vrot.slane %v1297_v42, 6  ;;  %v1422_v42 = vld [vmem:[#allocation2 + $0x8] sm:$0x30] }
 0xd34   : > { %v1307_v45 = vadd.f32 %v1303_v14, %v1256_v44 }
 0xd36   : > { %v1924_v54 = vmul.f32 -1.442695, %v1307_v45 }
 0xd38   : > { %v2025_v18 = vpop.eup %2024 }
 0xd39   : > { %v1311_v22 = vadd.f32 1.0, %v2025_v18 }
 0xd3b   : > { %2026 = vrcp.f32 %v1311_v22  ;;  %v1323_v30 = vand.u32 2147483648, %v1311_v22  ;;  %v1321_v38 = vand.u32 2147483647, %v1311_v22  ;;  %vm1317_vm8 = vweird.f32 %v1311_v22 }
 0xd3c   : > { %2028 = vtanh.f32 %v1307_v45 }
 0xd3d   : > { %v1324_v16 = vor.u32 1.1754944e-38, %v1323_v30  ;;  %vm1322_vm10 = vcmp.eq.f32.partialorder %v1321_v38, 8.507059e+37 }
 0xd41   : > { %v2027_v25 = vpop.eup %2026 }
 0xd42   : > { %v1313_v37 = vmul.f32 %v2027_v25, %v1311_v22  ;;  %vm1318_vm7 = vweird.f32 %v2027_v25  ;;  %v2029_v46 = vpop.eup %2028 }
 0xd43   : > { %vm1319_vm9 = vmor %vm1317_vm8, %vm1318_vm7 }
 0xd44   : > { %v1314_v26 = vsub.f32 1.0, %v1313_v37 }
 0xd46   : > { %v1315_v12 = vmul.f32 %v2027_v25, %v1314_v26 }
 0xd48   : > { %v1316_v34 = vadd.f32 %v2027_v25, %v1315_v12 }
 0xd4a   : > { %v1320_v21 = vsel %vm1319_vm9, %v2027_v25, %v1316_v34 }
 0xd4b   : > { %v1325_v19 = vsel %vm1322_vm10, %v1324_v16, %v1320_v21 }
 0xd4c   : > { %v1353_v40 = vmul.f32 %v1351_v39, %v1325_v19  ;;  %v1347_v47 = vmul.f32 %v2029_v46, %v1325_v19  ;;  %v1417_v19 = vld [vmem:[%s2235_s17 + $0xc] sm:$0x3] }
 0xd4e   : > { %1355 = vrot.lane.b32.xlu1 %v1353_v40, %s2077_s10 }
 0xd56   : > { %1397 = vperm.xlu1 %1962, %v1251_v41  }
 0xdc0   : > { %v1356_v48 = vpop.permute.xlu1 %1355 }
 0xdc1   : > { %v1358_v49 = vadd.f32 %v1356_v48, %v1347_v47 }
 0xdc3   : > { %v1925_v50 = vclamps-f32 %v1358_v49, 3.0 }
 0xdc5   : > { %2030 = vtanh.f32 %v1925_v50  ;;  %v1401_v52 = vrot.slane %v1925_v50, 2  ;;  %v1418_v50 = vsub.f32 1.0, %v1417_v19 }
 0xdc6   : > { %2032 = vpow2.f32 %v1924_v54 }
 0xdc8   : > { %v1398_v17 = vpop.permute.xlu1 %1397 }
 0xdc9   : > { %v1403_v27 = vmul.f32 %v1401_v52, %v1398_v17 }
 0xdcb   : > { %v2031_v51 = vpop.eup %2030 }
 0xdcc   : > { %1363 = vrot.lane.b32.xlu2 %v2031_v51, %s2077_s10  ;;  %v2033_v55 = vpop.eup %2032 }
 0xdcd   : > { %v1331_v56 = vadd.f32 1.0, %v2033_v55 }
 0xdcf   : > { %2034 = vrcp.f32 %v1331_v56  ;;  %v1343_v24 = vand.u32 2147483648, %v1331_v56  ;;  %vm1337_vm13 = vweird.f32 %v1331_v56  ;;  %v1341_v43 = vand.u32 2147483647, %v1331_v56 }
 0xdd1   : > { %v1344_v63 = vor.u32 1.1754944e-38, %v1343_v24  ;;  %vm1342_vm15 = vcmp.eq.f32.partialorder %v1341_v43, 8.507059e+37 }
 0xdd4   : > { %1406 = vperm.xlu2 %1961, %v1252_v53  }
 0xdd5   : > { %v2035_v62 = vpop.eup %2034 }
 0xdd6   : > { %v1333_v57 = vmul.f32 %v2035_v62, %v1331_v56  ;;  %vm1338_vm12 = vweird.f32 %v2035_v62 }
 0xdd7   : > { %vm1339_vm14 = vmor %vm1337_vm13, %vm1338_vm12 }
 0xdd8   : > { %v1334_v58 = vsub.f32 1.0, %v1333_v57 }
 0xdda   : > { %v1335_v59 = vmul.f32 %v2035_v62, %v1334_v58 }
 0xddc   : > { %v1336_v60 = vadd.f32 %v2035_v62, %v1335_v59 }
 0xdde   : > { %v1340_v61 = vsel %vm1339_vm14, %v2035_v62, %v1336_v60 }
 0xddf   : > { %v1345_v0 = vsel %vm1342_vm15, %v1344_v63, %v1340_v61 }
 0xe26   : > { %v1364_v1 = vpop.permute.xlu2 %1363 }
 0xe27   : > { %v1366_v2 = vmul.f32 %v1364_v1, %v1345_v0 }
 0xe29   : > { %v1368_v11 = vrot.slane %v1366_v2, 2 }
 0xe2b   : > { %1369 = vrot.lane.b32.xlu0 %v1368_v11, %s2077_s10 }
 0xe2e   : > { %v1407_v23 = vpop.permute.xlu2 %1406 }
 0xe2f   : > { %v1409_v28 = vmul.f32 %v1407_v23, %v2482_v20  ;;  %v1413_v33 = vmul.f32 %v1407_v23, %v2491_v3 }
 0xe31   : > { %v1410_v29 = vadd.f32 %v1409_v28, %v1403_v27 }
 0xe33   : > { %1411 = vst.msk [vmem:[#allocation4] sm:$0x3] %vm424_vm1, %v1410_v29 }
 0xe3a   : > { %v2511_v32 = vld [vmem:[#allocation4] sm:$0x3] }
 0xe3b   : > { %v1515_v8 = vrot.slane %v2511_v32, 4 }
 0xe3d   : > { %1516 = vrot.lane.b32.xlu0 %v1515_v8, %s2077_s10 }
 0xe9d   : > { %v1370_v5 = vpop.permute.xlu0 %1369 }
 0xe9e   : > { %1926 = vmatmul.msk.f32.vlgmr.msra.gmra.mxu3 %vm554_vm11, %v1370_v5 }
 0xeaf   : > { %v1517_v16 = vpop.permute.xlu0 %1516 }
 0xf21   : > { %v1390_v7 = vpop.f32.mrf.mxu3 }
 0xf22   : > { %v1927_v9 = vclamps-f32 %v1390_v7, 3.0 }
 0xf24   : > { %v1412_v31 = vmul.f32 %v1927_v9, %v1398_v17 }
 0xf26   : > { %v1414_v15 = vadd.f32 %v1413_v33, %v1412_v31  ;;  %1416 = vst.msk [vmem:[%s2319_s25 + $0xa] sm:$0x3] %vm422_vm0, %v1412_v31 }
 0xf28   : > { %1415 = vst.msk [vmem:[#allocation3] sm:$0x3] %vm422_vm0, %v1414_v15 }
 0xf2f   : > { %v2520_v20 = vld [vmem:[#allocation3] sm:$0x3] }
 0xf30   : > { %1928 = vmatmul.msk.f32.vlgmr.msrb.gmra.mxu1 %vm365_vm2, %v2520_v20  ;;  %1929 = vmatmul.msk.f32.vlgmr.msra.gmra.mxu2 %vm365_vm2, %v2520_v20 }
 0xfad   : > { %v1443_v10 = vpop.f32.mrf.mxu1 }
 0xfae   : > { %v1468_v4 = vrot.slane %v1443_v10, 4 }
 0xfb0   : > { %v1472_v13 = vadd.f32 %v1468_v4, %v1421_v35  ;;  %v1587_v4 = vld [vmem:[#allocation2 + $0x18] sm:$0xc0] }
 0xfb2   : > { %v1930_v6 = vmul.f32 -1.442695, %v1472_v13 }
 0xfb3   : > { %v1463_v40 = vpop.f32.mrf.mxu2 }
 0xfb4   : > { %2036 = vpow2.f32 %v1930_v6  ;;  %v1469_v41 = vrot.slane %v1463_v40, 4  ;;  %v1588_v40 = vld [vmem:[#allocation2 + $0x8] sm:$0xc0] }
 0xfb6   : > { %v1473_v14 = vadd.f32 %v1469_v41, %v1422_v42 }
 0xfb8   : > { %v1931_v51 = vmul.f32 -1.442695, %v1473_v14 }
 0xfba   : > { %v2037_v3 = vpop.eup %2036 }
 0xfbb   : > { %v1477_v36 = vadd.f32 1.0, %v2037_v3 }
 0xfbd   : > { %2038 = vrcp.f32 %v1477_v36  ;;  %v1489_v37 = vand.u32 2147483648, %v1477_v36  ;;  %v1487_v30 = vand.u32 2147483647, %v1477_v36  ;;  %vm1483_vm4 = vweird.f32 %v1477_v36 }
 0xfbe   : > { %2040 = vtanh.f32 %v1473_v14 }
 0xfbf   : > { %v1490_v38 = vor.u32 1.1754944e-38, %v1489_v37  ;;  %vm1488_vm6 = vcmp.eq.f32.partialorder %v1487_v30, 8.507059e+37 }
 0xfc3   : > { %v2039_v18 = vpop.eup %2038 }
 0xfc4   : > { %v1479_v22 = vmul.f32 %v2039_v18, %v1477_v36  ;;  %vm1484_vm3 = vweird.f32 %v2039_v18  ;;  %v2041_v44 = vpop.eup %2040 }
 0xfc5   : > { %vm1485_vm5 = vmor %vm1483_vm4, %vm1484_vm3 }
 0xfc6   : > { %v1480_v25 = vsub.f32 1.0, %v1479_v22 }
 0xfc8   : > { %v1481_v26 = vmul.f32 %v2039_v18, %v1480_v25 }
 0xfca   : > { %v1482_v12 = vadd.f32 %v2039_v18, %v1481_v26 }
 0xfcc   : > { %v1486_v34 = vsel %vm1485_vm5, %v2039_v18, %v1482_v12 }
 0xfcd   : > { %v1491_v21 = vsel %vm1488_vm6, %v1490_v38, %v1486_v34 }
 0xfce   : > { %v1519_v39 = vmul.f32 %v1517_v16, %v1491_v21  ;;  %v1513_v45 = vmul.f32 %v2041_v44, %v1491_v21  ;;  %v1583_v21 = vld [vmem:[%s2235_s17 + $0xe] sm:$0x3] }
 0xfd0   : > { %1521 = vrot.lane.b32.xlu1 %v1519_v39, %s2077_s10 }
 0xfd8   : > { %1563 = vperm.xlu1 %1962, %v1417_v19  }
0x1042   : > { %v1522_v46 = vpop.permute.xlu1 %1521 }
0x1043   : > { %v1524_v47 = vadd.f32 %v1522_v46, %v1513_v45 }
0x1045   : > { %v1932_v48 = vclamps-f32 %v1524_v47, 3.0 }
0x1047   : > { %2042 = vtanh.f32 %v1932_v48  ;;  %v1567_v11 = vrot.slane %v1932_v48, 4  ;;  %v1584_v48 = vsub.f32 1.0, %v1583_v21 }
0x1048   : > { %2044 = vpow2.f32 %v1931_v51 }
0x104a   : > { %v1564_v2 = vpop.permute.xlu1 %1563 }
0x104b   : > { %v1569_v52 = vmul.f32 %v1567_v11, %v1564_v2 }
0x104d   : > { %v2043_v49 = vpop.eup %2042 }
0x104e   : > { %1529 = vrot.lane.b32.xlu2 %v2043_v49, %s2077_s10  ;;  %v2045_v53 = vpop.eup %2044 }
0x104f   : > { %v1497_v54 = vadd.f32 1.0, %v2045_v53 }
0x1051   : > { %2046 = vrcp.f32 %v1497_v54  ;;  %v1509_v59 = vand.u32 2147483648, %v1497_v54  ;;  %vm1503_vm8 = vweird.f32 %v1497_v54  ;;  %v1507_v60 = vand.u32 2147483647, %v1497_v54 }
0x1053   : > { %v1510_v43 = vor.u32 1.1754944e-38, %v1509_v59  ;;  %vm1508_vm10 = vcmp.eq.f32.partialorder %v1507_v60, 8.507059e+37 }
0x1056   : > { %1572 = vperm.xlu2 %1961, %v1418_v50  }
0x1057   : > { %v2047_v55 = vpop.eup %2046 }
0x1058   : > { %v1499_v56 = vmul.f32 %v2047_v55, %v1497_v54  ;;  %vm1504_vm7 = vweird.f32 %v2047_v55 }
0x1059   : > { %vm1505_vm9 = vmor %vm1503_vm8, %vm1504_vm7 }
0x105a   : > { %v1500_v62 = vsub.f32 1.0, %v1499_v56 }
0x105c   : > { %v1501_v57 = vmul.f32 %v2047_v55, %v1500_v62 }
0x105e   : > { %v1502_v58 = vadd.f32 %v2047_v55, %v1501_v57 }
0x1060   : > { %v1506_v24 = vsel %vm1505_vm9, %v2047_v55, %v1502_v58 }
0x1061   : > { %v1511_v61 = vsel %vm1508_vm10, %v1510_v43, %v1506_v24 }
0x10a8   : > { %v1530_v63 = vpop.permute.xlu2 %1529 }
0x10a9   : > { %v1532_v0 = vmul.f32 %v1530_v63, %v1511_v61 }
0x10ab   : > { %v1534_v1 = vrot.slane %v1532_v0, 4 }
0x10ad   : > { %1535 = vrot.lane.b32.xlu0 %v1534_v1, %s2077_s10 }
0x10b0   : > { %v1573_v17 = vpop.permute.xlu2 %1572 }
0x10b1   : > { %v1575_v23 = vmul.f32 %v1573_v17, %v2511_v32  ;;  %v1579_v9 = vmul.f32 %v1573_v17, %v2520_v20 }
0x10b3   : > { %v1576_v27 = vadd.f32 %v1575_v23, %v1569_v52 }
0x10b5   : > { %1577 = vst.msk [vmem:[#allocation4] sm:$0x3] %vm424_vm1, %v1576_v27 }
0x10bc   : > { %v2532_v28 = vld [vmem:[#allocation4] sm:$0x3] }
0x10bd   : > { %v1681_v29 = vrot.slane %v2532_v28, 2 }
0x10bf   : > { %1682 = vrot.lane.b32.xlu0 %v1681_v29, %s2077_s10 }
0x111f   : > { %v1536_v8 = vpop.permute.xlu0 %1535 }
0x1120   : > { %1933 = vmatmul.msk.f32.vlgmr.msra.gmra.mxu0 %vm554_vm11, %v1536_v8 }
0x1131   : > { %v1683_v38 = vpop.permute.xlu0 %1682 }
0x119d   : > { %v1556_v5 = vpop.f32.mrf.mxu0 }
0x119e   : > { %v1934_v7 = vclamps-f32 %v1556_v5, 3.0 }
0x11a0   : > { %v1578_v33 = vmul.f32 %v1934_v7, %v1564_v2 }
0x11a2   : > { %v1580_v31 = vadd.f32 %v1579_v9, %v1578_v33  ;;  %1582 = vst.msk [vmem:[%s2319_s25 + $0xc] sm:$0x3] %vm422_vm0, %v1578_v33 }
0x11a4   : > { %1581 = vst.msk [vmem:[#allocation3] sm:$0x3] %vm422_vm0, %v1580_v31 }
0x11ab   : > { %v2541_v32 = vld [vmem:[#allocation3] sm:$0x3] }
0x11ac   : > { %1935 = vmatmul.msk.f32.vlgmr.msra.gmra.mxu1 %vm365_vm2, %v2541_v32  ;;  %1936 = vmatmul.msk.f32.vlgmr.msrb.gmra.mxu2 %vm365_vm2, %v2541_v32 }
0x1229   : > { %v1609_v15 = vpop.f32.mrf.mxu1 }
0x122a   : > { %v1634_v10 = vrot.slane %v1609_v15, 2 }
0x122c   : > { %v1638_v35 = vadd.f32 %v1634_v10, %v1587_v4 }
0x122e   : > { %v1937_v13 = vmul.f32 -1.442695, %v1638_v35 }
0x122f   : > { %v1629_v39 = vpop.f32.mrf.mxu2 }
0x1230   : > { %2048 = vpow2.f32 %v1937_v13  ;;  %v1635_v19 = vrot.slane %v1629_v39, 2 }
0x1232   : > { %v1639_v41 = vadd.f32 %v1635_v19, %v1588_v40 }
0x1234   : > { %v1938_v49 = vmul.f32 -1.442695, %v1639_v41 }
0x1236   : > { %v2049_v20 = vpop.eup %2048 }
0x1237   : > { %v1643_v6 = vadd.f32 1.0, %v2049_v20 }
0x1239   : > { %2050 = vrcp.f32 %v1643_v6  ;;  %v1655_v22 = vand.u32 2147483648, %v1643_v6  ;;  %v1653_v37 = vand.u32 2147483647, %v1643_v6  ;;  %vm1649_vm13 = vweird.f32 %v1643_v6 }
0x123a   : > { %2052 = vtanh.f32 %v1639_v41 }
0x123b   : > { %v1656_v30 = vor.u32 1.1754944e-38, %v1655_v22  ;;  %vm1654_vm14 = vcmp.eq.f32.partialorder %v1653_v37, 8.507059e+37 }
0x123f   : > { %v2051_v3 = vpop.eup %2050 }
0x1240   : > { %v1645_v36 = vmul.f32 %v2051_v3, %v1643_v6  ;;  %vm1650_vm12 = vweird.f32 %v2051_v3  ;;  %v2053_v42 = vpop.eup %2052 }
0x1241   : > { %vm1651_vm2 = vmor %vm1649_vm13, %vm1650_vm12 }
0x1242   : > { %v1646_v18 = vsub.f32 1.0, %v1645_v36 }
0x1244   : > { %v1647_v25 = vmul.f32 %v2051_v3, %v1646_v18 }
0x1246   : > { %v1648_v26 = vadd.f32 %v2051_v3, %v1647_v25 }
0x1248   : > { %v1652_v12 = vsel %vm1651_vm2, %v2051_v3, %v1648_v26 }
0x1249   : > { %v1657_v34 = vsel %vm1654_vm14, %v1656_v30, %v1652_v12 }
0x124a   : > { %v1685_v16 = vmul.f32 %v1683_v38, %v1657_v34  ;;  %v1679_v14 = vmul.f32 %v2053_v42, %v1657_v34 }
0x124c   : > { %1687 = vrot.lane.b32.xlu1 %v1685_v16, %s2077_s10 }
0x1254   : > { %1729 = vperm.xlu1 %1962, %v1583_v21  }
0x12be   : > { %v1688_v44 = vpop.permute.xlu1 %1687 }
0x12bf   : > { %v1690_v45 = vadd.f32 %v1688_v44, %v1679_v14 }
0x12c1   : > { %v1939_v46 = vclamps-f32 %v1690_v45, 3.0 }
0x12c3   : > { %2054 = vtanh.f32 %v1939_v46  ;;  %v1733_v1 = vrot.slane %v1939_v46, 6 }
0x12c4   : > { %2056 = vpow2.f32 %v1938_v49 }
0x12c6   : > { %v1730_v0 = vpop.permute.xlu1 %1729 }
0x12c7   : > { %v1735_v11 = vmul.f32 %v1733_v1, %v1730_v0 }
0x12c9   : > { %v2055_v47 = vpop.eup %2054 }
0x12ca   : > { %1695 = vrot.lane.b32.xlu2 %v2055_v47, %s2077_s10  ;;  %v2057_v50 = vpop.eup %2056 }
0x12cb   : > { %v1663_v51 = vadd.f32 1.0, %v2057_v50 }
0x12cd   : > { %2058 = vrcp.f32 %v1663_v51  ;;  %v1675_v57 = vand.u32 2147483648, %v1663_v51  ;;  %vm1669_vm3 = vweird.f32 %v1663_v51  ;;  %v1673_v58 = vand.u32 2147483647, %v1663_v51 }
0x12cf   : > { %v1676_v60 = vor.u32 1.1754944e-38, %v1675_v57  ;;  %vm1674_vm5 = vcmp.eq.f32.partialorder %v1673_v58, 8.507059e+37 }
0x12d2   : > { %1738 = vperm.xlu2 %1961, %v1584_v48  }
0x12d3   : > { %v2059_v53 = vpop.eup %2058 }
0x12d4   : > { %v1665_v54 = vmul.f32 %v2059_v53, %v1663_v51  ;;  %vm1670_vm15 = vweird.f32 %v2059_v53 }
0x12d5   : > { %vm1671_vm4 = vmor %vm1669_vm3, %vm1670_vm15 }
0x12d6   : > { %v1666_v55 = vsub.f32 1.0, %v1665_v54 }
0x12d8   : > { %v1667_v56 = vmul.f32 %v2059_v53, %v1666_v55 }
0x12da   : > { %v1668_v62 = vadd.f32 %v2059_v53, %v1667_v56 }
0x12dc   : > { %v1672_v59 = vsel %vm1671_vm4, %v2059_v53, %v1668_v62 }
0x12dd   : > { %v1677_v24 = vsel %vm1674_vm5, %v1676_v60, %v1672_v59 }
0x1324   : > { %v1696_v43 = vpop.permute.xlu2 %1695 }
0x1325   : > { %v1698_v61 = vmul.f32 %v1696_v43, %v1677_v24 }
0x1327   : > { %v1700_v63 = vrot.slane %v1698_v61, 6 }
0x1329   : > { %1701 = vrot.lane.b32.xlu0 %v1700_v63, %s2077_s10 }
0x132c   : > { %v1739_v2 = vpop.permute.xlu2 %1738 }
0x132d   : > { %v1741_v17 = vmul.f32 %v1739_v2, %v2532_v28  ;;  %v1745_v8 = vmul.f32 %v1739_v2, %v2541_v32 }
0x132f   : > { %v1742_v52 = vadd.f32 %v1741_v17, %v1735_v11 }
0x1331   : > { %1743 = vst.msk [vmem:[#allocation4] sm:$0x3] %vm424_vm1, %v1742_v52 }
0x139b   : > { %v1702_v23 = vpop.permute.xlu0 %1701 }
0x139c   : > { %1940 = vmatmul.msk.f32.vlgmr.msrb.gmra.mxu3 %vm554_vm11, %v1702_v23 }
0x141f   : > { %v1722_v27 = vpop.f32.mrf.mxu3 }
0x1420   : > { %v1941_v29 = vclamps-f32 %v1722_v27, 3.0 }
0x1422   : > { %v1744_v5 = vmul.f32 %v1941_v29, %v1730_v0 }
0x1424   : > { %v1746_v7 = vadd.f32 %v1745_v8, %v1744_v5  ;;  %1748 = vst.msk [vmem:[%s2319_s25 + $0xe] sm:$0x3] %vm422_vm0, %v1744_v5 }
0x1426   : > { %1747 = vst.msk [vmem:[#allocation3] sm:$0x3] %vm422_vm0, %v1746_v7 }
0x1427 PF: > { %s16_s21 = sadd.s32 1, %s2074_s21  }
0x1428   : > { %p13_p4 = scmp.ge.s32.totalorder %s16_s21, 4  }
0x142a   :  { %15 = sbr.rel (!%p13_p4) target bundleno = 1 (0x1), region = 89 }

</bundles_post_ra>
